<compile_context>
chip_gen: v5e
topology: v5e:2x2
jax: 0.10.0
libtpu: 0.0.40
codegen_flags: <defaults>
</compile_context>

<pallas_src>
import functools

import jax
import jax.numpy as jnp
from jax import lax
from jax.experimental import pallas as pl
from jax.experimental.pallas import tpu as pltpu

HIDDEN = 32
NUM_LAYERS = 3
INPUT_SIZE = 1
BATCH = 2
SEQ = 8


# ---------------------------------------------------------------------------
# Fused Pallas kernel: 3-layer bidirectional GRU + Linear head
# ---------------------------------------------------------------------------
def _gru_encoder_kernel(x_ref,      # (B, T, 1)        raw batch-first input
                        wih0_ref,   # (2, 6H)          layer-0 input rows (fwd, bwd)
                        wih12_ref,  # (L-1, 4H, 6H)    layers>=1 fused input proj
                        whh_ref,    # (L, 2H, 6H)      block-diag recurrent proj
                        b0_ref,     # (L, 1, 6H)       b_ih + b_hh(r,z) folded
                        bhhn_ref,   # (L, 1, 2H)       b_hh for n gate
                        fcw_ref,    # (2H, H)
                        fcb_ref,    # (1, H)
                        out_ref,    # (B, H)
                        seq0_ref,   # (T*B, 4H) scratch: layer0 -> layer1 input slab
                        seq1_ref,   # (T*B, 4H) scratch: layer1 -> layer2 input slab
                        *, T, B, H, L):
    f32 = jnp.float32
    H2, H6 = 2 * H, 6 * H

    # Per-time (B, 1) input columns (input_size == 1); no transpose/reshape needed.
    x = x_ref[...].astype(f32)                       # (B, T, 1)
    cols = [x[:, t] for t in range(T)]               # cols[t]: (B, 1)

    # Layer-0 input weights broadcast once (pure VPU outer-product path).
    w0_f = jnp.broadcast_to(wih0_ref[0:1, :], (B, H6))   # fwd cols, zeros elsewhere
    w0_b = jnp.broadcast_to(wih0_ref[1:2, :], (B, H6))   # bwd cols, zeros elsewhere

    scratch = (seq0_ref, seq1_ref)
    last = None

    for layer in range(L):
        last_layer = layer == L - 1
        whh = whh_ref[layer]                                    # (2H, 6H)
        bhn = jnp.broadcast_to(bhhn_ref[layer], (B, H2))        # hoisted broadcast

        if layer == 0:
            b0b = jnp.broadcast_to(b0_ref[layer], (B, H6))      # hoisted broadcast
            xp = None
        else:
            # One fused non-recurrent projection per layer (both dirs, all gates).
            # LHS cols 0:2H = sequence, 2H:4H = time-reversed sequence, so the
            # result rows are already step-aligned for BOTH directions.
            xp = (jnp.dot(scratch[layer - 1][...], wih12_ref[layer - 1],
                          preferred_element_type=f32)
                  + b0_ref[layer])                              # (T*B, 6H)

        h = jnp.zeros((B, H2), f32)     # [h_fwd | h_bwd], vreg-resident carry
        h_bwd_last_t = None             # bwd state after its first step (time T-1)

        for s in range(T):
            if layer == 0:
                # fwd consumes x(t=s), bwd consumes x(t=T-1-s); VPU only.
                xg = cols[s] * w0_f + cols[T - 1 - s] * w0_b + b0b     # (B, 6H)
            else:
                xg = xp[s * B:(s + 1) * B, :]                          # (B, 6H)

            # Single fused recurrent matmul per step (both dirs, all gates).
            hp = jnp.dot(h, whh, preferred_element_type=f32)           # (B, 6H)

            # Column layout: [ n_f n_b | z_f z_b | r_f r_b ].
            r = jax.nn.sigmoid(xg[:, 2 * H2:] + hp[:, 2 * H2:])        # (B, 2H)
            z = jax.nn.sigmoid(xg[:, H2:2 * H2] + hp[:, H2:2 * H2])    # (B, 2H)
            n = jnp.tanh(xg[:, :H2] + r * (hp[:, :H2] + bhn))          # (B, 2H)
            h = (1.0 - z) * n + z * h

            if not last_layer:
                # Scatter into next layer's input slab: cols 0:2H hold the output
                # sequence in time order, cols 2H:4H the time-reversed order.
                scr = scratch[layer]
                hf, hb = h[:, :H], h[:, H:]
                rs, re = s * B, (s + 1) * B                    # row block: time s (fwd)
                qs, qe = (T - 1 - s) * B, (T - s) * B          # row block: time T-1-s
                scr[rs:re, 0:H] = hf
                scr[qs:qe, H:H2] = hb
                scr[qs:qe, H2:H2 + H] = hf
                scr[rs:re, H2 + H:2 * H2] = hb
            elif s == 0:
                # Only output[:, -1, :] is consumed: the bwd half is the bwd state
                # right after it has processed time T-1, i.e. after its first step.
                h_bwd_last_t = h[:, H:]

        if last_layer:
            last = jnp.concatenate([h[:, :H], h_bwd_last_t], axis=-1)   # (B, 2H)

    out_ref[...] = (jnp.dot(last, fcw_ref[...], preferred_element_type=f32)
                    + fcb_ref[...]).astype(out_ref.dtype)


# ---------------------------------------------------------------------------
# Wrapper
# ---------------------------------------------------------------------------
_VMEM = pl.BlockSpec(memory_space=pltpu.MemorySpace.VMEM)


@jax.jit
def gru_encoder_forward(data, packed):
    """data: (B, T, input_size=1)  ->  (B, hidden_size)."""
    B, T, din = data.shape
    assert din == 1, "kernel specializes the module default input_size == 1"
    kernel = functools.partial(_gru_encoder_kernel,
                               T=T, B=B, H=HIDDEN, L=NUM_LAYERS)
    return pl.pallas_call(
        kernel,
        out_shape=jax.ShapeDtypeStruct((B, HIDDEN), jnp.float32),
        in_specs=[_VMEM] * 8,
        out_specs=_VMEM,
        scratch_shapes=[pltpu.VMEM((T * B, 4 * HIDDEN), jnp.float32),
                        pltpu.VMEM((T * B, 4 * HIDDEN), jnp.float32)],
    )(data.astype(jnp.float32), packed["wih0"], packed["wih12"], packed["whh"],
      packed["b0"], packed["bhhn"], packed["fcw"], packed["fcb"])


# ---------------------------------------------------------------------------
# Pack PyTorch-style per-gate weights into the fused block-diagonal layout
# ---------------------------------------------------------------------------
def pack_params(params):
    """Fused column layout (6H wide): [ n_f n_b | z_f z_b | r_f r_b ].

      wih0  : (2, 6H)        layer-0 input rows (row 0 fwd, row 1 bwd); input_size==1
      wih12 : (L-1, 4H, 6H)  layers>=1; rows 0:2H act on the sequence, rows 2H:4H on
                             the reversed sequence (block-diagonal across directions)
      whh   : (L, 2H, 6H)    recurrent; rows 0:H = fwd h, rows H:2H = bwd h
      b0    : (L, 1, 6H)     b_ih (all gates) + b_hh (r, z) pre-folded
      bhhn  : (L, 1, 2H)     b_hh for the n gate (stays inside the r*(...) term)
    """
    H = HIDDEN
    H2, H6 = 2 * H, 6 * H
    L = NUM_LAYERS
    f32 = jnp.float32

    wih0 = jnp.zeros((2, H6), f32)
    wih12 = jnp.zeros((max(L - 1, 1), 2 * H2, H6), f32)
    whh = jnp.zeros((L, H2, H6), f32)
    b0 = jnp.zeros((L, 1, H6), f32)
    bhhn = jnp.zeros((L, 1, H2), f32)

    def tgt_cols(g_src, d):
        blk = (2, 1, 0)[g_src]          # source gate order [r,z,n] -> blocks [n,z,r]
        start = blk * H2 + d * H
        return slice(start, start + H)

    for layer, layer_params in enumerate(params["gru"]):
        for d, p in enumerate(layer_params):          # d = 0 fwd, 1 bwd
            for g in range(3):                        # source gate order [r, z, n]
                src = slice(g * H, (g + 1) * H)
                tgt = tgt_cols(g, d)
                whh = whh.at[layer, d * H:(d + 1) * H, tgt].set(p["w_hh"][:, src])
                if layer == 0:
                    wih0 = wih0.at[d, tgt].set(p["w_ih"][0, src])
                else:
                    wih12 = wih12.at[layer - 1, d * H2:(d + 1) * H2, tgt].set(
                        p["w_ih"][:, src])
                if g == 2:   # n gate: b_hh must stay inside the r*(...) term
                    b0 = b0.at[layer, 0, tgt].set(p["b_ih"][src])
                    bhhn = bhhn.at[layer, 0, d * H:(d + 1) * H].set(p["b_hh"][src])
                else:        # r, z gates: fold b_hh into the hoisted bias
                    b0 = b0.at[layer, 0, tgt].set(p["b_ih"][src] + p["b_hh"][src])

    return dict(wih0=wih0, wih12=wih12, whh=whh, b0=b0, bhhn=bhhn,
                fcw=params["fc_w"], fcb=params["fc_b"].reshape(1, H))


# ---------------------------------------------------------------------------
# Pure-JAX reference (for correctness check)
# ---------------------------------------------------------------------------
def _gru_dir_ref(x_tbd, w_ih, w_hh, b_ih, b_hh):
    H = w_hh.shape[0]
    hi = lax.Precision.HIGHEST

    def step(h, xt):
        xp = jnp.dot(xt, w_ih, precision=hi) + b_ih
        hp = jnp.dot(h, w_hh, precision=hi) + b_hh
        r = jax.nn.sigmoid(xp[:, :H] + hp[:, :H])
        z = jax.nn.sigmoid(xp[:, H:2 * H] + hp[:, H:2 * H])
        n = jnp.tanh(xp[:, 2 * H:] + r * hp[:, 2 * H:])
        h_new = (1.0 - z) * n + z * h
        return h_new, h_new

    h0 = jnp.zeros((x_tbd.shape[1], H), jnp.float32)
    _, ys = lax.scan(step, h0, x_tbd)
    return ys


def gru_encoder_ref(data, params):
    x = jnp.transpose(data, (1, 0, 2)).astype(jnp.float32)
    for layer_params in params["gru"]:
        outs = []
        for d, p in enumerate(layer_params):
            xin = x if d == 0 else x[::-1]
            o = _gru_dir_ref(xin, p["w_ih"], p["w_hh"], p["b_ih"], p["b_hh"])
            if d == 1:
                o = o[::-1]
            outs.append(o)
        x = jnp.concatenate(outs, axis=-1)
    return jnp.dot(x[-1], params["fc_w"],
                   precision=lax.Precision.HIGHEST) + params["fc_b"]


# ---------------------------------------------------------------------------
# Deterministic parameter init (synthetic; mirrors PyTorch shapes, transposed)
# ---------------------------------------------------------------------------
def init_params(key, hidden_size, num_layers, input_size):
    params = {"gru": []}
    scale = 1.0 / jnp.sqrt(hidden_size)
    for layer in range(num_layers):
        din = input_size if layer == 0 else 2 * hidden_size
        layer_params = []
        for _ in range(2):  # forward / reverse directions
            key, k1, k2, k3, k4 = jax.random.split(key, 5)
            layer_params.append({
                # transposed vs torch: (din, 3H) / (H, 3H); gate order [r|z|n]
                "w_ih": jax.random.uniform(k1, (din, 3 * hidden_size),
                                           jnp.float32, -scale, scale),
                "w_hh": jax.random.uniform(k2, (hidden_size, 3 * hidden_size),
                                           jnp.float32, -scale, scale),
                "b_ih": jax.random.uniform(k3, (3 * hidden_size,),
                                           jnp.float32, -scale, scale),
                "b_hh": jax.random.uniform(k4, (3 * hidden_size,),
                                           jnp.float32, -scale, scale),
            })
        params["gru"].append(layer_params)
    key, kw, kb = jax.random.split(key, 3)
    fscale = 1.0 / jnp.sqrt(2 * hidden_size)
    params["fc_w"] = jax.random.uniform(kw, (2 * hidden_size, hidden_size),
                                        jnp.float32, -fscale, fscale)
    params["fc_b"] = jax.random.uniform(kb, (hidden_size,),
                                        jnp.float32, -fscale, fscale)
    return params


if __name__ == "__main__":
    root = jax.random.PRNGKey(0)
    k_data, k_params = jax.random.split(root)

    data = jax.random.normal(k_data, (BATCH, SEQ, INPUT_SIZE), jnp.float32)
    params = init_params(k_params, HIDDEN, NUM_LAYERS, INPUT_SIZE)
    packed = pack_params(params)

    out = jax.block_until_ready(gru_encoder_forward(data, packed))
    ref = jax.block_until_ready(gru_encoder_ref(data, params))

    assert out.shape == (BATCH, HIDDEN), out.shape
    err = float(jnp.max(jnp.abs(out - ref)))
    assert jnp.allclose(out, ref, rtol=2e-3, atol=2e-3), f"max abs err {err}"
    print("KERNEL_OK")
</pallas_src>

<mosaic_0001>
module attributes {stable_mosaic.version = 11 : i64} {
  func.func @_gru_encoder_kernel(%arg0: memref<2x8x1xf32, #tpu.memory_space<vmem>>, %arg1: memref<2x192xf32, #tpu.memory_space<vmem>>, %arg2: memref<2x128x192xf32, #tpu.memory_space<vmem>>, %arg3: memref<3x64x192xf32, #tpu.memory_space<vmem>>, %arg4: memref<3x1x192xf32, #tpu.memory_space<vmem>>, %arg5: memref<3x1x64xf32, #tpu.memory_space<vmem>>, %arg6: memref<64x32xf32, #tpu.memory_space<vmem>>, %arg7: memref<1x32xf32, #tpu.memory_space<vmem>>, %arg8: memref<2x32xf32, #tpu.memory_space<vmem>>, %arg9: memref<16x128xf32, #tpu.memory_space<vmem>>, %arg10: memref<16x128xf32, #tpu.memory_space<vmem>>) attributes {dimension_semantics = [], scalar_prefetch = 0 : i64, scratch_operands = 2 : i64, tpu.core_type = #tpu.core_type<tc>} {
    %c0 = arith.constant 0 : index
    %c0_0 = arith.constant 0 : index
    %c0_1 = arith.constant 0 : index
    %0 = vector.load %arg0[%c0, %c0_0, %c0_1] : memref<2x8x1xf32, #tpu.memory_space<vmem>>, vector<2x8x1xf32>
    %1 = vector.extract_strided_slice %0 {offsets = [0, 0, 0], sizes = [2, 1, 1], strides = [1, 1, 1]} : vector<2x8x1xf32> to vector<2x1x1xf32>
    %2 = vector.shape_cast %1 : vector<2x1x1xf32> to vector<2x1xf32>
    %3 = vector.extract_strided_slice %0 {offsets = [0, 1, 0], sizes = [2, 1, 1], strides = [1, 1, 1]} : vector<2x8x1xf32> to vector<2x1x1xf32>
    %4 = vector.shape_cast %3 : vector<2x1x1xf32> to vector<2x1xf32>
    %5 = vector.extract_strided_slice %0 {offsets = [0, 2, 0], sizes = [2, 1, 1], strides = [1, 1, 1]} : vector<2x8x1xf32> to vector<2x1x1xf32>
    %6 = vector.shape_cast %5 : vector<2x1x1xf32> to vector<2x1xf32>
    %7 = vector.extract_strided_slice %0 {offsets = [0, 3, 0], sizes = [2, 1, 1], strides = [1, 1, 1]} : vector<2x8x1xf32> to vector<2x1x1xf32>
    %8 = vector.shape_cast %7 : vector<2x1x1xf32> to vector<2x1xf32>
    %9 = vector.extract_strided_slice %0 {offsets = [0, 4, 0], sizes = [2, 1, 1], strides = [1, 1, 1]} : vector<2x8x1xf32> to vector<2x1x1xf32>
    %10 = vector.shape_cast %9 : vector<2x1x1xf32> to vector<2x1xf32>
    %11 = vector.extract_strided_slice %0 {offsets = [0, 5, 0], sizes = [2, 1, 1], strides = [1, 1, 1]} : vector<2x8x1xf32> to vector<2x1x1xf32>
    %12 = vector.shape_cast %11 : vector<2x1x1xf32> to vector<2x1xf32>
    %13 = vector.extract_strided_slice %0 {offsets = [0, 6, 0], sizes = [2, 1, 1], strides = [1, 1, 1]} : vector<2x8x1xf32> to vector<2x1x1xf32>
    %14 = vector.shape_cast %13 : vector<2x1x1xf32> to vector<2x1xf32>
    %15 = vector.extract_strided_slice %0 {offsets = [0, 7, 0], sizes = [2, 1, 1], strides = [1, 1, 1]} : vector<2x8x1xf32> to vector<2x1x1xf32>
    %16 = vector.shape_cast %15 : vector<2x1x1xf32> to vector<2x1xf32>
    %c0_2 = arith.constant 0 : index
    %c0_3 = arith.constant 0 : index
    %17 = vector.load %arg1[%c0_2, %c0_3] : memref<2x192xf32, #tpu.memory_space<vmem>>, vector<1x192xf32>
    %18 = vector.shape_cast %17 : vector<1x192xf32> to vector<1x192xf32>
    %19 = vector.broadcast %18 : vector<1x192xf32> to vector<2x192xf32>
    %c1 = arith.constant 1 : index
    %c0_4 = arith.constant 0 : index
    %20 = vector.load %arg1[%c1, %c0_4] : memref<2x192xf32, #tpu.memory_space<vmem>>, vector<1x192xf32>
    %21 = vector.shape_cast %20 : vector<1x192xf32> to vector<1x192xf32>
    %22 = vector.broadcast %21 : vector<1x192xf32> to vector<2x192xf32>
    %c0_5 = arith.constant 0 : index
    %c0_6 = arith.constant 0 : index
    %c0_7 = arith.constant 0 : index
    %23 = vector.load %arg3[%c0_5, %c0_6, %c0_7] : memref<3x64x192xf32, #tpu.memory_space<vmem>>, vector<1x64x192xf32>
    %24 = vector.shape_cast %23 : vector<1x64x192xf32> to vector<64x192xf32>
    %c0_8 = arith.constant 0 : index
    %c0_9 = arith.constant 0 : index
    %c0_10 = arith.constant 0 : index
    %25 = vector.load %arg5[%c0_8, %c0_9, %c0_10] : memref<3x1x64xf32, #tpu.memory_space<vmem>>, vector<1x1x64xf32>
    %26 = vector.shape_cast %25 : vector<1x1x64xf32> to vector<1x64xf32>
    %27 = vector.shape_cast %26 : vector<1x64xf32> to vector<1x64xf32>
    %28 = vector.broadcast %27 : vector<1x64xf32> to vector<2x64xf32>
    %c0_11 = arith.constant 0 : index
    %c0_12 = arith.constant 0 : index
    %c0_13 = arith.constant 0 : index
    %29 = vector.load %arg4[%c0_11, %c0_12, %c0_13] : memref<3x1x192xf32, #tpu.memory_space<vmem>>, vector<1x1x192xf32>
    %30 = vector.shape_cast %29 : vector<1x1x192xf32> to vector<1x192xf32>
    %31 = vector.shape_cast %30 : vector<1x192xf32> to vector<1x192xf32>
    %32 = vector.broadcast %31 : vector<1x192xf32> to vector<2x192xf32>
    %cst = arith.constant 0.000000e+00 : f32
    %33 = vector.broadcast %cst : f32 to vector<2x64xf32>
    %34 = vector.broadcast %2 : vector<2x1xf32> to vector<2x192xf32>
    %35 = arith.mulf %34, %19 : vector<2x192xf32>
    %36 = vector.broadcast %16 : vector<2x1xf32> to vector<2x192xf32>
    %37 = arith.mulf %36, %22 : vector<2x192xf32>
    %38 = arith.addf %35, %37 : vector<2x192xf32>
    %39 = arith.addf %38, %32 : vector<2x192xf32>
    %cst_14 = arith.constant dense<0.000000e+00> : vector<2x192xf32>
    %40 = tpu.matmul %33, %24, %cst_14 {dimension_numbers = #tpu.dot_dimension_numbers<[1], [0], [0], [1], [0, 0, 1, 1], [], []>} : vector<2x64xf32>, vector<64x192xf32>, vector<2x192xf32> -> vector<2x192xf32>
    %41 = vector.extract_strided_slice %39 {offsets = [0, 128], sizes = [2, 64], strides = [1, 1]} : vector<2x192xf32> to vector<2x64xf32>
    %42 = vector.extract_strided_slice %40 {offsets = [0, 128], sizes = [2, 64], strides = [1, 1]} : vector<2x192xf32> to vector<2x64xf32>
    %43 = arith.addf %41, %42 : vector<2x64xf32>
    %44 = arith.negf %43 : vector<2x64xf32>
    %45 = math.exp %44 : vector<2x64xf32>
    %cst_15 = arith.constant 1.000000e+00 : f32
    %46 = vector.broadcast %cst_15 : f32 to vector<2x64xf32>
    %47 = arith.addf %46, %45 : vector<2x64xf32>
    %48 = arith.divf %46, %47 : vector<2x64xf32>
    %49 = vector.extract_strided_slice %39 {offsets = [0, 64], sizes = [2, 64], strides = [1, 1]} : vector<2x192xf32> to vector<2x64xf32>
    %50 = vector.extract_strided_slice %40 {offsets = [0, 64], sizes = [2, 64], strides = [1, 1]} : vector<2x192xf32> to vector<2x64xf32>
    %51 = arith.addf %49, %50 : vector<2x64xf32>
    %52 = arith.negf %51 : vector<2x64xf32>
    %53 = math.exp %52 : vector<2x64xf32>
    %cst_16 = arith.constant 1.000000e+00 : f32
    %54 = vector.broadcast %cst_16 : f32 to vector<2x64xf32>
    %55 = arith.addf %54, %53 : vector<2x64xf32>
    %56 = arith.divf %54, %55 : vector<2x64xf32>
    %57 = vector.extract_strided_slice %39 {offsets = [0, 0], sizes = [2, 64], strides = [1, 1]} : vector<2x192xf32> to vector<2x64xf32>
    %58 = vector.extract_strided_slice %40 {offsets = [0, 0], sizes = [2, 64], strides = [1, 1]} : vector<2x192xf32> to vector<2x64xf32>
    %59 = arith.addf %58, %28 : vector<2x64xf32>
    %60 = arith.mulf %48, %59 : vector<2x64xf32>
    %61 = arith.addf %57, %60 : vector<2x64xf32>
    %62 = math.tanh %61 : vector<2x64xf32>
    %cst_17 = arith.constant 1.000000e+00 : f32
    %63 = vector.broadcast %cst_17 : f32 to vector<2x64xf32>
    %64 = arith.subf %63, %56 : vector<2x64xf32>
    %65 = arith.mulf %64, %62 : vector<2x64xf32>
    %66 = arith.mulf %56, %33 : vector<2x64xf32>
    %67 = arith.addf %65, %66 : vector<2x64xf32>
    %68 = vector.extract_strided_slice %67 {offsets = [0, 0], sizes = [2, 32], strides = [1, 1]} : vector<2x64xf32> to vector<2x32xf32>
    %69 = vector.extract_strided_slice %67 {offsets = [0, 32], sizes = [2, 32], strides = [1, 1]} : vector<2x64xf32> to vector<2x32xf32>
    %c0_18 = arith.constant 0 : index
    %c0_19 = arith.constant 0 : index
    %70 = vector.load %arg9[%c0_18, %c0_19] : memref<16x128xf32, #tpu.memory_space<vmem>>, vector<2x32xf32>
    tpu.vector_store %arg9[%c0_18, %c0_19], %68 {strides = array<i32>} : memref<16x128xf32, #tpu.memory_space<vmem>>, vector<2x32xf32>,
    %c14 = arith.constant 14 : index
    %c32 = arith.constant 32 : index
    %71 = vector.load %arg9[%c14, %c32] : memref<16x128xf32, #tpu.memory_space<vmem>>, vector<2x32xf32>
    tpu.vector_store %arg9[%c14, %c32], %69 {strides = array<i32>} : memref<16x128xf32, #tpu.memory_space<vmem>>, vector<2x32xf32>,
    %c14_20 = arith.constant 14 : index
    %c64 = arith.constant 64 : index
    %72 = vector.load %arg9[%c14_20, %c64] : memref<16x128xf32, #tpu.memory_space<vmem>>, vector<2x32xf32>
    tpu.vector_store %arg9[%c14_20, %c64], %68 {strides = array<i32>} : memref<16x128xf32, #tpu.memory_space<vmem>>, vector<2x32xf32>,
    %c0_21 = arith.constant 0 : index
    %c96 = arith.constant 96 : index
    %73 = vector.load %arg9[%c0_21, %c96] : memref<16x128xf32, #tpu.memory_space<vmem>>, vector<2x32xf32>
    tpu.vector_store %arg9[%c0_21, %c96], %69 {strides = array<i32>} : memref<16x128xf32, #tpu.memory_space<vmem>>, vector<2x32xf32>,
    %74 = vector.broadcast %4 : vector<2x1xf32> to vector<2x192xf32>
    %75 = arith.mulf %74, %19 : vector<2x192xf32>
    %76 = vector.broadcast %14 : vector<2x1xf32> to vector<2x192xf32>
    %77 = arith.mulf %76, %22 : vector<2x192xf32>
    %78 = arith.addf %75, %77 : vector<2x192xf32>
    %79 = arith.addf %78, %32 : vector<2x192xf32>
    %cst_22 = arith.constant dense<0.000000e+00> : vector<2x192xf32>
    %80 = tpu.matmul %67, %24, %cst_22 {dimension_numbers = #tpu.dot_dimension_numbers<[1], [0], [0], [1], [0, 0, 1, 1], [], []>} : vector<2x64xf32>, vector<64x192xf32>, vector<2x192xf32> -> vector<2x192xf32>
    %81 = vector.extract_strided_slice %79 {offsets = [0, 128], sizes = [2, 64], strides = [1, 1]} : vector<2x192xf32> to vector<2x64xf32>
    %82 = vector.extract_strided_slice %80 {offsets = [0, 128], sizes = [2, 64], strides = [1, 1]} : vector<2x192xf32> to vector<2x64xf32>
    %83 = arith.addf %81, %82 : vector<2x64xf32>
    %84 = arith.negf %83 : vector<2x64xf32>
    %85 = math.exp %84 : vector<2x64xf32>
    %cst_23 = arith.constant 1.000000e+00 : f32
    %86 = vector.broadcast %cst_23 : f32 to vector<2x64xf32>
    %87 = arith.addf %86, %85 : vector<2x64xf32>
    %88 = arith.divf %86, %87 : vector<2x64xf32>
    %89 = vector.extract_strided_slice %79 {offsets = [0, 64], sizes = [2, 64], strides = [1, 1]} : vector<2x192xf32> to vector<2x64xf32>
    %90 = vector.extract_strided_slice %80 {offsets = [0, 64], sizes = [2, 64], strides = [1, 1]} : vector<2x192xf32> to vector<2x64xf32>
    %91 = arith.addf %89, %90 : vector<2x64xf32>
    %92 = arith.negf %91 : vector<2x64xf32>
    %93 = math.exp %92 : vector<2x64xf32>
    %cst_24 = arith.constant 1.000000e+00 : f32
    %94 = vector.broadcast %cst_24 : f32 to vector<2x64xf32>
    %95 = arith.addf %94, %93 : vector<2x64xf32>
    %96 = arith.divf %94, %95 : vector<2x64xf32>
    %97 = vector.extract_strided_slice %79 {offsets = [0, 0], sizes = [2, 64], strides = [1, 1]} : vector<2x192xf32> to vector<2x64xf32>
    %98 = vector.extract_strided_slice %80 {offsets = [0, 0], sizes = [2, 64], strides = [1, 1]} : vector<2x192xf32> to vector<2x64xf32>
    %99 = arith.addf %98, %28 : vector<2x64xf32>
    %100 = arith.mulf %88, %99 : vector<2x64xf32>
    %101 = arith.addf %97, %100 : vector<2x64xf32>
    %102 = math.tanh %101 : vector<2x64xf32>
    %cst_25 = arith.constant 1.000000e+00 : f32
    %103 = vector.broadcast %cst_25 : f32 to vector<2x64xf32>
    %104 = arith.subf %103, %96 : vector<2x64xf32>
    %105 = arith.mulf %104, %102 : vector<2x64xf32>
    %106 = arith.mulf %96, %67 : vector<2x64xf32>
    %107 = arith.addf %105, %106 : vector<2x64xf32>
    %108 = vector.extract_strided_slice %107 {offsets = [0, 0], sizes = [2, 32], strides = [1, 1]} : vector<2x64xf32> to vector<2x32xf32>
    %109 = vector.extract_strided_slice %107 {offsets = [0, 32], sizes = [2, 32], strides = [1, 1]} : vector<2x64xf32> to vector<2x32xf32>
    %c2 = arith.constant 2 : index
    %c0_26 = arith.constant 0 : index
    %110 = vector.load %arg9[%c2, %c0_26] : memref<16x128xf32, #tpu.memory_space<vmem>>, vector<2x32xf32>
    tpu.vector_store %arg9[%c2, %c0_26], %108 {strides = array<i32>} : memref<16x128xf32, #tpu.memory_space<vmem>>, vector<2x32xf32>,
    %c12 = arith.constant 12 : index
    %c32_27 = arith.constant 32 : index
    %111 = vector.load %arg9[%c12, %c32_27] : memref<16x128xf32, #tpu.memory_space<vmem>>, vector<2x32xf32>
    tpu.vector_store %arg9[%c12, %c32_27], %109 {strides = array<i32>} : memref<16x128xf32, #tpu.memory_space<vmem>>, vector<2x32xf32>,
    %c12_28 = arith.constant 12 : index
    %c64_29 = arith.constant 64 : index
    %112 = vector.load %arg9[%c12_28, %c64_29] : memref<16x128xf32, #tpu.memory_space<vmem>>, vector<2x32xf32>
    tpu.vector_store %arg9[%c12_28, %c64_29], %108 {strides = array<i32>} : memref<16x128xf32, #tpu.memory_space<vmem>>, vector<2x32xf32>,
    %c2_30 = arith.constant 2 : index
    %c96_31 = arith.constant 96 : index
    %113 = vector.load %arg9[%c2_30, %c96_31] : memref<16x128xf32, #tpu.memory_space<vmem>>, vector<2x32xf32>
    tpu.vector_store %arg9[%c2_30, %c96_31], %109 {strides = array<i32>} : memref<16x128xf32, #tpu.memory_space<vmem>>, vector<2x32xf32>,
    %114 = vector.broadcast %6 : vector<2x1xf32> to vector<2x192xf32>
    %115 = arith.mulf %114, %19 : vector<2x192xf32>
    %116 = vector.broadcast %12 : vector<2x1xf32> to vector<2x192xf32>
    %117 = arith.mulf %116, %22 : vector<2x192xf32>
    %118 = arith.addf %115, %117 : vector<2x192xf32>
    %119 = arith.addf %118, %32 : vector<2x192xf32>
    %cst_32 = arith.constant dense<0.000000e+00> : vector<2x192xf32>
    %120 = tpu.matmul %107, %24, %cst_32 {dimension_numbers = #tpu.dot_dimension_numbers<[1], [0], [0], [1], [0, 0, 1, 1], [], []>} : vector<2x64xf32>, vector<64x192xf32>, vector<2x192xf32> -> vector<2x192xf32>
    %121 = vector.extract_strided_slice %119 {offsets = [0, 128], sizes = [2, 64], strides = [1, 1]} : vector<2x192xf32> to vector<2x64xf32>
    %122 = vector.extract_strided_slice %120 {offsets = [0, 128], sizes = [2, 64], strides = [1, 1]} : vector<2x192xf32> to vector<2x64xf32>
    %123 = arith.addf %121, %122 : vector<2x64xf32>
    %124 = arith.negf %123 : vector<2x64xf32>
    %125 = math.exp %124 : vector<2x64xf32>
    %cst_33 = arith.constant 1.000000e+00 : f32
    %126 = vector.broadcast %cst_33 : f32 to vector<2x64xf32>
    %127 = arith.addf %126, %125 : vector<2x64xf32>
    %128 = arith.divf %126, %127 : vector<2x64xf32>
    %129 = vector.extract_strided_slice %119 {offsets = [0, 64], sizes = [2, 64], strides = [1, 1]} : vector<2x192xf32> to vector<2x64xf32>
    %130 = vector.extract_strided_slice %120 {offsets = [0, 64], sizes = [2, 64], strides = [1, 1]} : vector<2x192xf32> to vector<2x64xf32>
    %131 = arith.addf %129, %130 : vector<2x64xf32>
    %132 = arith.negf %131 : vector<2x64xf32>
    %133 = math.exp %132 : vector<2x64xf32>
    %cst_34 = arith.constant 1.000000e+00 : f32
    %134 = vector.broadcast %cst_34 : f32 to vector<2x64xf32>
    %135 = arith.addf %134, %133 : vector<2x64xf32>
    %136 = arith.divf %134, %135 : vector<2x64xf32>
    %137 = vector.extract_strided_slice %119 {offsets = [0, 0], sizes = [2, 64], strides = [1, 1]} : vector<2x192xf32> to vector<2x64xf32>
    %138 = vector.extract_strided_slice %120 {offsets = [0, 0], sizes = [2, 64], strides = [1, 1]} : vector<2x192xf32> to vector<2x64xf32>
    %139 = arith.addf %138, %28 : vector<2x64xf32>
    %140 = arith.mulf %128, %139 : vector<2x64xf32>
    %141 = arith.addf %137, %140 : vector<2x64xf32>
    %142 = math.tanh %141 : vector<2x64xf32>
    %cst_35 = arith.constant 1.000000e+00 : f32
    %143 = vector.broadcast %cst_35 : f32 to vector<2x64xf32>
    %144 = arith.subf %143, %136 : vector<2x64xf32>
    %145 = arith.mulf %144, %142 : vector<2x64xf32>
    %146 = arith.mulf %136, %107 : vector<2x64xf32>
    %147 = arith.addf %145, %146 : vector<2x64xf32>
    %148 = vector.extract_strided_slice %147 {offsets = [0, 0], sizes = [2, 32], strides = [1, 1]} : vector<2x64xf32> to vector<2x32xf32>
    %149 = vector.extract_strided_slice %147 {offsets = [0, 32], sizes = [2, 32], strides = [1, 1]} : vector<2x64xf32> to vector<2x32xf32>
    %c4 = arith.constant 4 : index
    %c0_36 = arith.constant 0 : index
    %150 = vector.load %arg9[%c4, %c0_36] : memref<16x128xf32, #tpu.memory_space<vmem>>, vector<2x32xf32>
    tpu.vector_store %arg9[%c4, %c0_36], %148 {strides = array<i32>} : memref<16x128xf32, #tpu.memory_space<vmem>>, vector<2x32xf32>,
    %c10 = arith.constant 10 : index
    %c32_37 = arith.constant 32 : index
    %151 = vector.load %arg9[%c10, %c32_37] : memref<16x128xf32, #tpu.memory_space<vmem>>, vector<2x32xf32>
    tpu.vector_store %arg9[%c10, %c32_37], %149 {strides = array<i32>} : memref<16x128xf32, #tpu.memory_space<vmem>>, vector<2x32xf32>,
    %c10_38 = arith.constant 10 : index
    %c64_39 = arith.constant 64 : index
    %152 = vector.load %arg9[%c10_38, %c64_39] : memref<16x128xf32, #tpu.memory_space<vmem>>, vector<2x32xf32>
    tpu.vector_store %arg9[%c10_38, %c64_39], %148 {strides = array<i32>} : memref<16x128xf32, #tpu.memory_space<vmem>>, vector<2x32xf32>,
    %c4_40 = arith.constant 4 : index
    %c96_41 = arith.constant 96 : index
    %153 = vector.load %arg9[%c4_40, %c96_41] : memref<16x128xf32, #tpu.memory_space<vmem>>, vector<2x32xf32>
    tpu.vector_store %arg9[%c4_40, %c96_41], %149 {strides = array<i32>} : memref<16x128xf32, #tpu.memory_space<vmem>>, vector<2x32xf32>,
    %154 = vector.broadcast %8 : vector<2x1xf32> to vector<2x192xf32>
    %155 = arith.mulf %154, %19 : vector<2x192xf32>
    %156 = vector.broadcast %10 : vector<2x1xf32> to vector<2x192xf32>
    %157 = arith.mulf %156, %22 : vector<2x192xf32>
    %158 = arith.addf %155, %157 : vector<2x192xf32>
    %159 = arith.addf %158, %32 : vector<2x192xf32>
    %cst_42 = arith.constant dense<0.000000e+00> : vector<2x192xf32>
    %160 = tpu.matmul %147, %24, %cst_42 {dimension_numbers = #tpu.dot_dimension_numbers<[1], [0], [0], [1], [0, 0, 1, 1], [], []>} : vector<2x64xf32>, vector<64x192xf32>, vector<2x192xf32> -> vector<2x192xf32>
    %161 = vector.extract_strided_slice %159 {offsets = [0, 128], sizes = [2, 64], strides = [1, 1]} : vector<2x192xf32> to vector<2x64xf32>
    %162 = vector.extract_strided_slice %160 {offsets = [0, 128], sizes = [2, 64], strides = [1, 1]} : vector<2x192xf32> to vector<2x64xf32>
    %163 = arith.addf %161, %162 : vector<2x64xf32>
    %164 = arith.negf %163 : vector<2x64xf32>
    %165 = math.exp %164 : vector<2x64xf32>
    %cst_43 = arith.constant 1.000000e+00 : f32
    %166 = vector.broadcast %cst_43 : f32 to vector<2x64xf32>
    %167 = arith.addf %166, %165 : vector<2x64xf32>
    %168 = arith.divf %166, %167 : vector<2x64xf32>
    %169 = vector.extract_strided_slice %159 {offsets = [0, 64], sizes = [2, 64], strides = [1, 1]} : vector<2x192xf32> to vector<2x64xf32>
    %170 = vector.extract_strided_slice %160 {offsets = [0, 64], sizes = [2, 64], strides = [1, 1]} : vector<2x192xf32> to vector<2x64xf32>
    %171 = arith.addf %169, %170 : vector<2x64xf32>
    %172 = arith.negf %171 : vector<2x64xf32>
    %173 = math.exp %172 : vector<2x64xf32>
    %cst_44 = arith.constant 1.000000e+00 : f32
    %174 = vector.broadcast %cst_44 : f32 to vector<2x64xf32>
    %175 = arith.addf %174, %173 : vector<2x64xf32>
    %176 = arith.divf %174, %175 : vector<2x64xf32>
    %177 = vector.extract_strided_slice %159 {offsets = [0, 0], sizes = [2, 64], strides = [1, 1]} : vector<2x192xf32> to vector<2x64xf32>
    %178 = vector.extract_strided_slice %160 {offsets = [0, 0], sizes = [2, 64], strides = [1, 1]} : vector<2x192xf32> to vector<2x64xf32>
    %179 = arith.addf %178, %28 : vector<2x64xf32>
    %180 = arith.mulf %168, %179 : vector<2x64xf32>
    %181 = arith.addf %177, %180 : vector<2x64xf32>
    %182 = math.tanh %181 : vector<2x64xf32>
    %cst_45 = arith.constant 1.000000e+00 : f32
    %183 = vector.broadcast %cst_45 : f32 to vector<2x64xf32>
    %184 = arith.subf %183, %176 : vector<2x64xf32>
    %185 = arith.mulf %184, %182 : vector<2x64xf32>
    %186 = arith.mulf %176, %147 : vector<2x64xf32>
    %187 = arith.addf %185, %186 : vector<2x64xf32>
    %188 = vector.extract_strided_slice %187 {offsets = [0, 0], sizes = [2, 32], strides = [1, 1]} : vector<2x64xf32> to vector<2x32xf32>
    %189 = vector.extract_strided_slice %187 {offsets = [0, 32], sizes = [2, 32], strides = [1, 1]} : vector<2x64xf32> to vector<2x32xf32>
    %c6 = arith.constant 6 : index
    %c0_46 = arith.constant 0 : index
    %190 = vector.load %arg9[%c6, %c0_46] : memref<16x128xf32, #tpu.memory_space<vmem>>, vector<2x32xf32>
    tpu.vector_store %arg9[%c6, %c0_46], %188 {strides = array<i32>} : memref<16x128xf32, #tpu.memory_space<vmem>>, vector<2x32xf32>,
    %c8 = arith.constant 8 : index
    %c32_47 = arith.constant 32 : index
    %191 = vector.load %arg9[%c8, %c32_47] : memref<16x128xf32, #tpu.memory_space<vmem>>, vector<2x32xf32>
    tpu.vector_store %arg9[%c8, %c32_47], %189 {strides = array<i32>} : memref<16x128xf32, #tpu.memory_space<vmem>>, vector<2x32xf32>,
    %c8_48 = arith.constant 8 : index
    %c64_49 = arith.constant 64 : index
    %192 = vector.load %arg9[%c8_48, %c64_49] : memref<16x128xf32, #tpu.memory_space<vmem>>, vector<2x32xf32>
    tpu.vector_store %arg9[%c8_48, %c64_49], %188 {strides = array<i32>} : memref<16x128xf32, #tpu.memory_space<vmem>>, vector<2x32xf32>,
    %c6_50 = arith.constant 6 : index
    %c96_51 = arith.constant 96 : index
    %193 = vector.load %arg9[%c6_50, %c96_51] : memref<16x128xf32, #tpu.memory_space<vmem>>, vector<2x32xf32>
    tpu.vector_store %arg9[%c6_50, %c96_51], %189 {strides = array<i32>} : memref<16x128xf32, #tpu.memory_space<vmem>>, vector<2x32xf32>,
    %194 = vector.broadcast %10 : vector<2x1xf32> to vector<2x192xf32>
    %195 = arith.mulf %194, %19 : vector<2x192xf32>
    %196 = vector.broadcast %8 : vector<2x1xf32> to vector<2x192xf32>
    %197 = arith.mulf %196, %22 : vector<2x192xf32>
    %198 = arith.addf %195, %197 : vector<2x192xf32>
    %199 = arith.addf %198, %32 : vector<2x192xf32>
    %cst_52 = arith.constant dense<0.000000e+00> : vector<2x192xf32>
    %200 = tpu.matmul %187, %24, %cst_52 {dimension_numbers = #tpu.dot_dimension_numbers<[1], [0], [0], [1], [0, 0, 1, 1], [], []>} : vector<2x64xf32>, vector<64x192xf32>, vector<2x192xf32> -> vector<2x192xf32>
    %201 = vector.extract_strided_slice %199 {offsets = [0, 128], sizes = [2, 64], strides = [1, 1]} : vector<2x192xf32> to vector<2x64xf32>
    %202 = vector.extract_strided_slice %200 {offsets = [0, 128], sizes = [2, 64], strides = [1, 1]} : vector<2x192xf32> to vector<2x64xf32>
    %203 = arith.addf %201, %202 : vector<2x64xf32>
    %204 = arith.negf %203 : vector<2x64xf32>
    %205 = math.exp %204 : vector<2x64xf32>
    %cst_53 = arith.constant 1.000000e+00 : f32
    %206 = vector.broadcast %cst_53 : f32 to vector<2x64xf32>
    %207 = arith.addf %206, %205 : vector<2x64xf32>
    %208 = arith.divf %206, %207 : vector<2x64xf32>
    %209 = vector.extract_strided_slice %199 {offsets = [0, 64], sizes = [2, 64], strides = [1, 1]} : vector<2x192xf32> to vector<2x64xf32>
    %210 = vector.extract_strided_slice %200 {offsets = [0, 64], sizes = [2, 64], strides = [1, 1]} : vector<2x192xf32> to vector<2x64xf32>
    %211 = arith.addf %209, %210 : vector<2x64xf32>
    %212 = arith.negf %211 : vector<2x64xf32>
    %213 = math.exp %212 : vector<2x64xf32>
    %cst_54 = arith.constant 1.000000e+00 : f32
    %214 = vector.broadcast %cst_54 : f32 to vector<2x64xf32>
    %215 = arith.addf %214, %213 : vector<2x64xf32>
    %216 = arith.divf %214, %215 : vector<2x64xf32>
    %217 = vector.extract_strided_slice %199 {offsets = [0, 0], sizes = [2, 64], strides = [1, 1]} : vector<2x192xf32> to vector<2x64xf32>
    %218 = vector.extract_strided_slice %200 {offsets = [0, 0], sizes = [2, 64], strides = [1, 1]} : vector<2x192xf32> to vector<2x64xf32>
    %219 = arith.addf %218, %28 : vector<2x64xf32>
    %220 = arith.mulf %208, %219 : vector<2x64xf32>
    %221 = arith.addf %217, %220 : vector<2x64xf32>
    %222 = math.tanh %221 : vector<2x64xf32>
    %cst_55 = arith.constant 1.000000e+00 : f32
    %223 = vector.broadcast %cst_55 : f32 to vector<2x64xf32>
    %224 = arith.subf %223, %216 : vector<2x64xf32>
    %225 = arith.mulf %224, %222 : vector<2x64xf32>
    %226 = arith.mulf %216, %187 : vector<2x64xf32>
    %227 = arith.addf %225, %226 : vector<2x64xf32>
    %228 = vector.extract_strided_slice %227 {offsets = [0, 0], sizes = [2, 32], strides = [1, 1]} : vector<2x64xf32> to vector<2x32xf32>
    %229 = vector.extract_strided_slice %227 {offsets = [0, 32], sizes = [2, 32], strides = [1, 1]} : vector<2x64xf32> to vector<2x32xf32>
    %c8_56 = arith.constant 8 : index
    %c0_57 = arith.constant 0 : index
    %230 = vector.load %arg9[%c8_56, %c0_57] : memref<16x128xf32, #tpu.memory_space<vmem>>, vector<2x32xf32>
    tpu.vector_store %arg9[%c8_56, %c0_57], %228 {strides = array<i32>} : memref<16x128xf32, #tpu.memory_space<vmem>>, vector<2x32xf32>,
    %c6_58 = arith.constant 6 : index
    %c32_59 = arith.constant 32 : index
    %231 = vector.load %arg9[%c6_58, %c32_59] : memref<16x128xf32, #tpu.memory_space<vmem>>, vector<2x32xf32>
    tpu.vector_store %arg9[%c6_58, %c32_59], %229 {strides = array<i32>} : memref<16x128xf32, #tpu.memory_space<vmem>>, vector<2x32xf32>,
    %c6_60 = arith.constant 6 : index
    %c64_61 = arith.constant 64 : index
    %232 = vector.load %arg9[%c6_60, %c64_61] : memref<16x128xf32, #tpu.memory_space<vmem>>, vector<2x32xf32>
    tpu.vector_store %arg9[%c6_60, %c64_61], %228 {strides = array<i32>} : memref<16x128xf32, #tpu.memory_space<vmem>>, vector<2x32xf32>,
    %c8_62 = arith.constant 8 : index
    %c96_63 = arith.constant 96 : index
    %233 = vector.load %arg9[%c8_62, %c96_63] : memref<16x128xf32, #tpu.memory_space<vmem>>, vector<2x32xf32>
    tpu.vector_store %arg9[%c8_62, %c96_63], %229 {strides = array<i32>} : memref<16x128xf32, #tpu.memory_space<vmem>>, vector<2x32xf32>,
    %234 = vector.broadcast %12 : vector<2x1xf32> to vector<2x192xf32>
    %235 = arith.mulf %234, %19 : vector<2x192xf32>
    %236 = vector.broadcast %6 : vector<2x1xf32> to vector<2x192xf32>
    %237 = arith.mulf %236, %22 : vector<2x192xf32>
    %238 = arith.addf %235, %237 : vector<2x192xf32>
    %239 = arith.addf %238, %32 : vector<2x192xf32>
    %cst_64 = arith.constant dense<0.000000e+00> : vector<2x192xf32>
    %240 = tpu.matmul %227, %24, %cst_64 {dimension_numbers = #tpu.dot_dimension_numbers<[1], [0], [0], [1], [0, 0, 1, 1], [], []>} : vector<2x64xf32>, vector<64x192xf32>, vector<2x192xf32> -> vector<2x192xf32>
    %241 = vector.extract_strided_slice %239 {offsets = [0, 128], sizes = [2, 64], strides = [1, 1]} : vector<2x192xf32> to vector<2x64xf32>
    %242 = vector.extract_strided_slice %240 {offsets = [0, 128], sizes = [2, 64], strides = [1, 1]} : vector<2x192xf32> to vector<2x64xf32>
    %243 = arith.addf %241, %242 : vector<2x64xf32>
    %244 = arith.negf %243 : vector<2x64xf32>
    %245 = math.exp %244 : vector<2x64xf32>
    %cst_65 = arith.constant 1.000000e+00 : f32
    %246 = vector.broadcast %cst_65 : f32 to vector<2x64xf32>
    %247 = arith.addf %246, %245 : vector<2x64xf32>
    %248 = arith.divf %246, %247 : vector<2x64xf32>
    %249 = vector.extract_strided_slice %239 {offsets = [0, 64], sizes = [2, 64], strides = [1, 1]} : vector<2x192xf32> to vector<2x64xf32>
    %250 = vector.extract_strided_slice %240 {offsets = [0, 64], sizes = [2, 64], strides = [1, 1]} : vector<2x192xf32> to vector<2x64xf32>
    %251 = arith.addf %249, %250 : vector<2x64xf32>
    %252 = arith.negf %251 : vector<2x64xf32>
    %253 = math.exp %252 : vector<2x64xf32>
    %cst_66 = arith.constant 1.000000e+00 : f32
    %254 = vector.broadcast %cst_66 : f32 to vector<2x64xf32>
    %255 = arith.addf %254, %253 : vector<2x64xf32>
    %256 = arith.divf %254, %255 : vector<2x64xf32>
    %257 = vector.extract_strided_slice %239 {offsets = [0, 0], sizes = [2, 64], strides = [1, 1]} : vector<2x192xf32> to vector<2x64xf32>
    %258 = vector.extract_strided_slice %240 {offsets = [0, 0], sizes = [2, 64], strides = [1, 1]} : vector<2x192xf32> to vector<2x64xf32>
    %259 = arith.addf %258, %28 : vector<2x64xf32>
    %260 = arith.mulf %248, %259 : vector<2x64xf32>
    %261 = arith.addf %257, %260 : vector<2x64xf32>
    %262 = math.tanh %261 : vector<2x64xf32>
    %cst_67 = arith.constant 1.000000e+00 : f32
    %263 = vector.broadcast %cst_67 : f32 to vector<2x64xf32>
    %264 = arith.subf %263, %256 : vector<2x64xf32>
    %265 = arith.mulf %264, %262 : vector<2x64xf32>
    %266 = arith.mulf %256, %227 : vector<2x64xf32>
    %267 = arith.addf %265, %266 : vector<2x64xf32>
    %268 = vector.extract_strided_slice %267 {offsets = [0, 0], sizes = [2, 32], strides = [1, 1]} : vector<2x64xf32> to vector<2x32xf32>
    %269 = vector.extract_strided_slice %267 {offsets = [0, 32], sizes = [2, 32], strides = [1, 1]} : vector<2x64xf32> to vector<2x32xf32>
    %c10_68 = arith.constant 10 : index
    %c0_69 = arith.constant 0 : index
    %270 = vector.load %arg9[%c10_68, %c0_69] : memref<16x128xf32, #tpu.memory_space<vmem>>, vector<2x32xf32>
    tpu.vector_store %arg9[%c10_68, %c0_69], %268 {strides = array<i32>} : memref<16x128xf32, #tpu.memory_space<vmem>>, vector<2x32xf32>,
    %c4_70 = arith.constant 4 : index
    %c32_71 = arith.constant 32 : index
    %271 = vector.load %arg9[%c4_70, %c32_71] : memref<16x128xf32, #tpu.memory_space<vmem>>, vector<2x32xf32>
    tpu.vector_store %arg9[%c4_70, %c32_71], %269 {strides = array<i32>} : memref<16x128xf32, #tpu.memory_space<vmem>>, vector<2x32xf32>,
    %c4_72 = arith.constant 4 : index
    %c64_73 = arith.constant 64 : index
    %272 = vector.load %arg9[%c4_72, %c64_73] : memref<16x128xf32, #tpu.memory_space<vmem>>, vector<2x32xf32>
    tpu.vector_store %arg9[%c4_72, %c64_73], %268 {strides = array<i32>} : memref<16x128xf32, #tpu.memory_space<vmem>>, vector<2x32xf32>,
    %c10_74 = arith.constant 10 : index
    %c96_75 = arith.constant 96 : index
    %273 = vector.load %arg9[%c10_74, %c96_75] : memref<16x128xf32, #tpu.memory_space<vmem>>, vector<2x32xf32>
    tpu.vector_store %arg9[%c10_74, %c96_75], %269 {strides = array<i32>} : memref<16x128xf32, #tpu.memory_space<vmem>>, vector<2x32xf32>,
    %274 = vector.broadcast %14 : vector<2x1xf32> to vector<2x192xf32>
    %275 = arith.mulf %274, %19 : vector<2x192xf32>
    %276 = vector.broadcast %4 : vector<2x1xf32> to vector<2x192xf32>
    %277 = arith.mulf %276, %22 : vector<2x192xf32>
    %278 = arith.addf %275, %277 : vector<2x192xf32>
    %279 = arith.addf %278, %32 : vector<2x192xf32>
    %cst_76 = arith.constant dense<0.000000e+00> : vector<2x192xf32>
    %280 = tpu.matmul %267, %24, %cst_76 {dimension_numbers = #tpu.dot_dimension_numbers<[1], [0], [0], [1], [0, 0, 1, 1], [], []>} : vector<2x64xf32>, vector<64x192xf32>, vector<2x192xf32> -> vector<2x192xf32>
    %281 = vector.extract_strided_slice %279 {offsets = [0, 128], sizes = [2, 64], strides = [1, 1]} : vector<2x192xf32> to vector<2x64xf32>
    %282 = vector.extract_strided_slice %280 {offsets = [0, 128], sizes = [2, 64], strides = [1, 1]} : vector<2x192xf32> to vector<2x64xf32>
    %283 = arith.addf %281, %282 : vector<2x64xf32>
    %284 = arith.negf %283 : vector<2x64xf32>
    %285 = math.exp %284 : vector<2x64xf32>
    %cst_77 = arith.constant 1.000000e+00 : f32
    %286 = vector.broadcast %cst_77 : f32 to vector<2x64xf32>
    %287 = arith.addf %286, %285 : vector<2x64xf32>
    %288 = arith.divf %286, %287 : vector<2x64xf32>
    %289 = vector.extract_strided_slice %279 {offsets = [0, 64], sizes = [2, 64], strides = [1, 1]} : vector<2x192xf32> to vector<2x64xf32>
    %290 = vector.extract_strided_slice %280 {offsets = [0, 64], sizes = [2, 64], strides = [1, 1]} : vector<2x192xf32> to vector<2x64xf32>
    %291 = arith.addf %289, %290 : vector<2x64xf32>
    %292 = arith.negf %291 : vector<2x64xf32>
    %293 = math.exp %292 : vector<2x64xf32>
    %cst_78 = arith.constant 1.000000e+00 : f32
    %294 = vector.broadcast %cst_78 : f32 to vector<2x64xf32>
    %295 = arith.addf %294, %293 : vector<2x64xf32>
    %296 = arith.divf %294, %295 : vector<2x64xf32>
    %297 = vector.extract_strided_slice %279 {offsets = [0, 0], sizes = [2, 64], strides = [1, 1]} : vector<2x192xf32> to vector<2x64xf32>
    %298 = vector.extract_strided_slice %280 {offsets = [0, 0], sizes = [2, 64], strides = [1, 1]} : vector<2x192xf32> to vector<2x64xf32>
    %299 = arith.addf %298, %28 : vector<2x64xf32>
    %300 = arith.mulf %288, %299 : vector<2x64xf32>
    %301 = arith.addf %297, %300 : vector<2x64xf32>
    %302 = math.tanh %301 : vector<2x64xf32>
    %cst_79 = arith.constant 1.000000e+00 : f32
    %303 = vector.broadcast %cst_79 : f32 to vector<2x64xf32>
    %304 = arith.subf %303, %296 : vector<2x64xf32>
    %305 = arith.mulf %304, %302 : vector<2x64xf32>
    %306 = arith.mulf %296, %267 : vector<2x64xf32>
    %307 = arith.addf %305, %306 : vector<2x64xf32>
    %308 = vector.extract_strided_slice %307 {offsets = [0, 0], sizes = [2, 32], strides = [1, 1]} : vector<2x64xf32> to vector<2x32xf32>
    %309 = vector.extract_strided_slice %307 {offsets = [0, 32], sizes = [2, 32], strides = [1, 1]} : vector<2x64xf32> to vector<2x32xf32>
    %c12_80 = arith.constant 12 : index
    %c0_81 = arith.constant 0 : index
    %310 = vector.load %arg9[%c12_80, %c0_81] : memref<16x128xf32, #tpu.memory_space<vmem>>, vector<2x32xf32>
    tpu.vector_store %arg9[%c12_80, %c0_81], %308 {strides = array<i32>} : memref<16x128xf32, #tpu.memory_space<vmem>>, vector<2x32xf32>,
    %c2_82 = arith.constant 2 : index
    %c32_83 = arith.constant 32 : index
    %311 = vector.load %arg9[%c2_82, %c32_83] : memref<16x128xf32, #tpu.memory_space<vmem>>, vector<2x32xf32>
    tpu.vector_store %arg9[%c2_82, %c32_83], %309 {strides = array<i32>} : memref<16x128xf32, #tpu.memory_space<vmem>>, vector<2x32xf32>,
    %c2_84 = arith.constant 2 : index
    %c64_85 = arith.constant 64 : index
    %312 = vector.load %arg9[%c2_84, %c64_85] : memref<16x128xf32, #tpu.memory_space<vmem>>, vector<2x32xf32>
    tpu.vector_store %arg9[%c2_84, %c64_85], %308 {strides = array<i32>} : memref<16x128xf32, #tpu.memory_space<vmem>>, vector<2x32xf32>,
    %c12_86 = arith.constant 12 : index
    %c96_87 = arith.constant 96 : index
    %313 = vector.load %arg9[%c12_86, %c96_87] : memref<16x128xf32, #tpu.memory_space<vmem>>, vector<2x32xf32>
    tpu.vector_store %arg9[%c12_86, %c96_87], %309 {strides = array<i32>} : memref<16x128xf32, #tpu.memory_space<vmem>>, vector<2x32xf32>,
    %314 = vector.broadcast %16 : vector<2x1xf32> to vector<2x192xf32>
    %315 = arith.mulf %314, %19 : vector<2x192xf32>
    %316 = vector.broadcast %2 : vector<2x1xf32> to vector<2x192xf32>
    %317 = arith.mulf %316, %22 : vector<2x192xf32>
    %318 = arith.addf %315, %317 : vector<2x192xf32>
    %319 = arith.addf %318, %32 : vector<2x192xf32>
    %cst_88 = arith.constant dense<0.000000e+00> : vector<2x192xf32>
    %320 = tpu.matmul %307, %24, %cst_88 {dimension_numbers = #tpu.dot_dimension_numbers<[1], [0], [0], [1], [0, 0, 1, 1], [], []>} : vector<2x64xf32>, vector<64x192xf32>, vector<2x192xf32> -> vector<2x192xf32>
    %321 = vector.extract_strided_slice %319 {offsets = [0, 128], sizes = [2, 64], strides = [1, 1]} : vector<2x192xf32> to vector<2x64xf32>
    %322 = vector.extract_strided_slice %320 {offsets = [0, 128], sizes = [2, 64], strides = [1, 1]} : vector<2x192xf32> to vector<2x64xf32>
    %323 = arith.addf %321, %322 : vector<2x64xf32>
    %324 = arith.negf %323 : vector<2x64xf32>
    %325 = math.exp %324 : vector<2x64xf32>
    %cst_89 = arith.constant 1.000000e+00 : f32
    %326 = vector.broadcast %cst_89 : f32 to vector<2x64xf32>
    %327 = arith.addf %326, %325 : vector<2x64xf32>
    %328 = arith.divf %326, %327 : vector<2x64xf32>
    %329 = vector.extract_strided_slice %319 {offsets = [0, 64], sizes = [2, 64], strides = [1, 1]} : vector<2x192xf32> to vector<2x64xf32>
    %330 = vector.extract_strided_slice %320 {offsets = [0, 64], sizes = [2, 64], strides = [1, 1]} : vector<2x192xf32> to vector<2x64xf32>
    %331 = arith.addf %329, %330 : vector<2x64xf32>
    %332 = arith.negf %331 : vector<2x64xf32>
    %333 = math.exp %332 : vector<2x64xf32>
    %cst_90 = arith.constant 1.000000e+00 : f32
    %334 = vector.broadcast %cst_90 : f32 to vector<2x64xf32>
    %335 = arith.addf %334, %333 : vector<2x64xf32>
    %336 = arith.divf %334, %335 : vector<2x64xf32>
    %337 = vector.extract_strided_slice %319 {offsets = [0, 0], sizes = [2, 64], strides = [1, 1]} : vector<2x192xf32> to vector<2x64xf32>
    %338 = vector.extract_strided_slice %320 {offsets = [0, 0], sizes = [2, 64], strides = [1, 1]} : vector<2x192xf32> to vector<2x64xf32>
    %339 = arith.addf %338, %28 : vector<2x64xf32>
    %340 = arith.mulf %328, %339 : vector<2x64xf32>
    %341 = arith.addf %337, %340 : vector<2x64xf32>
    %342 = math.tanh %341 : vector<2x64xf32>
    %cst_91 = arith.constant 1.000000e+00 : f32
    %343 = vector.broadcast %cst_91 : f32 to vector<2x64xf32>
    %344 = arith.subf %343, %336 : vector<2x64xf32>
    %345 = arith.mulf %344, %342 : vector<2x64xf32>
    %346 = arith.mulf %336, %307 : vector<2x64xf32>
    %347 = arith.addf %345, %346 : vector<2x64xf32>
    %348 = vector.extract_strided_slice %347 {offsets = [0, 0], sizes = [2, 32], strides = [1, 1]} : vector<2x64xf32> to vector<2x32xf32>
    %349 = vector.extract_strided_slice %347 {offsets = [0, 32], sizes = [2, 32], strides = [1, 1]} : vector<2x64xf32> to vector<2x32xf32>
    %c14_92 = arith.constant 14 : index
    %c0_93 = arith.constant 0 : index
    %350 = vector.load %arg9[%c14_92, %c0_93] : memref<16x128xf32, #tpu.memory_space<vmem>>, vector<2x32xf32>
    tpu.vector_store %arg9[%c14_92, %c0_93], %348 {strides = array<i32>} : memref<16x128xf32, #tpu.memory_space<vmem>>, vector<2x32xf32>,
    %c0_94 = arith.constant 0 : index
    %c32_95 = arith.constant 32 : index
    %351 = vector.load %arg9[%c0_94, %c32_95] : memref<16x128xf32, #tpu.memory_space<vmem>>, vector<2x32xf32>
    tpu.vector_store %arg9[%c0_94, %c32_95], %349 {strides = array<i32>} : memref<16x128xf32, #tpu.memory_space<vmem>>, vector<2x32xf32>,
    %c0_96 = arith.constant 0 : index
    %c64_97 = arith.constant 64 : index
    %352 = vector.load %arg9[%c0_96, %c64_97] : memref<16x128xf32, #tpu.memory_space<vmem>>, vector<2x32xf32>
    tpu.vector_store %arg9[%c0_96, %c64_97], %348 {strides = array<i32>} : memref<16x128xf32, #tpu.memory_space<vmem>>, vector<2x32xf32>,
    %c14_98 = arith.constant 14 : index
    %c96_99 = arith.constant 96 : index
    %353 = vector.load %arg9[%c14_98, %c96_99] : memref<16x128xf32, #tpu.memory_space<vmem>>, vector<2x32xf32>
    tpu.vector_store %arg9[%c14_98, %c96_99], %349 {strides = array<i32>} : memref<16x128xf32, #tpu.memory_space<vmem>>, vector<2x32xf32>,
    %c1_100 = arith.constant 1 : index
    %c0_101 = arith.constant 0 : index
    %c0_102 = arith.constant 0 : index
    %354 = vector.load %arg3[%c1_100, %c0_101, %c0_102] : memref<3x64x192xf32, #tpu.memory_space<vmem>>, vector<1x64x192xf32>
    %355 = vector.shape_cast %354 : vector<1x64x192xf32> to vector<64x192xf32>
    %c1_103 = arith.constant 1 : index
    %c0_104 = arith.constant 0 : index
    %c0_105 = arith.constant 0 : index
    %356 = vector.load %arg5[%c1_103, %c0_104, %c0_105] : memref<3x1x64xf32, #tpu.memory_space<vmem>>, vector<1x1x64xf32>
    %357 = vector.shape_cast %356 : vector<1x1x64xf32> to vector<1x64xf32>
    %358 = vector.shape_cast %357 : vector<1x64xf32> to vector<1x64xf32>
    %359 = vector.broadcast %358 : vector<1x64xf32> to vector<2x64xf32>
    %c0_106 = arith.constant 0 : index
    %c0_107 = arith.constant 0 : index
    %360 = vector.load %arg9[%c0_106, %c0_107] : memref<16x128xf32, #tpu.memory_space<vmem>>, vector<16x128xf32>
    %c0_108 = arith.constant 0 : index
    %c0_109 = arith.constant 0 : index
    %c0_110 = arith.constant 0 : index
    %361 = vector.load %arg2[%c0_108, %c0_109, %c0_110] : memref<2x128x192xf32, #tpu.memory_space<vmem>>, vector<1x128x192xf32>
    %362 = vector.shape_cast %361 : vector<1x128x192xf32> to vector<128x192xf32>
    %cst_111 = arith.constant dense<0.000000e+00> : vector<16x192xf32>
    %363 = tpu.matmul %360, %362, %cst_111 {dimension_numbers = #tpu.dot_dimension_numbers<[1], [0], [0], [1], [0, 0, 1, 1], [], []>} : vector<16x128xf32>, vector<128x192xf32>, vector<16x192xf32> -> vector<16x192xf32>
    %c1_112 = arith.constant 1 : index
    %c0_113 = arith.constant 0 : index
    %c0_114 = arith.constant 0 : index
    %364 = vector.load %arg4[%c1_112, %c0_113, %c0_114] : memref<3x1x192xf32, #tpu.memory_space<vmem>>, vector<1x1x192xf32>
    %365 = vector.shape_cast %364 : vector<1x1x192xf32> to vector<1x192xf32>
    %366 = vector.broadcast %365 : vector<1x192xf32> to vector<16x192xf32>
    %367 = arith.addf %363, %366 : vector<16x192xf32>
    %cst_115 = arith.constant 0.000000e+00 : f32
    %368 = vector.broadcast %cst_115 : f32 to vector<2x64xf32>
    %369 = vector.extract_strided_slice %367 {offsets = [0, 0], sizes = [2, 192], strides = [1, 1]} : vector<16x192xf32> to vector<2x192xf32>
    %cst_116 = arith.constant dense<0.000000e+00> : vector<2x192xf32>
    %370 = tpu.matmul %368, %355, %cst_116 {dimension_numbers = #tpu.dot_dimension_numbers<[1], [0], [0], [1], [0, 0, 1, 1], [], []>} : vector<2x64xf32>, vector<64x192xf32>, vector<2x192xf32> -> vector<2x192xf32>
    %371 = vector.extract_strided_slice %369 {offsets = [0, 128], sizes = [2, 64], strides = [1, 1]} : vector<2x192xf32> to vector<2x64xf32>
    %372 = vector.extract_strided_slice %370 {offsets = [0, 128], sizes = [2, 64], strides = [1, 1]} : vector<2x192xf32> to vector<2x64xf32>
    %373 = arith.addf %371, %372 : vector<2x64xf32>
    %374 = arith.negf %373 : vector<2x64xf32>
    %375 = math.exp %374 : vector<2x64xf32>
    %cst_117 = arith.constant 1.000000e+00 : f32
    %376 = vector.broadcast %cst_117 : f32 to vector<2x64xf32>
    %377 = arith.addf %376, %375 : vector<2x64xf32>
    %378 = arith.divf %376, %377 : vector<2x64xf32>
    %379 = vector.extract_strided_slice %369 {offsets = [0, 64], sizes = [2, 64], strides = [1, 1]} : vector<2x192xf32> to vector<2x64xf32>
    %380 = vector.extract_strided_slice %370 {offsets = [0, 64], sizes = [2, 64], strides = [1, 1]} : vector<2x192xf32> to vector<2x64xf32>
    %381 = arith.addf %379, %380 : vector<2x64xf32>
    %382 = arith.negf %381 : vector<2x64xf32>
    %383 = math.exp %382 : vector<2x64xf32>
    %cst_118 = arith.constant 1.000000e+00 : f32
    %384 = vector.broadcast %cst_118 : f32 to vector<2x64xf32>
    %385 = arith.addf %384, %383 : vector<2x64xf32>
    %386 = arith.divf %384, %385 : vector<2x64xf32>
    %387 = vector.extract_strided_slice %369 {offsets = [0, 0], sizes = [2, 64], strides = [1, 1]} : vector<2x192xf32> to vector<2x64xf32>
    %388 = vector.extract_strided_slice %370 {offsets = [0, 0], sizes = [2, 64], strides = [1, 1]} : vector<2x192xf32> to vector<2x64xf32>
    %389 = arith.addf %388, %359 : vector<2x64xf32>
    %390 = arith.mulf %378, %389 : vector<2x64xf32>
    %391 = arith.addf %387, %390 : vector<2x64xf32>
    %392 = math.tanh %391 : vector<2x64xf32>
    %cst_119 = arith.constant 1.000000e+00 : f32
    %393 = vector.broadcast %cst_119 : f32 to vector<2x64xf32>
    %394 = arith.subf %393, %386 : vector<2x64xf32>
    %395 = arith.mulf %394, %392 : vector<2x64xf32>
    %396 = arith.mulf %386, %368 : vector<2x64xf32>
    %397 = arith.addf %395, %396 : vector<2x64xf32>
    %398 = vector.extract_strided_slice %397 {offsets = [0, 0], sizes = [2, 32], strides = [1, 1]} : vector<2x64xf32> to vector<2x32xf32>
    %399 = vector.extract_strided_slice %397 {offsets = [0, 32], sizes = [2, 32], strides = [1, 1]} : vector<2x64xf32> to vector<2x32xf32>
    %c0_120 = arith.constant 0 : index
    %c0_121 = arith.constant 0 : index
    %400 = vector.load %arg10[%c0_120, %c0_121] : memref<16x128xf32, #tpu.memory_space<vmem>>, vector<2x32xf32>
    tpu.vector_store %arg10[%c0_120, %c0_121], %398 {strides = array<i32>} : memref<16x128xf32, #tpu.memory_space<vmem>>, vector<2x32xf32>,
    %c14_122 = arith.constant 14 : index
    %c32_123 = arith.constant 32 : index
    %401 = vector.load %arg10[%c14_122, %c32_123] : memref<16x128xf32, #tpu.memory_space<vmem>>, vector<2x32xf32>
    tpu.vector_store %arg10[%c14_122, %c32_123], %399 {strides = array<i32>} : memref<16x128xf32, #tpu.memory_space<vmem>>, vector<2x32xf32>,
    %c14_124 = arith.constant 14 : index
    %c64_125 = arith.constant 64 : index
    %402 = vector.load %arg10[%c14_124, %c64_125] : memref<16x128xf32, #tpu.memory_space<vmem>>, vector<2x32xf32>
    tpu.vector_store %arg10[%c14_124, %c64_125], %398 {strides = array<i32>} : memref<16x128xf32, #tpu.memory_space<vmem>>, vector<2x32xf32>,
    %c0_126 = arith.constant 0 : index
    %c96_127 = arith.constant 96 : index
    %403 = vector.load %arg10[%c0_126, %c96_127] : memref<16x128xf32, #tpu.memory_space<vmem>>, vector<2x32xf32>
    tpu.vector_store %arg10[%c0_126, %c96_127], %399 {strides = array<i32>} : memref<16x128xf32, #tpu.memory_space<vmem>>, vector<2x32xf32>,
    %404 = vector.extract_strided_slice %367 {offsets = [2, 0], sizes = [2, 192], strides = [1, 1]} : vector<16x192xf32> to vector<2x192xf32>
    %cst_128 = arith.constant dense<0.000000e+00> : vector<2x192xf32>
    %405 = tpu.matmul %397, %355, %cst_128 {dimension_numbers = #tpu.dot_dimension_numbers<[1], [0], [0], [1], [0, 0, 1, 1], [], []>} : vector<2x64xf32>, vector<64x192xf32>, vector<2x192xf32> -> vector<2x192xf32>
    %406 = vector.extract_strided_slice %404 {offsets = [0, 128], sizes = [2, 64], strides = [1, 1]} : vector<2x192xf32> to vector<2x64xf32>
    %407 = vector.extract_strided_slice %405 {offsets = [0, 128], sizes = [2, 64], strides = [1, 1]} : vector<2x192xf32> to vector<2x64xf32>
    %408 = arith.addf %406, %407 : vector<2x64xf32>
    %409 = arith.negf %408 : vector<2x64xf32>
    %410 = math.exp %409 : vector<2x64xf32>
    %cst_129 = arith.constant 1.000000e+00 : f32
    %411 = vector.broadcast %cst_129 : f32 to vector<2x64xf32>
    %412 = arith.addf %411, %410 : vector<2x64xf32>
    %413 = arith.divf %411, %412 : vector<2x64xf32>
    %414 = vector.extract_strided_slice %404 {offsets = [0, 64], sizes = [2, 64], strides = [1, 1]} : vector<2x192xf32> to vector<2x64xf32>
    %415 = vector.extract_strided_slice %405 {offsets = [0, 64], sizes = [2, 64], strides = [1, 1]} : vector<2x192xf32> to vector<2x64xf32>
    %416 = arith.addf %414, %415 : vector<2x64xf32>
    %417 = arith.negf %416 : vector<2x64xf32>
    %418 = math.exp %417 : vector<2x64xf32>
    %cst_130 = arith.constant 1.000000e+00 : f32
    %419 = vector.broadcast %cst_130 : f32 to vector<2x64xf32>
    %420 = arith.addf %419, %418 : vector<2x64xf32>
    %421 = arith.divf %419, %420 : vector<2x64xf32>
    %422 = vector.extract_strided_slice %404 {offsets = [0, 0], sizes = [2, 64], strides = [1, 1]} : vector<2x192xf32> to vector<2x64xf32>
    %423 = vector.extract_strided_slice %405 {offsets = [0, 0], sizes = [2, 64], strides = [1, 1]} : vector<2x192xf32> to vector<2x64xf32>
    %424 = arith.addf %423, %359 : vector<2x64xf32>
    %425 = arith.mulf %413, %424 : vector<2x64xf32>
    %426 = arith.addf %422, %425 : vector<2x64xf32>
    %427 = math.tanh %426 : vector<2x64xf32>
    %cst_131 = arith.constant 1.000000e+00 : f32
    %428 = vector.broadcast %cst_131 : f32 to vector<2x64xf32>
    %429 = arith.subf %428, %421 : vector<2x64xf32>
    %430 = arith.mulf %429, %427 : vector<2x64xf32>
    %431 = arith.mulf %421, %397 : vector<2x64xf32>
    %432 = arith.addf %430, %431 : vector<2x64xf32>
    %433 = vector.extract_strided_slice %432 {offsets = [0, 0], sizes = [2, 32], strides = [1, 1]} : vector<2x64xf32> to vector<2x32xf32>
    %434 = vector.extract_strided_slice %432 {offsets = [0, 32], sizes = [2, 32], strides = [1, 1]} : vector<2x64xf32> to vector<2x32xf32>
    %c2_132 = arith.constant 2 : index
    %c0_133 = arith.constant 0 : index
    %435 = vector.load %arg10[%c2_132, %c0_133] : memref<16x128xf32, #tpu.memory_space<vmem>>, vector<2x32xf32>
    tpu.vector_store %arg10[%c2_132, %c0_133], %433 {strides = array<i32>} : memref<16x128xf32, #tpu.memory_space<vmem>>, vector<2x32xf32>,
    %c12_134 = arith.constant 12 : index
    %c32_135 = arith.constant 32 : index
    %436 = vector.load %arg10[%c12_134, %c32_135] : memref<16x128xf32, #tpu.memory_space<vmem>>, vector<2x32xf32>
    tpu.vector_store %arg10[%c12_134, %c32_135], %434 {strides = array<i32>} : memref<16x128xf32, #tpu.memory_space<vmem>>, vector<2x32xf32>,
    %c12_136 = arith.constant 12 : index
    %c64_137 = arith.constant 64 : index
    %437 = vector.load %arg10[%c12_136, %c64_137] : memref<16x128xf32, #tpu.memory_space<vmem>>, vector<2x32xf32>
    tpu.vector_store %arg10[%c12_136, %c64_137], %433 {strides = array<i32>} : memref<16x128xf32, #tpu.memory_space<vmem>>, vector<2x32xf32>,
    %c2_138 = arith.constant 2 : index
    %c96_139 = arith.constant 96 : index
    %438 = vector.load %arg10[%c2_138, %c96_139] : memref<16x128xf32, #tpu.memory_space<vmem>>, vector<2x32xf32>
    tpu.vector_store %arg10[%c2_138, %c96_139], %434 {strides = array<i32>} : memref<16x128xf32, #tpu.memory_space<vmem>>, vector<2x32xf32>,
    %439 = vector.extract_strided_slice %367 {offsets = [4, 0], sizes = [2, 192], strides = [1, 1]} : vector<16x192xf32> to vector<2x192xf32>
    %cst_140 = arith.constant dense<0.000000e+00> : vector<2x192xf32>
    %440 = tpu.matmul %432, %355, %cst_140 {dimension_numbers = #tpu.dot_dimension_numbers<[1], [0], [0], [1], [0, 0, 1, 1], [], []>} : vector<2x64xf32>, vector<64x192xf32>, vector<2x192xf32> -> vector<2x192xf32>
    %441 = vector.extract_strided_slice %439 {offsets = [0, 128], sizes = [2, 64], strides = [1, 1]} : vector<2x192xf32> to vector<2x64xf32>
    %442 = vector.extract_strided_slice %440 {offsets = [0, 128], sizes = [2, 64], strides = [1, 1]} : vector<2x192xf32> to vector<2x64xf32>
    %443 = arith.addf %441, %442 : vector<2x64xf32>
    %444 = arith.negf %443 : vector<2x64xf32>
    %445 = math.exp %444 : vector<2x64xf32>
    %cst_141 = arith.constant 1.000000e+00 : f32
    %446 = vector.broadcast %cst_141 : f32 to vector<2x64xf32>
    %447 = arith.addf %446, %445 : vector<2x64xf32>
    %448 = arith.divf %446, %447 : vector<2x64xf32>
    %449 = vector.extract_strided_slice %439 {offsets = [0, 64], sizes = [2, 64], strides = [1, 1]} : vector<2x192xf32> to vector<2x64xf32>
    %450 = vector.extract_strided_slice %440 {offsets = [0, 64], sizes = [2, 64], strides = [1, 1]} : vector<2x192xf32> to vector<2x64xf32>
    %451 = arith.addf %449, %450 : vector<2x64xf32>
    %452 = arith.negf %451 : vector<2x64xf32>
    %453 = math.exp %452 : vector<2x64xf32>
    %cst_142 = arith.constant 1.000000e+00 : f32
    %454 = vector.broadcast %cst_142 : f32 to vector<2x64xf32>
    %455 = arith.addf %454, %453 : vector<2x64xf32>
    %456 = arith.divf %454, %455 : vector<2x64xf32>
    %457 = vector.extract_strided_slice %439 {offsets = [0, 0], sizes = [2, 64], strides = [1, 1]} : vector<2x192xf32> to vector<2x64xf32>
    %458 = vector.extract_strided_slice %440 {offsets = [0, 0], sizes = [2, 64], strides = [1, 1]} : vector<2x192xf32> to vector<2x64xf32>
    %459 = arith.addf %458, %359 : vector<2x64xf32>
    %460 = arith.mulf %448, %459 : vector<2x64xf32>
    %461 = arith.addf %457, %460 : vector<2x64xf32>
    %462 = math.tanh %461 : vector<2x64xf32>
    %cst_143 = arith.constant 1.000000e+00 : f32
    %463 = vector.broadcast %cst_143 : f32 to vector<2x64xf32>
    %464 = arith.subf %463, %456 : vector<2x64xf32>
    %465 = arith.mulf %464, %462 : vector<2x64xf32>
    %466 = arith.mulf %456, %432 : vector<2x64xf32>
    %467 = arith.addf %465, %466 : vector<2x64xf32>
    %468 = vector.extract_strided_slice %467 {offsets = [0, 0], sizes = [2, 32], strides = [1, 1]} : vector<2x64xf32> to vector<2x32xf32>
    %469 = vector.extract_strided_slice %467 {offsets = [0, 32], sizes = [2, 32], strides = [1, 1]} : vector<2x64xf32> to vector<2x32xf32>
    %c4_144 = arith.constant 4 : index
    %c0_145 = arith.constant 0 : index
    %470 = vector.load %arg10[%c4_144, %c0_145] : memref<16x128xf32, #tpu.memory_space<vmem>>, vector<2x32xf32>
    tpu.vector_store %arg10[%c4_144, %c0_145], %468 {strides = array<i32>} : memref<16x128xf32, #tpu.memory_space<vmem>>, vector<2x32xf32>,
    %c10_146 = arith.constant 10 : index
    %c32_147 = arith.constant 32 : index
    %471 = vector.load %arg10[%c10_146, %c32_147] : memref<16x128xf32, #tpu.memory_space<vmem>>, vector<2x32xf32>
    tpu.vector_store %arg10[%c10_146, %c32_147], %469 {strides = array<i32>} : memref<16x128xf32, #tpu.memory_space<vmem>>, vector<2x32xf32>,
    %c10_148 = arith.constant 10 : index
    %c64_149 = arith.constant 64 : index
    %472 = vector.load %arg10[%c10_148, %c64_149] : memref<16x128xf32, #tpu.memory_space<vmem>>, vector<2x32xf32>
    tpu.vector_store %arg10[%c10_148, %c64_149], %468 {strides = array<i32>} : memref<16x128xf32, #tpu.memory_space<vmem>>, vector<2x32xf32>,
    %c4_150 = arith.constant 4 : index
    %c96_151 = arith.constant 96 : index
    %473 = vector.load %arg10[%c4_150, %c96_151] : memref<16x128xf32, #tpu.memory_space<vmem>>, vector<2x32xf32>
    tpu.vector_store %arg10[%c4_150, %c96_151], %469 {strides = array<i32>} : memref<16x128xf32, #tpu.memory_space<vmem>>, vector<2x32xf32>,
    %474 = vector.extract_strided_slice %367 {offsets = [6, 0], sizes = [2, 192], strides = [1, 1]} : vector<16x192xf32> to vector<2x192xf32>
    %cst_152 = arith.constant dense<0.000000e+00> : vector<2x192xf32>
    %475 = tpu.matmul %467, %355, %cst_152 {dimension_numbers = #tpu.dot_dimension_numbers<[1], [0], [0], [1], [0, 0, 1, 1], [], []>} : vector<2x64xf32>, vector<64x192xf32>, vector<2x192xf32> -> vector<2x192xf32>
    %476 = vector.extract_strided_slice %474 {offsets = [0, 128], sizes = [2, 64], strides = [1, 1]} : vector<2x192xf32> to vector<2x64xf32>
    %477 = vector.extract_strided_slice %475 {offsets = [0, 128], sizes = [2, 64], strides = [1, 1]} : vector<2x192xf32> to vector<2x64xf32>
    %478 = arith.addf %476, %477 : vector<2x64xf32>
    %479 = arith.negf %478 : vector<2x64xf32>
    %480 = math.exp %479 : vector<2x64xf32>
    %cst_153 = arith.constant 1.000000e+00 : f32
    %481 = vector.broadcast %cst_153 : f32 to vector<2x64xf32>
    %482 = arith.addf %481, %480 : vector<2x64xf32>
    %483 = arith.divf %481, %482 : vector<2x64xf32>
    %484 = vector.extract_strided_slice %474 {offsets = [0, 64], sizes = [2, 64], strides = [1, 1]} : vector<2x192xf32> to vector<2x64xf32>
    %485 = vector.extract_strided_slice %475 {offsets = [0, 64], sizes = [2, 64], strides = [1, 1]} : vector<2x192xf32> to vector<2x64xf32>
    %486 = arith.addf %484, %485 : vector<2x64xf32>
    %487 = arith.negf %486 : vector<2x64xf32>
    %488 = math.exp %487 : vector<2x64xf32>
    %cst_154 = arith.constant 1.000000e+00 : f32
    %489 = vector.broadcast %cst_154 : f32 to vector<2x64xf32>
    %490 = arith.addf %489, %488 : vector<2x64xf32>
    %491 = arith.divf %489, %490 : vector<2x64xf32>
    %492 = vector.extract_strided_slice %474 {offsets = [0, 0], sizes = [2, 64], strides = [1, 1]} : vector<2x192xf32> to vector<2x64xf32>
    %493 = vector.extract_strided_slice %475 {offsets = [0, 0], sizes = [2, 64], strides = [1, 1]} : vector<2x192xf32> to vector<2x64xf32>
    %494 = arith.addf %493, %359 : vector<2x64xf32>
    %495 = arith.mulf %483, %494 : vector<2x64xf32>
    %496 = arith.addf %492, %495 : vector<2x64xf32>
    %497 = math.tanh %496 : vector<2x64xf32>
    %cst_155 = arith.constant 1.000000e+00 : f32
    %498 = vector.broadcast %cst_155 : f32 to vector<2x64xf32>
    %499 = arith.subf %498, %491 : vector<2x64xf32>
    %500 = arith.mulf %499, %497 : vector<2x64xf32>
    %501 = arith.mulf %491, %467 : vector<2x64xf32>
    %502 = arith.addf %500, %501 : vector<2x64xf32>
    %503 = vector.extract_strided_slice %502 {offsets = [0, 0], sizes = [2, 32], strides = [1, 1]} : vector<2x64xf32> to vector<2x32xf32>
    %504 = vector.extract_strided_slice %502 {offsets = [0, 32], sizes = [2, 32], strides = [1, 1]} : vector<2x64xf32> to vector<2x32xf32>
    %c6_156 = arith.constant 6 : index
    %c0_157 = arith.constant 0 : index
    %505 = vector.load %arg10[%c6_156, %c0_157] : memref<16x128xf32, #tpu.memory_space<vmem>>, vector<2x32xf32>
    tpu.vector_store %arg10[%c6_156, %c0_157], %503 {strides = array<i32>} : memref<16x128xf32, #tpu.memory_space<vmem>>, vector<2x32xf32>,
    %c8_158 = arith.constant 8 : index
    %c32_159 = arith.constant 32 : index
    %506 = vector.load %arg10[%c8_158, %c32_159] : memref<16x128xf32, #tpu.memory_space<vmem>>, vector<2x32xf32>
    tpu.vector_store %arg10[%c8_158, %c32_159], %504 {strides = array<i32>} : memref<16x128xf32, #tpu.memory_space<vmem>>, vector<2x32xf32>,
    %c8_160 = arith.constant 8 : index
    %c64_161 = arith.constant 64 : index
    %507 = vector.load %arg10[%c8_160, %c64_161] : memref<16x128xf32, #tpu.memory_space<vmem>>, vector<2x32xf32>
    tpu.vector_store %arg10[%c8_160, %c64_161], %503 {strides = array<i32>} : memref<16x128xf32, #tpu.memory_space<vmem>>, vector<2x32xf32>,
    %c6_162 = arith.constant 6 : index
    %c96_163 = arith.constant 96 : index
    %508 = vector.load %arg10[%c6_162, %c96_163] : memref<16x128xf32, #tpu.memory_space<vmem>>, vector<2x32xf32>
    tpu.vector_store %arg10[%c6_162, %c96_163], %504 {strides = array<i32>} : memref<16x128xf32, #tpu.memory_space<vmem>>, vector<2x32xf32>,
    %509 = vector.extract_strided_slice %367 {offsets = [8, 0], sizes = [2, 192], strides = [1, 1]} : vector<16x192xf32> to vector<2x192xf32>
    %cst_164 = arith.constant dense<0.000000e+00> : vector<2x192xf32>
    %510 = tpu.matmul %502, %355, %cst_164 {dimension_numbers = #tpu.dot_dimension_numbers<[1], [0], [0], [1], [0, 0, 1, 1], [], []>} : vector<2x64xf32>, vector<64x192xf32>, vector<2x192xf32> -> vector<2x192xf32>
    %511 = vector.extract_strided_slice %509 {offsets = [0, 128], sizes = [2, 64], strides = [1, 1]} : vector<2x192xf32> to vector<2x64xf32>
    %512 = vector.extract_strided_slice %510 {offsets = [0, 128], sizes = [2, 64], strides = [1, 1]} : vector<2x192xf32> to vector<2x64xf32>
    %513 = arith.addf %511, %512 : vector<2x64xf32>
    %514 = arith.negf %513 : vector<2x64xf32>
    %515 = math.exp %514 : vector<2x64xf32>
    %cst_165 = arith.constant 1.000000e+00 : f32
    %516 = vector.broadcast %cst_165 : f32 to vector<2x64xf32>
    %517 = arith.addf %516, %515 : vector<2x64xf32>
    %518 = arith.divf %516, %517 : vector<2x64xf32>
    %519 = vector.extract_strided_slice %509 {offsets = [0, 64], sizes = [2, 64], strides = [1, 1]} : vector<2x192xf32> to vector<2x64xf32>
    %520 = vector.extract_strided_slice %510 {offsets = [0, 64], sizes = [2, 64], strides = [1, 1]} : vector<2x192xf32> to vector<2x64xf32>
    %521 = arith.addf %519, %520 : vector<2x64xf32>
    %522 = arith.negf %521 : vector<2x64xf32>
    %523 = math.exp %522 : vector<2x64xf32>
    %cst_166 = arith.constant 1.000000e+00 : f32
    %524 = vector.broadcast %cst_166 : f32 to vector<2x64xf32>
    %525 = arith.addf %524, %523 : vector<2x64xf32>
    %526 = arith.divf %524, %525 : vector<2x64xf32>
    %527 = vector.extract_strided_slice %509 {offsets = [0, 0], sizes = [2, 64], strides = [1, 1]} : vector<2x192xf32> to vector<2x64xf32>
    %528 = vector.extract_strided_slice %510 {offsets = [0, 0], sizes = [2, 64], strides = [1, 1]} : vector<2x192xf32> to vector<2x64xf32>
    %529 = arith.addf %528, %359 : vector<2x64xf32>
    %530 = arith.mulf %518, %529 : vector<2x64xf32>
    %531 = arith.addf %527, %530 : vector<2x64xf32>
    %532 = math.tanh %531 : vector<2x64xf32>
    %cst_167 = arith.constant 1.000000e+00 : f32
    %533 = vector.broadcast %cst_167 : f32 to vector<2x64xf32>
    %534 = arith.subf %533, %526 : vector<2x64xf32>
    %535 = arith.mulf %534, %532 : vector<2x64xf32>
    %536 = arith.mulf %526, %502 : vector<2x64xf32>
    %537 = arith.addf %535, %536 : vector<2x64xf32>
    %538 = vector.extract_strided_slice %537 {offsets = [0, 0], sizes = [2, 32], strides = [1, 1]} : vector<2x64xf32> to vector<2x32xf32>
    %539 = vector.extract_strided_slice %537 {offsets = [0, 32], sizes = [2, 32], strides = [1, 1]} : vector<2x64xf32> to vector<2x32xf32>
    %c8_168 = arith.constant 8 : index
    %c0_169 = arith.constant 0 : index
    %540 = vector.load %arg10[%c8_168, %c0_169] : memref<16x128xf32, #tpu.memory_space<vmem>>, vector<2x32xf32>
    tpu.vector_store %arg10[%c8_168, %c0_169], %538 {strides = array<i32>} : memref<16x128xf32, #tpu.memory_space<vmem>>, vector<2x32xf32>,
    %c6_170 = arith.constant 6 : index
    %c32_171 = arith.constant 32 : index
    %541 = vector.load %arg10[%c6_170, %c32_171] : memref<16x128xf32, #tpu.memory_space<vmem>>, vector<2x32xf32>
    tpu.vector_store %arg10[%c6_170, %c32_171], %539 {strides = array<i32>} : memref<16x128xf32, #tpu.memory_space<vmem>>, vector<2x32xf32>,
    %c6_172 = arith.constant 6 : index
    %c64_173 = arith.constant 64 : index
    %542 = vector.load %arg10[%c6_172, %c64_173] : memref<16x128xf32, #tpu.memory_space<vmem>>, vector<2x32xf32>
    tpu.vector_store %arg10[%c6_172, %c64_173], %538 {strides = array<i32>} : memref<16x128xf32, #tpu.memory_space<vmem>>, vector<2x32xf32>,
    %c8_174 = arith.constant 8 : index
    %c96_175 = arith.constant 96 : index
    %543 = vector.load %arg10[%c8_174, %c96_175] : memref<16x128xf32, #tpu.memory_space<vmem>>, vector<2x32xf32>
    tpu.vector_store %arg10[%c8_174, %c96_175], %539 {strides = array<i32>} : memref<16x128xf32, #tpu.memory_space<vmem>>, vector<2x32xf32>,
    %544 = vector.extract_strided_slice %367 {offsets = [10, 0], sizes = [2, 192], strides = [1, 1]} : vector<16x192xf32> to vector<2x192xf32>
    %cst_176 = arith.constant dense<0.000000e+00> : vector<2x192xf32>
    %545 = tpu.matmul %537, %355, %cst_176 {dimension_numbers = #tpu.dot_dimension_numbers<[1], [0], [0], [1], [0, 0, 1, 1], [], []>} : vector<2x64xf32>, vector<64x192xf32>, vector<2x192xf32> -> vector<2x192xf32>
    %546 = vector.extract_strided_slice %544 {offsets = [0, 128], sizes = [2, 64], strides = [1, 1]} : vector<2x192xf32> to vector<2x64xf32>
    %547 = vector.extract_strided_slice %545 {offsets = [0, 128], sizes = [2, 64], strides = [1, 1]} : vector<2x192xf32> to vector<2x64xf32>
    %548 = arith.addf %546, %547 : vector<2x64xf32>
    %549 = arith.negf %548 : vector<2x64xf32>
    %550 = math.exp %549 : vector<2x64xf32>
    %cst_177 = arith.constant 1.000000e+00 : f32
    %551 = vector.broadcast %cst_177 : f32 to vector<2x64xf32>
    %552 = arith.addf %551, %550 : vector<2x64xf32>
    %553 = arith.divf %551, %552 : vector<2x64xf32>
    %554 = vector.extract_strided_slice %544 {offsets = [0, 64], sizes = [2, 64], strides = [1, 1]} : vector<2x192xf32> to vector<2x64xf32>
    %555 = vector.extract_strided_slice %545 {offsets = [0, 64], sizes = [2, 64], strides = [1, 1]} : vector<2x192xf32> to vector<2x64xf32>
    %556 = arith.addf %554, %555 : vector<2x64xf32>
    %557 = arith.negf %556 : vector<2x64xf32>
    %558 = math.exp %557 : vector<2x64xf32>
    %cst_178 = arith.constant 1.000000e+00 : f32
    %559 = vector.broadcast %cst_178 : f32 to vector<2x64xf32>
    %560 = arith.addf %559, %558 : vector<2x64xf32>
    %561 = arith.divf %559, %560 : vector<2x64xf32>
    %562 = vector.extract_strided_slice %544 {offsets = [0, 0], sizes = [2, 64], strides = [1, 1]} : vector<2x192xf32> to vector<2x64xf32>
    %563 = vector.extract_strided_slice %545 {offsets = [0, 0], sizes = [2, 64], strides = [1, 1]} : vector<2x192xf32> to vector<2x64xf32>
    %564 = arith.addf %563, %359 : vector<2x64xf32>
    %565 = arith.mulf %553, %564 : vector<2x64xf32>
    %566 = arith.addf %562, %565 : vector<2x64xf32>
    %567 = math.tanh %566 : vector<2x64xf32>
    %cst_179 = arith.constant 1.000000e+00 : f32
    %568 = vector.broadcast %cst_179 : f32 to vector<2x64xf32>
    %569 = arith.subf %568, %561 : vector<2x64xf32>
    %570 = arith.mulf %569, %567 : vector<2x64xf32>
    %571 = arith.mulf %561, %537 : vector<2x64xf32>
    %572 = arith.addf %570, %571 : vector<2x64xf32>
    %573 = vector.extract_strided_slice %572 {offsets = [0, 0], sizes = [2, 32], strides = [1, 1]} : vector<2x64xf32> to vector<2x32xf32>
    %574 = vector.extract_strided_slice %572 {offsets = [0, 32], sizes = [2, 32], strides = [1, 1]} : vector<2x64xf32> to vector<2x32xf32>
    %c10_180 = arith.constant 10 : index
    %c0_181 = arith.constant 0 : index
    %575 = vector.load %arg10[%c10_180, %c0_181] : memref<16x128xf32, #tpu.memory_space<vmem>>, vector<2x32xf32>
    tpu.vector_store %arg10[%c10_180, %c0_181], %573 {strides = array<i32>} : memref<16x128xf32, #tpu.memory_space<vmem>>, vector<2x32xf32>,
    %c4_182 = arith.constant 4 : index
    %c32_183 = arith.constant 32 : index
    %576 = vector.load %arg10[%c4_182, %c32_183] : memref<16x128xf32, #tpu.memory_space<vmem>>, vector<2x32xf32>
    tpu.vector_store %arg10[%c4_182, %c32_183], %574 {strides = array<i32>} : memref<16x128xf32, #tpu.memory_space<vmem>>, vector<2x32xf32>,
    %c4_184 = arith.constant 4 : index
    %c64_185 = arith.constant 64 : index
    %577 = vector.load %arg10[%c4_184, %c64_185] : memref<16x128xf32, #tpu.memory_space<vmem>>, vector<2x32xf32>
    tpu.vector_store %arg10[%c4_184, %c64_185], %573 {strides = array<i32>} : memref<16x128xf32, #tpu.memory_space<vmem>>, vector<2x32xf32>,
    %c10_186 = arith.constant 10 : index
    %c96_187 = arith.constant 96 : index
    %578 = vector.load %arg10[%c10_186, %c96_187] : memref<16x128xf32, #tpu.memory_space<vmem>>, vector<2x32xf32>
    tpu.vector_store %arg10[%c10_186, %c96_187], %574 {strides = array<i32>} : memref<16x128xf32, #tpu.memory_space<vmem>>, vector<2x32xf32>,
    %579 = vector.extract_strided_slice %367 {offsets = [12, 0], sizes = [2, 192], strides = [1, 1]} : vector<16x192xf32> to vector<2x192xf32>
    %cst_188 = arith.constant dense<0.000000e+00> : vector<2x192xf32>
    %580 = tpu.matmul %572, %355, %cst_188 {dimension_numbers = #tpu.dot_dimension_numbers<[1], [0], [0], [1], [0, 0, 1, 1], [], []>} : vector<2x64xf32>, vector<64x192xf32>, vector<2x192xf32> -> vector<2x192xf32>
    %581 = vector.extract_strided_slice %579 {offsets = [0, 128], sizes = [2, 64], strides = [1, 1]} : vector<2x192xf32> to vector<2x64xf32>
    %582 = vector.extract_strided_slice %580 {offsets = [0, 128], sizes = [2, 64], strides = [1, 1]} : vector<2x192xf32> to vector<2x64xf32>
    %583 = arith.addf %581, %582 : vector<2x64xf32>
    %584 = arith.negf %583 : vector<2x64xf32>
    %585 = math.exp %584 : vector<2x64xf32>
    %cst_189 = arith.constant 1.000000e+00 : f32
    %586 = vector.broadcast %cst_189 : f32 to vector<2x64xf32>
    %587 = arith.addf %586, %585 : vector<2x64xf32>
    %588 = arith.divf %586, %587 : vector<2x64xf32>
    %589 = vector.extract_strided_slice %579 {offsets = [0, 64], sizes = [2, 64], strides = [1, 1]} : vector<2x192xf32> to vector<2x64xf32>
    %590 = vector.extract_strided_slice %580 {offsets = [0, 64], sizes = [2, 64], strides = [1, 1]} : vector<2x192xf32> to vector<2x64xf32>
    %591 = arith.addf %589, %590 : vector<2x64xf32>
    %592 = arith.negf %591 : vector<2x64xf32>
    %593 = math.exp %592 : vector<2x64xf32>
    %cst_190 = arith.constant 1.000000e+00 : f32
    %594 = vector.broadcast %cst_190 : f32 to vector<2x64xf32>
    %595 = arith.addf %594, %593 : vector<2x64xf32>
    %596 = arith.divf %594, %595 : vector<2x64xf32>
    %597 = vector.extract_strided_slice %579 {offsets = [0, 0], sizes = [2, 64], strides = [1, 1]} : vector<2x192xf32> to vector<2x64xf32>
    %598 = vector.extract_strided_slice %580 {offsets = [0, 0], sizes = [2, 64], strides = [1, 1]} : vector<2x192xf32> to vector<2x64xf32>
    %599 = arith.addf %598, %359 : vector<2x64xf32>
    %600 = arith.mulf %588, %599 : vector<2x64xf32>
    %601 = arith.addf %597, %600 : vector<2x64xf32>
    %602 = math.tanh %601 : vector<2x64xf32>
    %cst_191 = arith.constant 1.000000e+00 : f32
    %603 = vector.broadcast %cst_191 : f32 to vector<2x64xf32>
    %604 = arith.subf %603, %596 : vector<2x64xf32>
    %605 = arith.mulf %604, %602 : vector<2x64xf32>
    %606 = arith.mulf %596, %572 : vector<2x64xf32>
    %607 = arith.addf %605, %606 : vector<2x64xf32>
    %608 = vector.extract_strided_slice %607 {offsets = [0, 0], sizes = [2, 32], strides = [1, 1]} : vector<2x64xf32> to vector<2x32xf32>
    %609 = vector.extract_strided_slice %607 {offsets = [0, 32], sizes = [2, 32], strides = [1, 1]} : vector<2x64xf32> to vector<2x32xf32>
    %c12_192 = arith.constant 12 : index
    %c0_193 = arith.constant 0 : index
    %610 = vector.load %arg10[%c12_192, %c0_193] : memref<16x128xf32, #tpu.memory_space<vmem>>, vector<2x32xf32>
    tpu.vector_store %arg10[%c12_192, %c0_193], %608 {strides = array<i32>} : memref<16x128xf32, #tpu.memory_space<vmem>>, vector<2x32xf32>,
    %c2_194 = arith.constant 2 : index
    %c32_195 = arith.constant 32 : index
    %611 = vector.load %arg10[%c2_194, %c32_195] : memref<16x128xf32, #tpu.memory_space<vmem>>, vector<2x32xf32>
    tpu.vector_store %arg10[%c2_194, %c32_195], %609 {strides = array<i32>} : memref<16x128xf32, #tpu.memory_space<vmem>>, vector<2x32xf32>,
    %c2_196 = arith.constant 2 : index
    %c64_197 = arith.constant 64 : index
    %612 = vector.load %arg10[%c2_196, %c64_197] : memref<16x128xf32, #tpu.memory_space<vmem>>, vector<2x32xf32>
    tpu.vector_store %arg10[%c2_196, %c64_197], %608 {strides = array<i32>} : memref<16x128xf32, #tpu.memory_space<vmem>>, vector<2x32xf32>,
    %c12_198 = arith.constant 12 : index
    %c96_199 = arith.constant 96 : index
    %613 = vector.load %arg10[%c12_198, %c96_199] : memref<16x128xf32, #tpu.memory_space<vmem>>, vector<2x32xf32>
    tpu.vector_store %arg10[%c12_198, %c96_199], %609 {strides = array<i32>} : memref<16x128xf32, #tpu.memory_space<vmem>>, vector<2x32xf32>,
    %614 = vector.extract_strided_slice %367 {offsets = [14, 0], sizes = [2, 192], strides = [1, 1]} : vector<16x192xf32> to vector<2x192xf32>
    %cst_200 = arith.constant dense<0.000000e+00> : vector<2x192xf32>
    %615 = tpu.matmul %607, %355, %cst_200 {dimension_numbers = #tpu.dot_dimension_numbers<[1], [0], [0], [1], [0, 0, 1, 1], [], []>} : vector<2x64xf32>, vector<64x192xf32>, vector<2x192xf32> -> vector<2x192xf32>
    %616 = vector.extract_strided_slice %614 {offsets = [0, 128], sizes = [2, 64], strides = [1, 1]} : vector<2x192xf32> to vector<2x64xf32>
    %617 = vector.extract_strided_slice %615 {offsets = [0, 128], sizes = [2, 64], strides = [1, 1]} : vector<2x192xf32> to vector<2x64xf32>
    %618 = arith.addf %616, %617 : vector<2x64xf32>
    %619 = arith.negf %618 : vector<2x64xf32>
    %620 = math.exp %619 : vector<2x64xf32>
    %cst_201 = arith.constant 1.000000e+00 : f32
    %621 = vector.broadcast %cst_201 : f32 to vector<2x64xf32>
    %622 = arith.addf %621, %620 : vector<2x64xf32>
    %623 = arith.divf %621, %622 : vector<2x64xf32>
    %624 = vector.extract_strided_slice %614 {offsets = [0, 64], sizes = [2, 64], strides = [1, 1]} : vector<2x192xf32> to vector<2x64xf32>
    %625 = vector.extract_strided_slice %615 {offsets = [0, 64], sizes = [2, 64], strides = [1, 1]} : vector<2x192xf32> to vector<2x64xf32>
    %626 = arith.addf %624, %625 : vector<2x64xf32>
    %627 = arith.negf %626 : vector<2x64xf32>
    %628 = math.exp %627 : vector<2x64xf32>
    %cst_202 = arith.constant 1.000000e+00 : f32
    %629 = vector.broadcast %cst_202 : f32 to vector<2x64xf32>
    %630 = arith.addf %629, %628 : vector<2x64xf32>
    %631 = arith.divf %629, %630 : vector<2x64xf32>
    %632 = vector.extract_strided_slice %614 {offsets = [0, 0], sizes = [2, 64], strides = [1, 1]} : vector<2x192xf32> to vector<2x64xf32>
    %633 = vector.extract_strided_slice %615 {offsets = [0, 0], sizes = [2, 64], strides = [1, 1]} : vector<2x192xf32> to vector<2x64xf32>
    %634 = arith.addf %633, %359 : vector<2x64xf32>
    %635 = arith.mulf %623, %634 : vector<2x64xf32>
    %636 = arith.addf %632, %635 : vector<2x64xf32>
    %637 = math.tanh %636 : vector<2x64xf32>
    %cst_203 = arith.constant 1.000000e+00 : f32
    %638 = vector.broadcast %cst_203 : f32 to vector<2x64xf32>
    %639 = arith.subf %638, %631 : vector<2x64xf32>
    %640 = arith.mulf %639, %637 : vector<2x64xf32>
    %641 = arith.mulf %631, %607 : vector<2x64xf32>
    %642 = arith.addf %640, %641 : vector<2x64xf32>
    %643 = vector.extract_strided_slice %642 {offsets = [0, 0], sizes = [2, 32], strides = [1, 1]} : vector<2x64xf32> to vector<2x32xf32>
    %644 = vector.extract_strided_slice %642 {offsets = [0, 32], sizes = [2, 32], strides = [1, 1]} : vector<2x64xf32> to vector<2x32xf32>
    %c14_204 = arith.constant 14 : index
    %c0_205 = arith.constant 0 : index
    %645 = vector.load %arg10[%c14_204, %c0_205] : memref<16x128xf32, #tpu.memory_space<vmem>>, vector<2x32xf32>
    tpu.vector_store %arg10[%c14_204, %c0_205], %643 {strides = array<i32>} : memref<16x128xf32, #tpu.memory_space<vmem>>, vector<2x32xf32>,
    %c0_206 = arith.constant 0 : index
    %c32_207 = arith.constant 32 : index
    %646 = vector.load %arg10[%c0_206, %c32_207] : memref<16x128xf32, #tpu.memory_space<vmem>>, vector<2x32xf32>
    tpu.vector_store %arg10[%c0_206, %c32_207], %644 {strides = array<i32>} : memref<16x128xf32, #tpu.memory_space<vmem>>, vector<2x32xf32>,
    %c0_208 = arith.constant 0 : index
    %c64_209 = arith.constant 64 : index
    %647 = vector.load %arg10[%c0_208, %c64_209] : memref<16x128xf32, #tpu.memory_space<vmem>>, vector<2x32xf32>
    tpu.vector_store %arg10[%c0_208, %c64_209], %643 {strides = array<i32>} : memref<16x128xf32, #tpu.memory_space<vmem>>, vector<2x32xf32>,
    %c14_210 = arith.constant 14 : index
    %c96_211 = arith.constant 96 : index
    %648 = vector.load %arg10[%c14_210, %c96_211] : memref<16x128xf32, #tpu.memory_space<vmem>>, vector<2x32xf32>
    tpu.vector_store %arg10[%c14_210, %c96_211], %644 {strides = array<i32>} : memref<16x128xf32, #tpu.memory_space<vmem>>, vector<2x32xf32>,
    %c2_212 = arith.constant 2 : index
    %c0_213 = arith.constant 0 : index
    %c0_214 = arith.constant 0 : index
    %649 = vector.load %arg3[%c2_212, %c0_213, %c0_214] : memref<3x64x192xf32, #tpu.memory_space<vmem>>, vector<1x64x192xf32>
    %650 = vector.shape_cast %649 : vector<1x64x192xf32> to vector<64x192xf32>
    %c2_215 = arith.constant 2 : index
    %c0_216 = arith.constant 0 : index
    %c0_217 = arith.constant 0 : index
    %651 = vector.load %arg5[%c2_215, %c0_216, %c0_217] : memref<3x1x64xf32, #tpu.memory_space<vmem>>, vector<1x1x64xf32>
    %652 = vector.shape_cast %651 : vector<1x1x64xf32> to vector<1x64xf32>
    %653 = vector.shape_cast %652 : vector<1x64xf32> to vector<1x64xf32>
    %654 = vector.broadcast %653 : vector<1x64xf32> to vector<2x64xf32>
    %c0_218 = arith.constant 0 : index
    %c0_219 = arith.constant 0 : index
    %655 = vector.load %arg10[%c0_218, %c0_219] : memref<16x128xf32, #tpu.memory_space<vmem>>, vector<16x128xf32>
    %c1_220 = arith.constant 1 : index
    %c0_221 = arith.constant 0 : index
    %c0_222 = arith.constant 0 : index
    %656 = vector.load %arg2[%c1_220, %c0_221, %c0_222] : memref<2x128x192xf32, #tpu.memory_space<vmem>>, vector<1x128x192xf32>
    %657 = vector.shape_cast %656 : vector<1x128x192xf32> to vector<128x192xf32>
    %cst_223 = arith.constant dense<0.000000e+00> : vector<16x192xf32>
    %658 = tpu.matmul %655, %657, %cst_223 {dimension_numbers = #tpu.dot_dimension_numbers<[1], [0], [0], [1], [0, 0, 1, 1], [], []>} : vector<16x128xf32>, vector<128x192xf32>, vector<16x192xf32> -> vector<16x192xf32>
    %c2_224 = arith.constant 2 : index
    %c0_225 = arith.constant 0 : index
    %c0_226 = arith.constant 0 : index
    %659 = vector.load %arg4[%c2_224, %c0_225, %c0_226] : memref<3x1x192xf32, #tpu.memory_space<vmem>>, vector<1x1x192xf32>
    %660 = vector.shape_cast %659 : vector<1x1x192xf32> to vector<1x192xf32>
    %661 = vector.broadcast %660 : vector<1x192xf32> to vector<16x192xf32>
    %662 = arith.addf %658, %661 : vector<16x192xf32>
    %cst_227 = arith.constant 0.000000e+00 : f32
    %663 = vector.broadcast %cst_227 : f32 to vector<2x64xf32>
    %664 = vector.extract_strided_slice %662 {offsets = [0, 0], sizes = [2, 192], strides = [1, 1]} : vector<16x192xf32> to vector<2x192xf32>
    %cst_228 = arith.constant dense<0.000000e+00> : vector<2x192xf32>
    %665 = tpu.matmul %663, %650, %cst_228 {dimension_numbers = #tpu.dot_dimension_numbers<[1], [0], [0], [1], [0, 0, 1, 1], [], []>} : vector<2x64xf32>, vector<64x192xf32>, vector<2x192xf32> -> vector<2x192xf32>
    %666 = vector.extract_strided_slice %664 {offsets = [0, 128], sizes = [2, 64], strides = [1, 1]} : vector<2x192xf32> to vector<2x64xf32>
    %667 = vector.extract_strided_slice %665 {offsets = [0, 128], sizes = [2, 64], strides = [1, 1]} : vector<2x192xf32> to vector<2x64xf32>
    %668 = arith.addf %666, %667 : vector<2x64xf32>
    %669 = arith.negf %668 : vector<2x64xf32>
    %670 = math.exp %669 : vector<2x64xf32>
    %cst_229 = arith.constant 1.000000e+00 : f32
    %671 = vector.broadcast %cst_229 : f32 to vector<2x64xf32>
    %672 = arith.addf %671, %670 : vector<2x64xf32>
    %673 = arith.divf %671, %672 : vector<2x64xf32>
    %674 = vector.extract_strided_slice %664 {offsets = [0, 64], sizes = [2, 64], strides = [1, 1]} : vector<2x192xf32> to vector<2x64xf32>
    %675 = vector.extract_strided_slice %665 {offsets = [0, 64], sizes = [2, 64], strides = [1, 1]} : vector<2x192xf32> to vector<2x64xf32>
    %676 = arith.addf %674, %675 : vector<2x64xf32>
    %677 = arith.negf %676 : vector<2x64xf32>
    %678 = math.exp %677 : vector<2x64xf32>
    %cst_230 = arith.constant 1.000000e+00 : f32
    %679 = vector.broadcast %cst_230 : f32 to vector<2x64xf32>
    %680 = arith.addf %679, %678 : vector<2x64xf32>
    %681 = arith.divf %679, %680 : vector<2x64xf32>
    %682 = vector.extract_strided_slice %664 {offsets = [0, 0], sizes = [2, 64], strides = [1, 1]} : vector<2x192xf32> to vector<2x64xf32>
    %683 = vector.extract_strided_slice %665 {offsets = [0, 0], sizes = [2, 64], strides = [1, 1]} : vector<2x192xf32> to vector<2x64xf32>
    %684 = arith.addf %683, %654 : vector<2x64xf32>
    %685 = arith.mulf %673, %684 : vector<2x64xf32>
    %686 = arith.addf %682, %685 : vector<2x64xf32>
    %687 = math.tanh %686 : vector<2x64xf32>
    %cst_231 = arith.constant 1.000000e+00 : f32
    %688 = vector.broadcast %cst_231 : f32 to vector<2x64xf32>
    %689 = arith.subf %688, %681 : vector<2x64xf32>
    %690 = arith.mulf %689, %687 : vector<2x64xf32>
    %691 = arith.mulf %681, %663 : vector<2x64xf32>
    %692 = arith.addf %690, %691 : vector<2x64xf32>
    %693 = vector.extract_strided_slice %692 {offsets = [0, 32], sizes = [2, 32], strides = [1, 1]} : vector<2x64xf32> to vector<2x32xf32>
    %694 = vector.extract_strided_slice %662 {offsets = [2, 0], sizes = [2, 192], strides = [1, 1]} : vector<16x192xf32> to vector<2x192xf32>
    %cst_232 = arith.constant dense<0.000000e+00> : vector<2x192xf32>
    %695 = tpu.matmul %692, %650, %cst_232 {dimension_numbers = #tpu.dot_dimension_numbers<[1], [0], [0], [1], [0, 0, 1, 1], [], []>} : vector<2x64xf32>, vector<64x192xf32>, vector<2x192xf32> -> vector<2x192xf32>
    %696 = vector.extract_strided_slice %694 {offsets = [0, 128], sizes = [2, 64], strides = [1, 1]} : vector<2x192xf32> to vector<2x64xf32>
    %697 = vector.extract_strided_slice %695 {offsets = [0, 128], sizes = [2, 64], strides = [1, 1]} : vector<2x192xf32> to vector<2x64xf32>
    %698 = arith.addf %696, %697 : vector<2x64xf32>
    %699 = arith.negf %698 : vector<2x64xf32>
    %700 = math.exp %699 : vector<2x64xf32>
    %cst_233 = arith.constant 1.000000e+00 : f32
    %701 = vector.broadcast %cst_233 : f32 to vector<2x64xf32>
    %702 = arith.addf %701, %700 : vector<2x64xf32>
    %703 = arith.divf %701, %702 : vector<2x64xf32>
    %704 = vector.extract_strided_slice %694 {offsets = [0, 64], sizes = [2, 64], strides = [1, 1]} : vector<2x192xf32> to vector<2x64xf32>
    %705 = vector.extract_strided_slice %695 {offsets = [0, 64], sizes = [2, 64], strides = [1, 1]} : vector<2x192xf32> to vector<2x64xf32>
    %706 = arith.addf %704, %705 : vector<2x64xf32>
    %707 = arith.negf %706 : vector<2x64xf32>
    %708 = math.exp %707 : vector<2x64xf32>
    %cst_234 = arith.constant 1.000000e+00 : f32
    %709 = vector.broadcast %cst_234 : f32 to vector<2x64xf32>
    %710 = arith.addf %709, %708 : vector<2x64xf32>
    %711 = arith.divf %709, %710 : vector<2x64xf32>
    %712 = vector.extract_strided_slice %694 {offsets = [0, 0], sizes = [2, 64], strides = [1, 1]} : vector<2x192xf32> to vector<2x64xf32>
    %713 = vector.extract_strided_slice %695 {offsets = [0, 0], sizes = [2, 64], strides = [1, 1]} : vector<2x192xf32> to vector<2x64xf32>
    %714 = arith.addf %713, %654 : vector<2x64xf32>
    %715 = arith.mulf %703, %714 : vector<2x64xf32>
    %716 = arith.addf %712, %715 : vector<2x64xf32>
    %717 = math.tanh %716 : vector<2x64xf32>
    %cst_235 = arith.constant 1.000000e+00 : f32
    %718 = vector.broadcast %cst_235 : f32 to vector<2x64xf32>
    %719 = arith.subf %718, %711 : vector<2x64xf32>
    %720 = arith.mulf %719, %717 : vector<2x64xf32>
    %721 = arith.mulf %711, %692 : vector<2x64xf32>
    %722 = arith.addf %720, %721 : vector<2x64xf32>
    %723 = vector.extract_strided_slice %662 {offsets = [4, 0], sizes = [2, 192], strides = [1, 1]} : vector<16x192xf32> to vector<2x192xf32>
    %cst_236 = arith.constant dense<0.000000e+00> : vector<2x192xf32>
    %724 = tpu.matmul %722, %650, %cst_236 {dimension_numbers = #tpu.dot_dimension_numbers<[1], [0], [0], [1], [0, 0, 1, 1], [], []>} : vector<2x64xf32>, vector<64x192xf32>, vector<2x192xf32> -> vector<2x192xf32>
    %725 = vector.extract_strided_slice %723 {offsets = [0, 128], sizes = [2, 64], strides = [1, 1]} : vector<2x192xf32> to vector<2x64xf32>
    %726 = vector.extract_strided_slice %724 {offsets = [0, 128], sizes = [2, 64], strides = [1, 1]} : vector<2x192xf32> to vector<2x64xf32>
    %727 = arith.addf %725, %726 : vector<2x64xf32>
    %728 = arith.negf %727 : vector<2x64xf32>
    %729 = math.exp %728 : vector<2x64xf32>
    %cst_237 = arith.constant 1.000000e+00 : f32
    %730 = vector.broadcast %cst_237 : f32 to vector<2x64xf32>
    %731 = arith.addf %730, %729 : vector<2x64xf32>
    %732 = arith.divf %730, %731 : vector<2x64xf32>
    %733 = vector.extract_strided_slice %723 {offsets = [0, 64], sizes = [2, 64], strides = [1, 1]} : vector<2x192xf32> to vector<2x64xf32>
    %734 = vector.extract_strided_slice %724 {offsets = [0, 64], sizes = [2, 64], strides = [1, 1]} : vector<2x192xf32> to vector<2x64xf32>
    %735 = arith.addf %733, %734 : vector<2x64xf32>
    %736 = arith.negf %735 : vector<2x64xf32>
    %737 = math.exp %736 : vector<2x64xf32>
    %cst_238 = arith.constant 1.000000e+00 : f32
    %738 = vector.broadcast %cst_238 : f32 to vector<2x64xf32>
    %739 = arith.addf %738, %737 : vector<2x64xf32>
    %740 = arith.divf %738, %739 : vector<2x64xf32>
    %741 = vector.extract_strided_slice %723 {offsets = [0, 0], sizes = [2, 64], strides = [1, 1]} : vector<2x192xf32> to vector<2x64xf32>
    %742 = vector.extract_strided_slice %724 {offsets = [0, 0], sizes = [2, 64], strides = [1, 1]} : vector<2x192xf32> to vector<2x64xf32>
    %743 = arith.addf %742, %654 : vector<2x64xf32>
    %744 = arith.mulf %732, %743 : vector<2x64xf32>
    %745 = arith.addf %741, %744 : vector<2x64xf32>
    %746 = math.tanh %745 : vector<2x64xf32>
    %cst_239 = arith.constant 1.000000e+00 : f32
    %747 = vector.broadcast %cst_239 : f32 to vector<2x64xf32>
    %748 = arith.subf %747, %740 : vector<2x64xf32>
    %749 = arith.mulf %748, %746 : vector<2x64xf32>
    %750 = arith.mulf %740, %722 : vector<2x64xf32>
    %751 = arith.addf %749, %750 : vector<2x64xf32>
    %752 = vector.extract_strided_slice %662 {offsets = [6, 0], sizes = [2, 192], strides = [1, 1]} : vector<16x192xf32> to vector<2x192xf32>
    %cst_240 = arith.constant dense<0.000000e+00> : vector<2x192xf32>
    %753 = tpu.matmul %751, %650, %cst_240 {dimension_numbers = #tpu.dot_dimension_numbers<[1], [0], [0], [1], [0, 0, 1, 1], [], []>} : vector<2x64xf32>, vector<64x192xf32>, vector<2x192xf32> -> vector<2x192xf32>
    %754 = vector.extract_strided_slice %752 {offsets = [0, 128], sizes = [2, 64], strides = [1, 1]} : vector<2x192xf32> to vector<2x64xf32>
    %755 = vector.extract_strided_slice %753 {offsets = [0, 128], sizes = [2, 64], strides = [1, 1]} : vector<2x192xf32> to vector<2x64xf32>
    %756 = arith.addf %754, %755 : vector<2x64xf32>
    %757 = arith.negf %756 : vector<2x64xf32>
    %758 = math.exp %757 : vector<2x64xf32>
    %cst_241 = arith.constant 1.000000e+00 : f32
    %759 = vector.broadcast %cst_241 : f32 to vector<2x64xf32>
    %760 = arith.addf %759, %758 : vector<2x64xf32>
    %761 = arith.divf %759, %760 : vector<2x64xf32>
    %762 = vector.extract_strided_slice %752 {offsets = [0, 64], sizes = [2, 64], strides = [1, 1]} : vector<2x192xf32> to vector<2x64xf32>
    %763 = vector.extract_strided_slice %753 {offsets = [0, 64], sizes = [2, 64], strides = [1, 1]} : vector<2x192xf32> to vector<2x64xf32>
    %764 = arith.addf %762, %763 : vector<2x64xf32>
    %765 = arith.negf %764 : vector<2x64xf32>
    %766 = math.exp %765 : vector<2x64xf32>
    %cst_242 = arith.constant 1.000000e+00 : f32
    %767 = vector.broadcast %cst_242 : f32 to vector<2x64xf32>
    %768 = arith.addf %767, %766 : vector<2x64xf32>
    %769 = arith.divf %767, %768 : vector<2x64xf32>
    %770 = vector.extract_strided_slice %752 {offsets = [0, 0], sizes = [2, 64], strides = [1, 1]} : vector<2x192xf32> to vector<2x64xf32>
    %771 = vector.extract_strided_slice %753 {offsets = [0, 0], sizes = [2, 64], strides = [1, 1]} : vector<2x192xf32> to vector<2x64xf32>
    %772 = arith.addf %771, %654 : vector<2x64xf32>
    %773 = arith.mulf %761, %772 : vector<2x64xf32>
    %774 = arith.addf %770, %773 : vector<2x64xf32>
    %775 = math.tanh %774 : vector<2x64xf32>
    %cst_243 = arith.constant 1.000000e+00 : f32
    %776 = vector.broadcast %cst_243 : f32 to vector<2x64xf32>
    %777 = arith.subf %776, %769 : vector<2x64xf32>
    %778 = arith.mulf %777, %775 : vector<2x64xf32>
    %779 = arith.mulf %769, %751 : vector<2x64xf32>
    %780 = arith.addf %778, %779 : vector<2x64xf32>
    %781 = vector.extract_strided_slice %662 {offsets = [8, 0], sizes = [2, 192], strides = [1, 1]} : vector<16x192xf32> to vector<2x192xf32>
    %cst_244 = arith.constant dense<0.000000e+00> : vector<2x192xf32>
    %782 = tpu.matmul %780, %650, %cst_244 {dimension_numbers = #tpu.dot_dimension_numbers<[1], [0], [0], [1], [0, 0, 1, 1], [], []>} : vector<2x64xf32>, vector<64x192xf32>, vector<2x192xf32> -> vector<2x192xf32>
    %783 = vector.extract_strided_slice %781 {offsets = [0, 128], sizes = [2, 64], strides = [1, 1]} : vector<2x192xf32> to vector<2x64xf32>
    %784 = vector.extract_strided_slice %782 {offsets = [0, 128], sizes = [2, 64], strides = [1, 1]} : vector<2x192xf32> to vector<2x64xf32>
    %785 = arith.addf %783, %784 : vector<2x64xf32>
    %786 = arith.negf %785 : vector<2x64xf32>
    %787 = math.exp %786 : vector<2x64xf32>
    %cst_245 = arith.constant 1.000000e+00 : f32
    %788 = vector.broadcast %cst_245 : f32 to vector<2x64xf32>
    %789 = arith.addf %788, %787 : vector<2x64xf32>
    %790 = arith.divf %788, %789 : vector<2x64xf32>
    %791 = vector.extract_strided_slice %781 {offsets = [0, 64], sizes = [2, 64], strides = [1, 1]} : vector<2x192xf32> to vector<2x64xf32>
    %792 = vector.extract_strided_slice %782 {offsets = [0, 64], sizes = [2, 64], strides = [1, 1]} : vector<2x192xf32> to vector<2x64xf32>
    %793 = arith.addf %791, %792 : vector<2x64xf32>
    %794 = arith.negf %793 : vector<2x64xf32>
    %795 = math.exp %794 : vector<2x64xf32>
    %cst_246 = arith.constant 1.000000e+00 : f32
    %796 = vector.broadcast %cst_246 : f32 to vector<2x64xf32>
    %797 = arith.addf %796, %795 : vector<2x64xf32>
    %798 = arith.divf %796, %797 : vector<2x64xf32>
    %799 = vector.extract_strided_slice %781 {offsets = [0, 0], sizes = [2, 64], strides = [1, 1]} : vector<2x192xf32> to vector<2x64xf32>
    %800 = vector.extract_strided_slice %782 {offsets = [0, 0], sizes = [2, 64], strides = [1, 1]} : vector<2x192xf32> to vector<2x64xf32>
    %801 = arith.addf %800, %654 : vector<2x64xf32>
    %802 = arith.mulf %790, %801 : vector<2x64xf32>
    %803 = arith.addf %799, %802 : vector<2x64xf32>
    %804 = math.tanh %803 : vector<2x64xf32>
    %cst_247 = arith.constant 1.000000e+00 : f32
    %805 = vector.broadcast %cst_247 : f32 to vector<2x64xf32>
    %806 = arith.subf %805, %798 : vector<2x64xf32>
    %807 = arith.mulf %806, %804 : vector<2x64xf32>
    %808 = arith.mulf %798, %780 : vector<2x64xf32>
    %809 = arith.addf %807, %808 : vector<2x64xf32>
    %810 = vector.extract_strided_slice %662 {offsets = [10, 0], sizes = [2, 192], strides = [1, 1]} : vector<16x192xf32> to vector<2x192xf32>
    %cst_248 = arith.constant dense<0.000000e+00> : vector<2x192xf32>
    %811 = tpu.matmul %809, %650, %cst_248 {dimension_numbers = #tpu.dot_dimension_numbers<[1], [0], [0], [1], [0, 0, 1, 1], [], []>} : vector<2x64xf32>, vector<64x192xf32>, vector<2x192xf32> -> vector<2x192xf32>
    %812 = vector.extract_strided_slice %810 {offsets = [0, 128], sizes = [2, 64], strides = [1, 1]} : vector<2x192xf32> to vector<2x64xf32>
    %813 = vector.extract_strided_slice %811 {offsets = [0, 128], sizes = [2, 64], strides = [1, 1]} : vector<2x192xf32> to vector<2x64xf32>
    %814 = arith.addf %812, %813 : vector<2x64xf32>
    %815 = arith.negf %814 : vector<2x64xf32>
    %816 = math.exp %815 : vector<2x64xf32>
    %cst_249 = arith.constant 1.000000e+00 : f32
    %817 = vector.broadcast %cst_249 : f32 to vector<2x64xf32>
    %818 = arith.addf %817, %816 : vector<2x64xf32>
    %819 = arith.divf %817, %818 : vector<2x64xf32>
    %820 = vector.extract_strided_slice %810 {offsets = [0, 64], sizes = [2, 64], strides = [1, 1]} : vector<2x192xf32> to vector<2x64xf32>
    %821 = vector.extract_strided_slice %811 {offsets = [0, 64], sizes = [2, 64], strides = [1, 1]} : vector<2x192xf32> to vector<2x64xf32>
    %822 = arith.addf %820, %821 : vector<2x64xf32>
    %823 = arith.negf %822 : vector<2x64xf32>
    %824 = math.exp %823 : vector<2x64xf32>
    %cst_250 = arith.constant 1.000000e+00 : f32
    %825 = vector.broadcast %cst_250 : f32 to vector<2x64xf32>
    %826 = arith.addf %825, %824 : vector<2x64xf32>
    %827 = arith.divf %825, %826 : vector<2x64xf32>
    %828 = vector.extract_strided_slice %810 {offsets = [0, 0], sizes = [2, 64], strides = [1, 1]} : vector<2x192xf32> to vector<2x64xf32>
    %829 = vector.extract_strided_slice %811 {offsets = [0, 0], sizes = [2, 64], strides = [1, 1]} : vector<2x192xf32> to vector<2x64xf32>
    %830 = arith.addf %829, %654 : vector<2x64xf32>
    %831 = arith.mulf %819, %830 : vector<2x64xf32>
    %832 = arith.addf %828, %831 : vector<2x64xf32>
    %833 = math.tanh %832 : vector<2x64xf32>
    %cst_251 = arith.constant 1.000000e+00 : f32
    %834 = vector.broadcast %cst_251 : f32 to vector<2x64xf32>
    %835 = arith.subf %834, %827 : vector<2x64xf32>
    %836 = arith.mulf %835, %833 : vector<2x64xf32>
    %837 = arith.mulf %827, %809 : vector<2x64xf32>
    %838 = arith.addf %836, %837 : vector<2x64xf32>
    %839 = vector.extract_strided_slice %662 {offsets = [12, 0], sizes = [2, 192], strides = [1, 1]} : vector<16x192xf32> to vector<2x192xf32>
    %cst_252 = arith.constant dense<0.000000e+00> : vector<2x192xf32>
    %840 = tpu.matmul %838, %650, %cst_252 {dimension_numbers = #tpu.dot_dimension_numbers<[1], [0], [0], [1], [0, 0, 1, 1], [], []>} : vector<2x64xf32>, vector<64x192xf32>, vector<2x192xf32> -> vector<2x192xf32>
    %841 = vector.extract_strided_slice %839 {offsets = [0, 128], sizes = [2, 64], strides = [1, 1]} : vector<2x192xf32> to vector<2x64xf32>
    %842 = vector.extract_strided_slice %840 {offsets = [0, 128], sizes = [2, 64], strides = [1, 1]} : vector<2x192xf32> to vector<2x64xf32>
    %843 = arith.addf %841, %842 : vector<2x64xf32>
    %844 = arith.negf %843 : vector<2x64xf32>
    %845 = math.exp %844 : vector<2x64xf32>
    %cst_253 = arith.constant 1.000000e+00 : f32
    %846 = vector.broadcast %cst_253 : f32 to vector<2x64xf32>
    %847 = arith.addf %846, %845 : vector<2x64xf32>
    %848 = arith.divf %846, %847 : vector<2x64xf32>
    %849 = vector.extract_strided_slice %839 {offsets = [0, 64], sizes = [2, 64], strides = [1, 1]} : vector<2x192xf32> to vector<2x64xf32>
    %850 = vector.extract_strided_slice %840 {offsets = [0, 64], sizes = [2, 64], strides = [1, 1]} : vector<2x192xf32> to vector<2x64xf32>
    %851 = arith.addf %849, %850 : vector<2x64xf32>
    %852 = arith.negf %851 : vector<2x64xf32>
    %853 = math.exp %852 : vector<2x64xf32>
    %cst_254 = arith.constant 1.000000e+00 : f32
    %854 = vector.broadcast %cst_254 : f32 to vector<2x64xf32>
    %855 = arith.addf %854, %853 : vector<2x64xf32>
    %856 = arith.divf %854, %855 : vector<2x64xf32>
    %857 = vector.extract_strided_slice %839 {offsets = [0, 0], sizes = [2, 64], strides = [1, 1]} : vector<2x192xf32> to vector<2x64xf32>
    %858 = vector.extract_strided_slice %840 {offsets = [0, 0], sizes = [2, 64], strides = [1, 1]} : vector<2x192xf32> to vector<2x64xf32>
    %859 = arith.addf %858, %654 : vector<2x64xf32>
    %860 = arith.mulf %848, %859 : vector<2x64xf32>
    %861 = arith.addf %857, %860 : vector<2x64xf32>
    %862 = math.tanh %861 : vector<2x64xf32>
    %cst_255 = arith.constant 1.000000e+00 : f32
    %863 = vector.broadcast %cst_255 : f32 to vector<2x64xf32>
    %864 = arith.subf %863, %856 : vector<2x64xf32>
    %865 = arith.mulf %864, %862 : vector<2x64xf32>
    %866 = arith.mulf %856, %838 : vector<2x64xf32>
    %867 = arith.addf %865, %866 : vector<2x64xf32>
    %868 = vector.extract_strided_slice %662 {offsets = [14, 0], sizes = [2, 192], strides = [1, 1]} : vector<16x192xf32> to vector<2x192xf32>
    %cst_256 = arith.constant dense<0.000000e+00> : vector<2x192xf32>
    %869 = tpu.matmul %867, %650, %cst_256 {dimension_numbers = #tpu.dot_dimension_numbers<[1], [0], [0], [1], [0, 0, 1, 1], [], []>} : vector<2x64xf32>, vector<64x192xf32>, vector<2x192xf32> -> vector<2x192xf32>
    %870 = vector.extract_strided_slice %868 {offsets = [0, 128], sizes = [2, 64], strides = [1, 1]} : vector<2x192xf32> to vector<2x64xf32>
    %871 = vector.extract_strided_slice %869 {offsets = [0, 128], sizes = [2, 64], strides = [1, 1]} : vector<2x192xf32> to vector<2x64xf32>
    %872 = arith.addf %870, %871 : vector<2x64xf32>
    %873 = arith.negf %872 : vector<2x64xf32>
    %874 = math.exp %873 : vector<2x64xf32>
    %cst_257 = arith.constant 1.000000e+00 : f32
    %875 = vector.broadcast %cst_257 : f32 to vector<2x64xf32>
    %876 = arith.addf %875, %874 : vector<2x64xf32>
    %877 = arith.divf %875, %876 : vector<2x64xf32>
    %878 = vector.extract_strided_slice %868 {offsets = [0, 64], sizes = [2, 64], strides = [1, 1]} : vector<2x192xf32> to vector<2x64xf32>
    %879 = vector.extract_strided_slice %869 {offsets = [0, 64], sizes = [2, 64], strides = [1, 1]} : vector<2x192xf32> to vector<2x64xf32>
    %880 = arith.addf %878, %879 : vector<2x64xf32>
    %881 = arith.negf %880 : vector<2x64xf32>
    %882 = math.exp %881 : vector<2x64xf32>
    %cst_258 = arith.constant 1.000000e+00 : f32
    %883 = vector.broadcast %cst_258 : f32 to vector<2x64xf32>
    %884 = arith.addf %883, %882 : vector<2x64xf32>
    %885 = arith.divf %883, %884 : vector<2x64xf32>
    %886 = vector.extract_strided_slice %868 {offsets = [0, 0], sizes = [2, 64], strides = [1, 1]} : vector<2x192xf32> to vector<2x64xf32>
    %887 = vector.extract_strided_slice %869 {offsets = [0, 0], sizes = [2, 64], strides = [1, 1]} : vector<2x192xf32> to vector<2x64xf32>
    %888 = arith.addf %887, %654 : vector<2x64xf32>
    %889 = arith.mulf %877, %888 : vector<2x64xf32>
    %890 = arith.addf %886, %889 : vector<2x64xf32>
    %891 = math.tanh %890 : vector<2x64xf32>
    %cst_259 = arith.constant 1.000000e+00 : f32
    %892 = vector.broadcast %cst_259 : f32 to vector<2x64xf32>
    %893 = arith.subf %892, %885 : vector<2x64xf32>
    %894 = arith.mulf %893, %891 : vector<2x64xf32>
    %895 = arith.mulf %885, %867 : vector<2x64xf32>
    %896 = arith.addf %894, %895 : vector<2x64xf32>
    %897 = vector.extract_strided_slice %896 {offsets = [0, 0], sizes = [2, 32], strides = [1, 1]} : vector<2x64xf32> to vector<2x32xf32>
    %898 = tpu.concatenate %897, %693 in 1 : vector<2x32xf32>, vector<2x32xf32> -> vector<2x64xf32>
    %c0_260 = arith.constant 0 : index
    %c0_261 = arith.constant 0 : index
    %899 = vector.load %arg6[%c0_260, %c0_261] : memref<64x32xf32, #tpu.memory_space<vmem>>, vector<64x32xf32>
    %cst_262 = arith.constant dense<0.000000e+00> : vector<2x32xf32>
    %900 = tpu.matmul %898, %899, %cst_262 {dimension_numbers = #tpu.dot_dimension_numbers<[1], [0], [0], [1], [0, 0, 1, 1], [], []>} : vector<2x64xf32>, vector<64x32xf32>, vector<2x32xf32> -> vector<2x32xf32>
    %c0_263 = arith.constant 0 : index
    %c0_264 = arith.constant 0 : index
    %901 = vector.load %arg7[%c0_263, %c0_264] : memref<1x32xf32, #tpu.memory_space<vmem>>, vector<1x32xf32>
    %902 = vector.broadcast %901 : vector<1x32xf32> to vector<2x32xf32>
    %903 = arith.addf %900, %902 : vector<2x32xf32>
    %c0_265 = arith.constant 0 : index
    %c0_266 = arith.constant 0 : index
    %904 = vector.load %arg8[%c0_265, %c0_266] : memref<2x32xf32, #tpu.memory_space<vmem>>, vector<2x32xf32>
    tpu.vector_store %arg8[%c0_265, %c0_266], %903 {strides = array<i32>} : memref<2x32xf32, #tpu.memory_space<vmem>>, vector<2x32xf32>,
    return
  }
}

</mosaic_0001>

<bundles_post_ra>
// kernel: gru_encoder_forward.1
= control target key start
LH: loop header
LB: loop body
LE: loop exit
PB: predicated region body
PF: predicated region fallthrough
CT: control target
= control target key end

     0   :  { %v4199_v6 = vmov 0   ;;  %s5779_s0 = inlined_call_operand.vmem [shape: f32[2,8,1], index: 0, kind: input, shape index: {}]   ;;  %s5780_s1 = inlined_call_operand.vmem [shape: f32[2,192], index: 1, kind: input, shape index: {}]   ;;  %s5781_s2 = inlined_call_operand.vmem [shape: f32[2,128,192], index: 2, kind: input, shape index: {}]   ;;  %s5782_s3 = inlined_call_operand.vmem [shape: f32[3,64,192], index: 3, kind: input, shape index: {}]   ;;  %s5783_s4 = inlined_call_operand.vmem [shape: f32[3,1,192], index: 4, kind: input, shape index: {}]   ;;  %s5784_s5 = inlined_call_operand.vmem [shape: f32[3,1,64], index: 5, kind: input, shape index: {}]   ;;  %s5785_s6 = inlined_call_operand.vmem [shape: f32[64,32], index: 6, kind: input, shape index: {}]   ;;  %s5786_s7 = inlined_call_operand.vmem [shape: f32[1,32], index: 7, kind: input, shape index: {}]   ;;  %s5787_s8 = inlined_call_operand.hbm [shape: f32[2,32], index: 8, kind: output, shape index: {}]  }
   0x1   :  { %v4251_v0 = vld [vmem:[%s5782_s3 + $0x70] sm:$0xff]  ;;  %v4256_v1 = vld [vmem:[%s5782_s3 + $0x78] sm:$0xff]  ;;  %v4261_v2 = vld [vmem:[%s5782_s3 + $0x60] sm:$0xff]  ;;  %3830 = vset.pattern.permute.xlu0 %v4199_v6 }
   0x2   :  { %121 = vmatpush.msra.mxu0 %v4251_v0  ;;  %141 = vmatpush.msra.mxu1 %v4256_v1  ;;  %v4268_v3 = vld [vmem:[%s5782_s3 + $0x68] sm:$0xff]  ;;  %v4273_v4 = vld [vmem:[%s5782_s3 + $0x50] sm:$0xff]  ;;  %v4278_v5 = vld [vmem:[%s5782_s3 + $0x58] sm:$0xff] }
   0x3   :  { %311 = vmatpush.msra.mxu2 %v4251_v0  ;;  %v4286_v7 = vld [vmem:[%s5782_s3 + $0x40] sm:$0xff]  ;;  %v4291_v8 = vld [vmem:[%s5782_s3 + $0x48] sm:$0xff]  ;;  %331 = vmatpush.msra.mxu3 %v4256_v1  ;;  %v4303_v10 = vld [vmem:[%s5782_s3 + $0x30] sm:$0xff] }
   0x4   :  { %122 = vmatpush.msra.mxu0 %v4261_v2  ;;  %142 = vmatpush.msra.mxu1 %v4268_v3  ;;  %v31_v9 = vld [vmem:[%s5779_s0 + $0x8] sm:$0xff]  ;;  %v4308_v11 = vld [vmem:[%s5782_s3 + $0x38] sm:$0xff]  ;;  %v4316_v12 = vld [vmem:[%s5782_s3 + $0x20] sm:$0xff] }
   0x5   :  { %312 = vmatpush.msra.mxu2 %v4261_v2  ;;  %78 = vperm.xlu0 %3830, %v31_v9   ;;  %v4321_v13 = vld [vmem:[%s5782_s3 + $0x28] sm:$0xff] }
   0x6   :  { %123 = vmatpush.msra.mxu0 %v4273_v4  ;;  %143 = vmatpush.msra.mxu1 %v4278_v5 }
   0x7   :  { %332 = vmatpush.msra.mxu3 %v4268_v3  ;;  %313 = vmatpush.msra.mxu2 %v4273_v4 }
   0x8   :  { %124 = vmatpush.msra.mxu0 %v4286_v7  ;;  %144 = vmatpush.msra.mxu1 %v4291_v8 }
   0x9   :  { %333 = vmatpush.msra.mxu3 %v4278_v5 }
   0xa   :  { %125 = vmatpush.msra.mxu0 %v4303_v10  ;;  %145 = vmatpush.msra.mxu1 %v4308_v11 }
   0xb   :  { %13 = vsyncpa [#allocation5], 0  ;;  %v4330_v14 = vld [vmem:[%s5782_s3 + $0x10] sm:$0xff]  ;;  %v4335_v15 = vld [vmem:[%s5782_s3 + $0x18] sm:$0xff]  ;;  %314 = vmatpush.msra.mxu2 %v4286_v7  ;;  %334 = vmatpush.msra.mxu3 %v4291_v8  ;;  %v4200_v19 = vmov 0.0   ;;  %s4201_s25 = smov 64  }
   0xc   :  { %126 = vmatpush.msra.mxu0 %v4316_v12  ;;  %146 = vmatpush.msra.mxu1 %v4321_v13  ;;  %v30_v16 = vld [vmem:[%s5779_s0] sm:$0xff]  ;;  %v4352_v18 = vld [vmem:[%s5782_s3 + $0x8] sm:$0xff]  ;;  %s3641_s24 = sshll.u32 %s5787_s8, 4  ;;  %s3642_s24 = int_to_ptr.hbm [resolvable:$true] %s3641_s24 }
   0xd   :  { %v4347_v17 = vld [vmem:[%s5782_s3] sm:$0xff]  ;;  %315 = vmatpush.msra.mxu2 %v4303_v10  ;;  %335 = vmatpush.msra.mxu3 %v4308_v11 }
   0xe   :  { %127 = vmatpush.msra.mxu0 %v4330_v14  ;;  %147 = vmatpush.msra.mxu1 %v4335_v15  ;;  %v32_v20 = vld [vmem:[%s5780_s1] ss:$2 sm:$0x3]  ;;  %v3650_v21 = vld [vmem:[%s5780_s1 + $0x1] ss:$2 sm:$0x3] }
   0xf   :  { %73 = vperm.xlu0 %3830, %v30_v16   ;;  %316 = vmatpush.msra.mxu2 %v4316_v12  ;;  %v34_v22 = vperm.slane %v32_v20, 0  ;;  %v41_v23 = vperm.slane %v3650_v21, 0  ;;  %v42_v24 = vperm.slane %v3650_v21, 1  ;;  %v35_v25 = vperm.slane %v32_v20, 1  ;;  %v65_v27 = vld [vmem:[%s5783_s4] sm:$0x3] }
  0x10   :  { %128 = vmatpush.msra.mxu0 %v4347_v17  ;;  %148 = vmatpush.msra.mxu1 %v4352_v18  ;;  %v4432_v35 = vperm.slane %v65_v27, 0  ;;  %v68_v36 = vperm.slane %v65_v27, 1 }
  0x11   :  { %129 = vmatmul.f32.vlgmr.msra.gmra.mxu0 %v4200_v19  ;;  %149 = vmatmul.f32.vlgmr.msra.gmra.mxu1 %v4200_v19 }
  0x12   :  { %336 = vmatpush.msra.mxu3 %v4321_v13  ;;  %317 = vmatpush.msra.mxu2 %v4330_v14 }
  0x13   :  { %508 = vmatpush.msrb.mxu0 %v4251_v0  ;;  %528 = vmatpush.msrb.mxu1 %v4256_v1 }
  0x14   :  { %337 = vmatpush.msra.mxu3 %v4335_v15  ;;  %318 = vmatpush.msra.mxu2 %v4347_v17 }
  0x15   :  { %509 = vmatpush.msrb.mxu0 %v4261_v2  ;;  %529 = vmatpush.msrb.mxu1 %v4268_v3 }
  0x16   :  { %338 = vmatpush.msra.mxu3 %v4352_v18  ;;  %709 = vmatpush.msrb.mxu2 %v4251_v0 }
  0x17   :  { %510 = vmatpush.msrb.mxu0 %v4273_v4  ;;  %530 = vmatpush.msrb.mxu1 %v4278_v5 }
  0x18   :  { %729 = vmatpush.msrb.mxu3 %v4256_v1  ;;  %710 = vmatpush.msrb.mxu2 %v4261_v2 }
  0x19   :  { %511 = vmatpush.msrb.mxu0 %v4286_v7  ;;  %531 = vmatpush.msrb.mxu1 %v4291_v8 }
  0x1a   :  { %730 = vmatpush.msrb.mxu3 %v4268_v3  ;;  %711 = vmatpush.msrb.mxu2 %v4273_v4 }
  0x1b   :  { %512 = vmatpush.msrb.mxu0 %v4303_v10  ;;  %532 = vmatpush.msrb.mxu1 %v4308_v11 }
  0x1c   :  { %731 = vmatpush.msrb.mxu3 %v4278_v5  ;;  %712 = vmatpush.msrb.mxu2 %v4286_v7 }
  0x1d   :  { %513 = vmatpush.msrb.mxu0 %v4316_v12  ;;  %533 = vmatpush.msrb.mxu1 %v4321_v13 }
  0x1e   :  { %732 = vmatpush.msrb.mxu3 %v4291_v8  ;;  %713 = vmatpush.msrb.mxu2 %v4303_v10 }
  0x1f   :  { %514 = vmatpush.msrb.mxu0 %v4330_v14  ;;  %534 = vmatpush.msrb.mxu1 %v4335_v15 }
  0x20   :  { %733 = vmatpush.msrb.mxu3 %v4308_v11  ;;  %714 = vmatpush.msrb.mxu2 %v4316_v12 }
  0x21   :  { %515 = vmatpush.msrb.mxu0 %v4347_v17  ;;  %535 = vmatpush.msrb.mxu1 %v4352_v18 }
  0x22   :  { %734 = vmatpush.msrb.mxu3 %v4321_v13  ;;  %715 = vmatpush.msrb.mxu2 %v4330_v14 }
  0x23   :  { %894 = vmatpush.msra.mxu0 %v4251_v0  ;;  %914 = vmatpush.msra.mxu1 %v4256_v1 }
  0x24   :  { %735 = vmatpush.msrb.mxu3 %v4335_v15  ;;  %716 = vmatpush.msrb.mxu2 %v4347_v17 }
  0x25   :  { %895 = vmatpush.msra.mxu0 %v4261_v2  ;;  %915 = vmatpush.msra.mxu1 %v4268_v3 }
  0x26   :  { %736 = vmatpush.msrb.mxu3 %v4352_v18 }
  0x27   :  { %896 = vmatpush.msra.mxu0 %v4273_v4  ;;  %916 = vmatpush.msra.mxu1 %v4278_v5 }
  0x29   :  { %897 = vmatpush.msra.mxu0 %v4286_v7  ;;  %917 = vmatpush.msra.mxu1 %v4291_v8 }
  0x2b   :  { %898 = vmatpush.msra.mxu0 %v4303_v10  ;;  %918 = vmatpush.msra.mxu1 %v4308_v11 }
  0x2d   :  { %899 = vmatpush.msra.mxu0 %v4316_v12  ;;  %919 = vmatpush.msra.mxu1 %v4321_v13 }
  0x2f   :  { %900 = vmatpush.msra.mxu0 %v4330_v14  ;;  %920 = vmatpush.msra.mxu1 %v4335_v15 }
  0x31   :  { %901 = vmatpush.msra.mxu0 %v4347_v17  ;;  %921 = vmatpush.msra.mxu1 %v4352_v18 }
  0x77   :  { %v79_v26 = vpop.permute.xlu0 %78 }
  0x78   :  { %v4425_v28 = vmul.f32 %v79_v26, %v34_v22  ;;  %v4427_v29 = vmul.f32 %v79_v26, %v41_v23  ;;  %v88_v30 = vmul.f32 %v79_v26, %v42_v24  ;;  %v84_v31 = vmul.f32 %v79_v26, %v35_v25 }
  0x7a   :  { %v287_v32 = vrot.slane %v4427_v29, 5  ;;  %v480_v33 = vrot.slane %v4427_v29, 3  ;;  %v680_v34 = vrot.slane %v4427_v29, 1  ;;  %v288_v37 = vrot.slane %v88_v30, 5 }
  0x7b   :  { %v481_v38 = vrot.slane %v88_v30, 3  ;;  %v681_v39 = vrot.slane %v88_v30, 1  ;;  %v96_v20 = vrot.slane %v88_v30, 7 }
  0x7c   :  { %v488_v40 = vadd.f32 %v480_v33, %v4425_v28  ;;  %v688_v41 = vadd.f32 %v680_v34, %v4425_v28  ;;  %v295_v42 = vadd.f32 %v287_v32, %v4425_v28  ;;  %v296_v43 = vadd.f32 %v288_v37, %v84_v31 }
  0x7d   :  { %v489_v44 = vadd.f32 %v481_v38, %v84_v31  ;;  %v689_v45 = vadd.f32 %v681_v39, %v84_v31  ;;  %v104_v30 = vadd.f32 %v96_v20, %v84_v31 }
  0x7e   :  { %v4438_v46 = vadd.f32 %v295_v42, %v4432_v35  ;;  %v4441_v47 = vadd.f32 %v488_v40, %v4432_v35  ;;  %v4444_v48 = vadd.f32 %v688_v41, %v4432_v35  ;;  %v4446_v50 = vadd.f32 %v296_v43, %v68_v36 }
  0x7f   :  { %v4448_v51 = vadd.f32 %v489_v44, %v68_v36  ;;  %v4450_v52 = vadd.f32 %v689_v45, %v68_v36  ;;  %v4479_v39 = vadd.f32 %v104_v30, %v68_v36 }
  0x81   :  { %v74_v49 = vpop.permute.xlu0 %73 }
  0x82   :  { %v4452_v53 = vmul.f32 %v74_v49, %v34_v22  ;;  %v4454_v54 = vmul.f32 %v74_v49, %v41_v23  ;;  %v86_v55 = vmul.f32 %v74_v49, %v42_v24  ;;  %v82_v56 = vmul.f32 %v74_v49, %v35_v25 }
  0x84   :  { %v285_v57 = vrot.slane %v4454_v54, 5  ;;  %v478_v58 = vrot.slane %v4454_v54, 3  ;;  %v678_v59 = vrot.slane %v4454_v54, 1  ;;  %v94_v60 = vrot.slane %v86_v55, 7 }
  0x85   :  { %v286_v61 = vrot.slane %v86_v55, 5  ;;  %v479_v62 = vrot.slane %v86_v55, 3  ;;  %v679_v63 = vrot.slane %v86_v55, 1 }
  0x86   :  { %v293_v6 = vadd.f32 %v285_v57, %v4452_v53  ;;  %v486_v9 = vadd.f32 %v478_v58, %v4452_v53  ;;  %v686_v16 = vadd.f32 %v678_v59, %v4452_v53  ;;  %v102_v24 = vadd.f32 %v94_v60, %v82_v56 }
  0x87   :  { %v294_v21 = vadd.f32 %v286_v61, %v82_v56  ;;  %v487_v22 = vadd.f32 %v479_v62, %v82_v56  ;;  %v687_v23 = vadd.f32 %v679_v63, %v82_v56  ;;  %v95_v61 = vrot.slane %v4427_v29, 7 }
  0x88   :  { %v4463_v25 = vadd.f32 %v293_v6, %v4432_v35  ;;  %v4466_v26 = vadd.f32 %v486_v9, %v4432_v35  ;;  %v4469_v27 = vadd.f32 %v686_v16, %v4432_v35  ;;  %v4477_v37 = vadd.f32 %v102_v24, %v68_v36 }
  0x89   :  { %v4471_v32 = vadd.f32 %v294_v21, %v68_v36  ;;  %v4473_v33 = vadd.f32 %v487_v22, %v68_v36  ;;  %v4475_v34 = vadd.f32 %v687_v23, %v68_v36  ;;  %v4486_v36 = vld [vmem:[%s5784_s5] ss:$0 sm:$0xff]  ;;  %v103_v23 = vadd.f32 %v95_v61, %v4425_v28 }
  0x8e   :  { %v150_v38 = vpop.f32.mrf.mxu1  ;;  %v130_v62 = vpop.f32.mrf.mxu0 }
  0x8f   :  { %v154_v40 = vrot.slane %v150_v38, 1  ;;  %v157_v41 = vadd.f32 %v150_v38, %v4477_v37  ;;  %v241_v63 = vadd.f32 %v4486_v36, %v130_v62 }
  0x91   :  { %v158_v42 = vadd.f32 %v154_v40, %v4479_v39  ;;  %v3651_v43 = vmul.f32 -1.442695, %v157_v41  ;;  %v243_v30 = vrot.slane %v241_v63, 1 }
  0x93   :  { %v3652_v44 = vmul.f32 -1.442695, %v158_v42  ;;  %3835 = vpow2.f32 %v3651_v43  ;;  %v93_v42 = vrot.slane %v4454_v54, 7 }
  0x95   :  { %3837 = vpow2.f32 %v3652_v44 }
  0x99   :  { %v3836_v45 = vpop.eup %3835 }
  0x9a   :  { %v165_v49 = vadd.f32 1.0, %v3836_v45 }
  0x9b   :  { %v3838_v55 = vpop.eup %3837 }
  0x9c   :  { %v166_v56 = vadd.f32 1.0, %v3838_v55  ;;  %3839 = vrcp.f32 %v165_v49  ;;  %vm172_vm2 = vweird.f32 %v165_v49  ;;  %v178_v24 = vand.u32 2147483648, %v165_v49 }
  0x9d   :  { %v176_v29 = vand.u32 2147483647, %v165_v49  ;;  %v4499_v55 = vadd.f32 %v103_v23, %v4432_v35 }
  0x9e   :  { %3841 = vrcp.f32 %v166_v56  ;;  %v193_v16 = vand.u32 2147483648, %v166_v56  ;;  %v191_v22 = vand.u32 2147483647, %v166_v56  ;;  %vm187_vm4 = vweird.f32 %v166_v56 }
  0x9f   :  { %v179_v28 = vor.u32 1.1754944e-38, %v178_v24  ;;  %vm177_vm7 = vcmp.eq.f32.partialorder %v176_v29, 8.507059e+37 }
  0xa0   :  { %v194_v41 = vor.u32 1.1754944e-38, %v193_v16  ;;  %vm192_vm6 = vcmp.eq.f32.partialorder %v191_v22, 8.507059e+37 }
  0xa2   :  { %v3840_v31 = vpop.eup %3839 }
  0xa3   :  { %v168_v57 = vmul.f32 %v3840_v31, %v165_v49  ;;  %vm173_vm0 = vweird.f32 %v3840_v31  ;;  %v101_v49 = vadd.f32 %v93_v42, %v4452_v53 }
  0xa4   :  { %v3842_v58 = vpop.eup %3841  ;;  %vm4491_vm3 = vmor %vm172_vm2, %vm173_vm0  ;;  %vm271_vm0 = vcmask 1041409   ;;  %vm109_vm2 = vcmask 523264  }
  0xa5   :  { %v169_v59 = vsub.f32 1.0, %v168_v57  ;;  %v183_v60 = vmul.f32 %v3842_v58, %v166_v56  ;;  %vm188_vm1 = vweird.f32 %v3842_v58  ;;  %v4504_v54 = vadd.f32 %v101_v49, %v4432_v35 }
  0xa6   :  { %vm189_vm5 = vmor %vm187_vm4, %vm188_vm1  ;;  %vm276_vm1 = vcmask 254976   ;;  %vm281_vm4 = vcmask 779776  }
  0xa7   :  { %v170_v6 = vmul.f32 %v3840_v31, %v169_v59  ;;  %v184_v9 = vsub.f32 1.0, %v183_v60  ;;  %v201_v16 = vadd.f32 %v130_v62, %v4504_v54 }
  0xa9   :  { %v171_v20 = vadd.f32 %v3840_v31, %v170_v6  ;;  %v185_v21 = vmul.f32 %v3842_v58, %v184_v9  ;;  %v198_v6 = vrot.slane %v130_v62, 1 }
  0xab   :  { %v186_v40 = vadd.f32 %v3842_v58, %v185_v21  ;;  %v175_v43 = vsel %vm4491_vm3, %v3840_v31, %v171_v20  ;;  %v202_v53 = vadd.f32 %v198_v6, %v4499_v55  ;;  %vm278_vm3 = vcmask 517376  }
  0xac   :  { %v180_v59 = vsel %vm177_vm7, %v179_v28, %v175_v43 }
  0xad   :  { %v190_v44 = vsel %vm189_vm5, %v3842_v58, %v186_v40  ;;  %v246_v60 = vmul.f32 %v241_v63, %v180_v59  ;;  %v3654_v9 = vmul.f32 -1.442695, %v202_v53  ;;  %v3653_v63 = vmul.f32 -1.442695, %v201_v16 }
  0xae   :  { %v195_v45 = vsel %vm192_vm6, %v194_v41, %v190_v44  ;;  %vm283_vm5 = vcmask 1042176  }
  0xaf   :  { %v247_v57 = vmul.f32 %v243_v30, %v195_v45  ;;  %v248_v31 = vadd.f32 %v246_v60, %v4504_v54 }
  0xb1   :  { %v249_v56 = vadd.f32 %v247_v57, %v4499_v55 }
  0xb3   :  { %3843 = vtanh.f32 %v249_v56 }
  0xb4   :  { %3845 = vtanh.f32 %v248_v31 }
  0xb5   :  { %3847 = vpow2.f32 %v3654_v9 }
  0xb6   :  { %3849 = vpow2.f32 %v3653_v63 }
  0xb9   :  { %v3844_v58 = vpop.eup %3843 }
  0xba   :  { %258 = vrot.lane.b32.xlu1 %v3844_v58, %s4201_s25  ;;  %v3846_v61 = vpop.eup %3845 }
  0xbb   :  { %v3848_v35 = vpop.eup %3847 }
  0xbc   :  { %v210_v20 = vadd.f32 1.0, %v3848_v35  ;;  %v3850_v21 = vpop.eup %3849 }
  0xbd   :  { %v209_v22 = vadd.f32 1.0, %v3850_v21 }
  0xbe   :  { %3851 = vrcp.f32 %v210_v20  ;;  %v237_v43 = vand.u32 2147483648, %v210_v20  ;;  %vm231_vm9 = vweird.f32 %v210_v20  ;;  %v235_v62 = vand.u32 2147483647, %v210_v20 }
  0xbf   :  { %3853 = vrcp.f32 %v209_v22  ;;  %v222_v49 = vand.u32 2147483648, %v209_v22  ;;  %vm216_vm13 = vweird.f32 %v209_v22  ;;  %v220_v56 = vand.u32 2147483647, %v209_v22 }
  0xc0   :  { %v238_v45 = vor.u32 1.1754944e-38, %v237_v43  ;;  %vm236_vm11 = vcmp.eq.f32.partialorder %v235_v62, 8.507059e+37 }
  0xc1   :  { %vm221_vm15 = vcmp.eq.f32.partialorder %v220_v56, 8.507059e+37 }
  0xc2   :  { %256 = vrot.lane.b32.xlu1 %v3846_v61, %s4201_s25  ;;  %v223_v61 = vor.u32 1.1754944e-38, %v222_v49 }
  0xc4   :  { %v3852_v23 = vpop.eup %3851 }
  0xc5   :  { %v227_v24 = vmul.f32 %v3852_v23, %v210_v20  ;;  %v3854_v30 = vpop.eup %3853  ;;  %vm232_vm8 = vweird.f32 %v3852_v23 }
  0xc6   :  { %v212_v29 = vmul.f32 %v3854_v30, %v209_v22  ;;  %vm233_vm10 = vmor %vm231_vm9, %vm232_vm8  ;;  %vm217_vm12 = vweird.f32 %v3854_v30 }
  0xc7   :  { %v228_v38 = vsub.f32 1.0, %v227_v24  ;;  %vm218_vm14 = vmor %vm216_vm13, %vm217_vm12 }
  0xc8   :  { %v213_v41 = vsub.f32 1.0, %v212_v29 }
  0xc9   :  { %v229_v40 = vmul.f32 %v3852_v23, %v228_v38 }
  0xca   :  { %v214_v44 = vmul.f32 %v3854_v30, %v213_v41 }
  0xcb   :  { %v230_v42 = vadd.f32 %v3852_v23, %v229_v40 }
  0xcc   :  { %v215_v57 = vadd.f32 %v3854_v30, %v214_v44 }
  0xcd   :  { %v234_v28 = vsel %vm233_vm10, %v3852_v23, %v230_v42 }
  0xce   :  { %v239_v59 = vsel %vm236_vm11, %v238_v45, %v234_v28  ;;  %v219_v58 = vsel %vm218_vm14, %v3854_v30, %v215_v57 }
  0xcf   :  { %v253_v31 = vsub.f32 1.0, %v239_v59  ;;  %v224_v53 = vsel %vm221_vm15, %v223_v61, %v219_v58  ;;  %v265_v9 = vmul.f32 0.0, %v239_v59 }
  0xd0   :  { %v252_v63 = vsub.f32 1.0, %v224_v53  ;;  %v264_v21 = vmul.f32 0.0, %v224_v53 }
 0x12c   :  { %v259_v60 = vpop.permute.xlu1 %258 }
 0x12d   :  { %v263_v6 = vmul.f32 %v259_v60, %v253_v31 }
 0x12f   :  { %v4511_v16 = vadd.f32 %v265_v9, %v263_v6 }
 0x131   :  { %v270_v23 = vrot.slane %v4511_v16, 7 }
 0x134   :  { %v257_v35 = vpop.permute.xlu1 %256 }
 0x135   :  { %v262_v20 = vmul.f32 %v257_v35, %v252_v63 }
 0x137   :  { %v4514_v24 = vadd.f32 %v264_v21, %v262_v20 }
 0x139   :  { %v272_v22 = vsel %vm271_vm0, %v270_v23, %v4514_v24 }
 0x13a   :  { %273 = vrot.lane.b32.xlu2 %v272_v22, %s4201_s25 }
 0x194   :  { %v274_v30 = vpop.permute.xlu2 %273 }
 0x195   :  { %277 = vst.msk [vmem:[#allocation2] sm:$0x3] %vm276_vm1, %v274_v30  ;;  %3655 = vmatmul.msk.f32.vlgmr.msra.gmra.mxu2 %vm109_vm2, %v274_v30  ;;  %3656 = vmatmul.msk.f32.vlgmr.msra.gmra.mxu3 %vm109_vm2, %v274_v30 }
 0x196   :  { %279 = vst.msk [vmem:[#allocation2 + $0xe] sm:$0x3] %vm278_vm3, %v274_v30  ;;  %1079 = vmatpush.msra.mxu2 %v4251_v0  ;;  %1099 = vmatpush.msra.mxu3 %v4256_v1 }
 0x197   :  { %282 = vst.msk [vmem:[#allocation2 + $0xe] sm:$0x3] %vm281_vm4, %v272_v22 }
 0x198   :  { %1080 = vmatpush.msra.mxu2 %v4261_v2  ;;  %1100 = vmatpush.msra.mxu3 %v4268_v3  ;;  %284 = vst.msk [vmem:[#allocation2] sm:$0x3] %vm283_vm5, %v272_v22 }
 0x19a   :  { %1081 = vmatpush.msra.mxu2 %v4273_v4  ;;  %1101 = vmatpush.msra.mxu3 %v4278_v5 }
 0x19c   :  { %1082 = vmatpush.msra.mxu2 %v4286_v7  ;;  %1102 = vmatpush.msra.mxu3 %v4291_v8 }
 0x19e   :  { %1083 = vmatpush.msra.mxu2 %v4303_v10  ;;  %1103 = vmatpush.msra.mxu3 %v4308_v11 }
 0x1a0   :  { %1084 = vmatpush.msra.mxu2 %v4316_v12  ;;  %1104 = vmatpush.msra.mxu3 %v4321_v13 }
 0x1a2   :  { %1085 = vmatpush.msra.mxu2 %v4330_v14  ;;  %1105 = vmatpush.msra.mxu3 %v4335_v15 }
 0x1a4   :  { %1086 = vmatpush.msra.mxu2 %v4347_v17  ;;  %1106 = vmatpush.msra.mxu3 %v4352_v18 }
 0x218   :  { %v340_v38 = vpop.f32.mrf.mxu3  ;;  %v320_v56 = vpop.f32.mrf.mxu2 }
 0x219   :  { %v344_v29 = vrot.slane %v340_v38, 7  ;;  %v348_v40 = vadd.f32 %v340_v38, %v4446_v50  ;;  %v431_v9 = vadd.f32 %v4486_v36, %v320_v56 }
 0x21b   :  { %v347_v41 = vadd.f32 %v344_v29, %v4471_v32  ;;  %v3658_v42 = vmul.f32 -1.442695, %v348_v40 }
 0x21d   :  { %v3657_v43 = vmul.f32 -1.442695, %v347_v41  ;;  %3855 = vpow2.f32 %v3658_v42  ;;  %v433_v41 = vrot.slane %v431_v9, 7 }
 0x21f   :  { %3857 = vpow2.f32 %v3657_v43 }
 0x223   :  { %v3856_v62 = vpop.eup %3855 }
 0x224   :  { %v356_v44 = vadd.f32 1.0, %v3856_v62 }
 0x225   :  { %v3858_v28 = vpop.eup %3857 }
 0x226   :  { %v355_v45 = vadd.f32 1.0, %v3858_v28  ;;  %3859 = vrcp.f32 %v356_v44  ;;  %v383_v58 = vand.u32 2147483648, %v356_v44  ;;  %v381_v53 = vand.u32 2147483647, %v356_v44 }
 0x227   :  { %vm377_vm7 = vweird.f32 %v356_v44 }
 0x228   :  { %3861 = vrcp.f32 %v355_v45  ;;  %v368_v63 = vand.u32 2147483648, %v355_v45  ;;  %v366_v20 = vand.u32 2147483647, %v355_v45  ;;  %v384_v22 = vor.u32 1.1754944e-38, %v383_v58 }
 0x229   :  { %vm362_vm10 = vweird.f32 %v355_v45  ;;  %vm382_vm11 = vcmp.eq.f32.partialorder %v381_v53, 8.507059e+37 }
 0x22a   :  { %v369_v29 = vor.u32 1.1754944e-38, %v368_v63  ;;  %vm367_vm13 = vcmp.eq.f32.partialorder %v366_v20, 8.507059e+37 }
 0x22c   :  { %v3860_v57 = vpop.eup %3859 }
 0x22d   :  { %v373_v59 = vmul.f32 %v3860_v57, %v356_v44  ;;  %vm378_vm6 = vweird.f32 %v3860_v57 }
 0x22e   :  { %v3862_v49 = vpop.eup %3861  ;;  %vm379_vm9 = vmor %vm377_vm7, %vm378_vm6 }
 0x22f   :  { %v358_v60 = vmul.f32 %v3862_v49, %v355_v45  ;;  %v374_v31 = vsub.f32 1.0, %v373_v59  ;;  %vm363_vm8 = vweird.f32 %v3862_v49 }
 0x230   :  { %vm364_vm12 = vmor %vm362_vm10, %vm363_vm8 }
 0x231   :  { %v359_v61 = vsub.f32 1.0, %v358_v60  ;;  %v375_v6 = vmul.f32 %v3860_v57, %v374_v31 }
 0x233   :  { %v360_v35 = vmul.f32 %v3862_v49, %v359_v61  ;;  %v376_v21 = vadd.f32 %v3860_v57, %v375_v6 }
 0x235   :  { %v361_v30 = vadd.f32 %v3862_v49, %v360_v35  ;;  %v380_v38 = vsel %vm379_vm9, %v3860_v57, %v376_v21  ;;  %v388_v57 = vrot.slane %v320_v56, 7 }
 0x236   :  { %v385_v40 = vsel %vm382_vm11, %v384_v22, %v380_v38 }
 0x237   :  { %v437_v42 = vmul.f32 %v431_v9, %v385_v40  ;;  %v365_v43 = vsel %vm364_vm12, %v3862_v49, %v361_v30  ;;  %v391_v31 = vadd.f32 %v388_v57, %v4463_v25  ;;  %v392_v49 = vadd.f32 %v320_v56, %v4438_v46 }
 0x238   :  { %v370_v62 = vsel %vm367_vm13, %v369_v29, %v365_v43 }
 0x239   :  { %v439_v44 = vadd.f32 %v437_v42, %v4438_v46  ;;  %v436_v28 = vmul.f32 %v433_v41, %v370_v62  ;;  %v3659_v58 = vmul.f32 -1.442695, %v391_v31  ;;  %v3660_v61 = vmul.f32 -1.442695, %v392_v49 }
 0x23a   :  { %v454_v49 = vrot.slane %v4514_v24, 7 }
 0x23b   :  { %3863 = vtanh.f32 %v439_v44  ;;  %v438_v59 = vadd.f32 %v436_v28, %v4463_v25 }
 0x23d   :  { %3865 = vtanh.f32 %v438_v59 }
 0x23e   :  { %3867 = vpow2.f32 %v3659_v58 }
 0x23f   :  { %3869 = vpow2.f32 %v3660_v61 }
 0x241   :  { %v3864_v60 = vpop.eup %3863 }
 0x242   :  { %448 = vrot.lane.b32.xlu0 %v3864_v60, %s4201_s25 }
 0x243   :  { %v3866_v45 = vpop.eup %3865 }
 0x244   :  { %446 = vrot.lane.b32.xlu2 %v3866_v45, %s4201_s25  ;;  %v3868_v6 = vpop.eup %3867 }
 0x245   :  { %v399_v53 = vadd.f32 1.0, %v3868_v6  ;;  %v3870_v9 = vpop.eup %3869 }
 0x246   :  { %v400_v63 = vadd.f32 1.0, %v3870_v9 }
 0x247   :  { %3871 = vrcp.f32 %v399_v53  ;;  %v412_v41 = vand.u32 2147483648, %v399_v53  ;;  %vm406_vm15 = vweird.f32 %v399_v53  ;;  %v410_v56 = vand.u32 2147483647, %v399_v53 }
 0x248   :  { %3873 = vrcp.f32 %v400_v63  ;;  %v427_v59 = vand.u32 2147483648, %v400_v63  ;;  %vm421_vm9 = vweird.f32 %v400_v63  ;;  %v425_v60 = vand.u32 2147483647, %v400_v63 }
 0x249   :  { %v413_v62 = vor.u32 1.1754944e-38, %v412_v41  ;;  %vm411_vm7 = vcmp.eq.f32.partialorder %v410_v56, 8.507059e+37 }
 0x24a   :  { %v428_v58 = vor.u32 1.1754944e-38, %v427_v59  ;;  %vm426_vm11 = vcmp.eq.f32.partialorder %v425_v60, 8.507059e+37 }
 0x24d   :  { %v3872_v35 = vpop.eup %3871 }
 0x24e   :  { %v402_v20 = vmul.f32 %v3872_v35, %v399_v53  ;;  %v3874_v21 = vpop.eup %3873  ;;  %vm407_vm14 = vweird.f32 %v3872_v35 }
 0x24f   :  { %v417_v30 = vmul.f32 %v3874_v21, %v400_v63  ;;  %vm408_vm6 = vmor %vm406_vm15, %vm407_vm14  ;;  %vm422_vm8 = vweird.f32 %v3874_v21 }
 0x250   :  { %v403_v22 = vsub.f32 1.0, %v402_v20  ;;  %vm423_vm10 = vmor %vm421_vm9, %vm422_vm8 }
 0x251   :  { %v418_v29 = vsub.f32 1.0, %v417_v30 }
 0x252   :  { %v404_v38 = vmul.f32 %v3872_v35, %v403_v22 }
 0x253   :  { %v419_v42 = vmul.f32 %v3874_v21, %v418_v29 }
 0x254   :  { %v405_v40 = vadd.f32 %v3872_v35, %v404_v38 }
 0x255   :  { %v420_v44 = vadd.f32 %v3874_v21, %v419_v42 }
 0x256   :  { %v409_v43 = vsel %vm408_vm6, %v3872_v35, %v405_v40 }
 0x257   :  { %v414_v28 = vsel %vm411_vm7, %v413_v62, %v409_v43  ;;  %v424_v31 = vsel %vm423_vm10, %v3874_v21, %v420_v44 }
 0x258   :  { %v442_v57 = vsub.f32 1.0, %v414_v28  ;;  %v429_v6 = vsel %vm426_vm11, %v428_v58, %v424_v31  ;;  %v457_v53 = vmul.f32 %v454_v49, %v414_v28 }
 0x259   :  { %v443_v35 = vsub.f32 1.0, %v429_v6  ;;  %v458_v30 = vmul.f32 %v429_v6, %v270_v23 }
 0x29e   :  { %v447_v45 = vpop.permute.xlu2 %446 }
 0x29f   :  { %v452_v61 = vmul.f32 %v447_v45, %v442_v57 }
 0x2a1   :  { %v4553_v9 = vadd.f32 %v457_v53, %v452_v61 }
 0x2a3   :  { %v494_v38 = vrot.slane %v4553_v9, 1 }
 0x2b4   :  { %v449_v20 = vpop.permute.xlu0 %448 }
 0x2b5   :  { %v453_v22 = vmul.f32 %v449_v20, %v443_v35 }
 0x2b7   :  { %v4557_v63 = vadd.f32 %v458_v30, %v453_v22 }
 0x2b9   :  { %v495_v21 = vsel %vm271_vm0, %v4557_v63, %v494_v38 }
 0x2ba   :  { %496 = vrot.lane.b32.xlu1 %v495_v21, %s4201_s25 }
 0x32c   :  { %v497_v24 = vpop.permute.xlu1 %496 }
 0x32d   :  { %3661 = vmatmul.msk.f32.vlgmr.msrb.gmra.mxu0 %vm109_vm2, %v497_v24  ;;  %3662 = vmatmul.msk.f32.vlgmr.msrb.gmra.mxu1 %vm109_vm2, %v497_v24 }
 0x32e   :  { %1264 = vmatpush.msrb.mxu0 %v4251_v0  ;;  %1284 = vmatpush.msrb.mxu1 %v4256_v1 }
 0x330   :  { %1265 = vmatpush.msrb.mxu0 %v4261_v2  ;;  %1285 = vmatpush.msrb.mxu1 %v4268_v3 }
 0x332   :  { %1266 = vmatpush.msrb.mxu0 %v4273_v4  ;;  %1286 = vmatpush.msrb.mxu1 %v4278_v5 }
 0x334   :  { %1267 = vmatpush.msrb.mxu0 %v4286_v7  ;;  %1287 = vmatpush.msrb.mxu1 %v4291_v8 }
 0x336   :  { %1268 = vmatpush.msrb.mxu0 %v4303_v10  ;;  %1288 = vmatpush.msrb.mxu1 %v4308_v11 }
 0x338   :  { %1269 = vmatpush.msrb.mxu0 %v4316_v12  ;;  %1289 = vmatpush.msrb.mxu1 %v4321_v13 }
 0x33a   :  { %1270 = vmatpush.msrb.mxu0 %v4330_v14  ;;  %1290 = vmatpush.msrb.mxu1 %v4335_v15 }
 0x33c   :  { %1271 = vmatpush.msrb.mxu0 %v4347_v17  ;;  %1291 = vmatpush.msrb.mxu1 %v4352_v18 }
 0x3aa   :  { %v537_v0 = vpop.f32.mrf.mxu1  ;;  %v517_v15 = vpop.f32.mrf.mxu0 }
 0x3ab   :  { %v541_v1 = vrot.slane %v537_v0, 6  ;;  %v542_v2 = vrot.slane %v537_v0, 7  ;;  %v630_v23 = vadd.f32 %v4486_v36, %v517_v15  ;;  %v586_v38 = vrot.slane %v517_v15, 6 }
 0x3ac   :  { %v587_v21 = vrot.slane %v517_v15, 7 }
 0x3ad   :  { %v545_v3 = vadd.f32 %v541_v1, %v4473_v33  ;;  %v546_v4 = vadd.f32 %v542_v2, %v4448_v51  ;;  %v632_v60 = vrot.slane %v630_v23, 6  ;;  %v633_v31 = vrot.slane %v630_v23, 7 }
 0x3ae   :  { %v590_v24 = vadd.f32 %v586_v38, %v4466_v26  ;;  %v591_v0 = vadd.f32 %v587_v21, %v4441_v47 }
 0x3af   :  { %v3663_v5 = vmul.f32 -1.442695, %v545_v3  ;;  %v3664_v7 = vmul.f32 -1.442695, %v546_v4 }
 0x3b0   :  { %v3665_v1 = vmul.f32 -1.442695, %v590_v24  ;;  %v3666_v2 = vmul.f32 -1.442695, %v591_v0  ;;  %v4155_v24 = vld [vmem:[%s5782_s3 + $0x70] sm:$0xff]  ;;  %v4156_v0 = vld [vmem:[%s5782_s3 + $0x78] sm:$0xff] }
 0x3b1   :  { %3875 = vpow2.f32 %v3663_v5 }
 0x3b2   :  { %3877 = vpow2.f32 %v3664_v7 }
 0x3b7   :  { %v3876_v8 = vpop.eup %3875 }
 0x3b8   :  { %v3878_v10 = vpop.eup %3877  ;;  %v553_v11 = vadd.f32 1.0, %v3876_v8 }
 0x3b9   :  { %v554_v12 = vadd.f32 1.0, %v3878_v10 }
 0x3ba   :  { %3879 = vrcp.f32 %v553_v11  ;;  %v566_v29 = vand.u32 2147483648, %v553_v11  ;;  %v564_v56 = vand.u32 2147483647, %v553_v11  ;;  %vm560_vm14 = vweird.f32 %v553_v11 }
 0x3bb   :  { %3881 = vrcp.f32 %v554_v12  ;;  %v581_v42 = vand.u32 2147483648, %v554_v12  ;;  %v579_v62 = vand.u32 2147483647, %v554_v12  ;;  %vm575_vm6 = vweird.f32 %v554_v12 }
 0x3bc   :  { %v567_v28 = vor.u32 1.1754944e-38, %v566_v29  ;;  %vm565_vm7 = vcmp.eq.f32.partialorder %v564_v56, 8.507059e+37 }
 0x3bd   :  { %v582_v45 = vor.u32 1.1754944e-38, %v581_v42  ;;  %vm580_vm9 = vcmp.eq.f32.partialorder %v579_v62, 8.507059e+37 }
 0x3c0   :  { %v3880_v13 = vpop.eup %3879 }
 0x3c1   :  { %v3882_v14 = vpop.eup %3881  ;;  %v556_v17 = vmul.f32 %v3880_v13, %v553_v11  ;;  %vm561_vm12 = vweird.f32 %v3880_v13 }
 0x3c2   :  { %v571_v18 = vmul.f32 %v3882_v14, %v554_v12  ;;  %vm576_vm13 = vweird.f32 %v3882_v14  ;;  %vm562_vm15 = vmor %vm560_vm14, %vm561_vm12 }
 0x3c3   :  { %v557_v16 = vsub.f32 1.0, %v556_v17  ;;  %vm577_vm8 = vmor %vm575_vm6, %vm576_vm13 }
 0x3c4   :  { %v572_v40 = vsub.f32 1.0, %v571_v18 }
 0x3c5   :  { %v558_v41 = vmul.f32 %v3880_v13, %v557_v16 }
 0x3c6   :  { %v573_v43 = vmul.f32 %v3882_v14, %v572_v40 }
 0x3c7   :  { %v559_v44 = vadd.f32 %v3880_v13, %v558_v41 }
 0x3c8   :  { %v574_v59 = vadd.f32 %v3882_v14, %v573_v43 }
 0x3c9   :  { %v563_v57 = vsel %vm562_vm15, %v3880_v13, %v559_v44 }
 0x3ca   :  { %v578_v58 = vsel %vm577_vm8, %v3882_v14, %v574_v59  ;;  %v568_v49 = vsel %vm565_vm7, %v567_v28, %v563_v57 }
 0x3cb   :  { %v583_v61 = vsel %vm580_vm9, %v582_v45, %v578_v58  ;;  %v636_v6 = vmul.f32 %v632_v60, %v568_v49  ;;  %v654_v45 = vrot.slane %v4553_v9, 7 }
 0x3cc   :  { %v637_v53 = vmul.f32 %v633_v31, %v583_v61  ;;  %v463_v31 = vrot.slane %v4557_v63, 7 }
 0x3cd   :  { %v638_v35 = vadd.f32 %v636_v6, %v4466_v26 }
 0x3ce   :  { %v639_v20 = vadd.f32 %v637_v53, %v4441_v47 }
 0x3cf   :  { %3883 = vtanh.f32 %v638_v35 }
 0x3d0   :  { %3885 = vtanh.f32 %v639_v20 }
 0x3d1   :  { %3887 = vpow2.f32 %v3665_v1  ;;  %v4157_v1 = vld [vmem:[%s5782_s3 + $0x60] sm:$0xff] }
 0x3d2   :  { %3889 = vpow2.f32 %v3666_v2  ;;  %v4158_v2 = vld [vmem:[%s5782_s3 + $0x68] sm:$0xff] }
 0x3d5   :  { %v3884_v22 = vpop.eup %3883 }
 0x3d6   :  { %v3886_v30 = vpop.eup %3885  ;;  %646 = vrot.lane.b32.xlu2 %v3884_v22, %s4201_s25 }
 0x3d7   :  { %648 = vrot.lane.b32.xlu0 %v3886_v30, %s4201_s25  ;;  %v3888_v3 = vpop.eup %3887 }
 0x3d8   :  { %v598_v4 = vadd.f32 1.0, %v3888_v3  ;;  %v3890_v5 = vpop.eup %3889  ;;  %v4159_v3 = vld [vmem:[%s5782_s3 + $0x50] sm:$0xff] }
 0x3d9   :  { %v599_v7 = vadd.f32 1.0, %v3890_v5  ;;  %v4161_v5 = vld [vmem:[%s5782_s3 + $0x40] sm:$0xff] }
 0x3da   :  { %3891 = vrcp.f32 %v598_v4  ;;  %v611_v16 = vand.u32 2147483648, %v598_v4  ;;  %vm605_vm11 = vweird.f32 %v598_v4  ;;  %v609_v23 = vand.u32 2147483647, %v598_v4 }
 0x3db   :  { %3893 = vrcp.f32 %v599_v7  ;;  %v626_v56 = vand.u32 2147483648, %v599_v7  ;;  %vm620_vm15 = vweird.f32 %v599_v7  ;;  %v624_v42 = vand.u32 2147483647, %v599_v7 }
 0x3dc   :  { %v612_v41 = vor.u32 1.1754944e-38, %v611_v16  ;;  %vm610_vm14 = vcmp.eq.f32.partialorder %v609_v23, 8.507059e+37 }
 0x3dd   :  { %v627_v28 = vor.u32 1.1754944e-38, %v626_v56  ;;  %vm625_vm7 = vcmp.eq.f32.partialorder %v624_v42, 8.507059e+37 }
 0x3e0   :  { %v3892_v8 = vpop.eup %3891 }
 0x3e1   :  { %v601_v10 = vmul.f32 %v3892_v8, %v598_v4  ;;  %v3894_v11 = vpop.eup %3893  ;;  %vm606_vm10 = vweird.f32 %v3892_v8  ;;  %v4160_v4 = vld [vmem:[%s5782_s3 + $0x58] sm:$0xff] }
 0x3e2   :  { %v616_v13 = vmul.f32 %v3894_v11, %v599_v7  ;;  %vm607_vm12 = vmor %vm605_vm11, %vm606_vm10  ;;  %vm621_vm13 = vweird.f32 %v3894_v11  ;;  %v4162_v7 = vld [vmem:[%s5782_s3 + $0x48] sm:$0xff] }
 0x3e3   :  { %v602_v12 = vsub.f32 1.0, %v601_v10  ;;  %vm622_vm6 = vmor %vm620_vm15, %vm621_vm13  ;;  %v4164_v10 = vld [vmem:[%s5782_s3 + $0x38] sm:$0xff] }
 0x3e4   :  { %v617_v15 = vsub.f32 1.0, %v616_v13  ;;  %v4167_v13 = vld [vmem:[%s5782_s3 + $0x10] sm:$0xff] }
 0x3e5   :  { %v603_v14 = vmul.f32 %v3892_v8, %v602_v12  ;;  %v4166_v12 = vld [vmem:[%s5782_s3 + $0x28] sm:$0xff] }
 0x3e6   :  { %v618_v18 = vmul.f32 %v3894_v11, %v617_v15  ;;  %v4169_v15 = vld [vmem:[%s5782_s3] sm:$0xff] }
 0x3e7   :  { %v604_v17 = vadd.f32 %v3892_v8, %v603_v14  ;;  %v4168_v14 = vld [vmem:[%s5782_s3 + $0x18] sm:$0xff] }
 0x3e8   :  { %v619_v40 = vadd.f32 %v3894_v11, %v618_v18 }
 0x3e9   :  { %v608_v29 = vsel %vm607_vm12, %v3892_v8, %v604_v17  ;;  %v4163_v8 = vld [vmem:[%s5782_s3 + $0x30] sm:$0xff]  ;;  %v4170_v17 = vld [vmem:[%s5782_s3 + $0x8] sm:$0xff] }
 0x3ea   :  { %v613_v43 = vsel %vm610_vm14, %v612_v41, %v608_v29  ;;  %v623_v62 = vsel %vm622_vm6, %v3894_v11, %v619_v40  ;;  %v4165_v11 = vld [vmem:[%s5782_s3 + $0x20] sm:$0xff] }
 0x3eb   :  { %v642_v59 = vsub.f32 1.0, %v613_v43  ;;  %v628_v60 = vsel %vm625_vm7, %v627_v28, %v623_v62  ;;  %v657_v58 = vmul.f32 %v654_v45, %v613_v43 }
 0x3ec   :  { %v643_v49 = vsub.f32 1.0, %v628_v60  ;;  %v658_v35 = vmul.f32 %v628_v60, %v463_v31 }
 0x430   :  { %v647_v44 = vpop.permute.xlu2 %646 }
 0x431   :  { %v652_v57 = vmul.f32 %v647_v44, %v642_v59 }
 0x433   :  { %v4592_v6 = vadd.f32 %v657_v58, %v652_v57 }
 0x435   :  { %v694_v30 = vrot.slane %v4592_v6, 2 }
 0x449   :  { %v649_v61 = vpop.permute.xlu0 %648 }
 0x44a   :  { %v653_v53 = vmul.f32 %v649_v61, %v643_v49 }
 0x44c   :  { %v4596_v20 = vadd.f32 %v658_v35, %v653_v53 }
 0x44e   :  { %v695_v22 = vrot.slane %v4596_v20, 1 }
 0x450   :  { %v696_v38 = vsel %vm271_vm0, %v695_v22, %v694_v30 }
 0x451   :  { %697 = vrot.lane.b32.xlu1 %v696_v38, %s4201_s25 }
 0x4c3   :  { %v698_v21 = vpop.permute.xlu1 %697 }
 0x4c4   :  { %3667 = vmatmul.msk.f32.vlgmr.msrb.gmra.mxu2 %vm109_vm2, %v698_v21  ;;  %3668 = vmatmul.msk.f32.vlgmr.msrb.gmra.mxu3 %vm109_vm2, %v698_v21 }
 0x4c5   :  { %1449 = vmatpush.msrb.mxu2 %v4155_v24  ;;  %1469 = vmatpush.msrb.mxu3 %v4156_v0 }
 0x4c7   :  { %1450 = vmatpush.msrb.mxu2 %v4157_v1  ;;  %1470 = vmatpush.msrb.mxu3 %v4158_v2 }
 0x4c9   :  { %1451 = vmatpush.msrb.mxu2 %v4159_v3  ;;  %1471 = vmatpush.msrb.mxu3 %v4160_v4 }
 0x4cb   :  { %1452 = vmatpush.msrb.mxu2 %v4161_v5  ;;  %1472 = vmatpush.msrb.mxu3 %v4162_v7 }
 0x4cd   :  { %1453 = vmatpush.msrb.mxu2 %v4163_v8  ;;  %1473 = vmatpush.msrb.mxu3 %v4164_v10 }
 0x4cf   :  { %1454 = vmatpush.msrb.mxu2 %v4165_v11  ;;  %1474 = vmatpush.msrb.mxu3 %v4166_v12 }
 0x4d1   :  { %1455 = vmatpush.msrb.mxu2 %v4167_v13  ;;  %1475 = vmatpush.msrb.mxu3 %v4168_v14 }
 0x4d3   :  { %1456 = vmatpush.msrb.mxu2 %v4169_v15  ;;  %1476 = vmatpush.msrb.mxu3 %v4170_v17 }
 0x547   :  { %v738_v18 = vpop.f32.mrf.mxu3  ;;  %v718_v60 = vpop.f32.mrf.mxu2 }
 0x548   :  { %v742_v16 = vrot.slane %v738_v18, 5  ;;  %v743_v23 = vrot.slane %v738_v18, 6  ;;  %v831_v49 = vadd.f32 %v4486_v36, %v718_v60  ;;  %v787_v17 = vrot.slane %v718_v60, 5 }
 0x549   :  { %v788_v18 = vrot.slane %v718_v60, 6 }
 0x54a   :  { %v746_v29 = vadd.f32 %v742_v16, %v4475_v34  ;;  %v747_v40 = vadd.f32 %v743_v23, %v4450_v52  ;;  %v833_v2 = vrot.slane %v831_v49, 5  ;;  %v834_v4 = vrot.slane %v831_v49, 6 }
 0x54b   :  { %v791_v16 = vadd.f32 %v787_v17, %v4469_v27  ;;  %v792_v23 = vadd.f32 %v788_v18, %v4444_v48 }
 0x54c   :  { %v3669_v41 = vmul.f32 -1.442695, %v746_v29  ;;  %v3670_v56 = vmul.f32 -1.442695, %v747_v40 }
 0x54d   :  { %v3671_v29 = vmul.f32 -1.442695, %v791_v16  ;;  %v3672_v40 = vmul.f32 -1.442695, %v792_v23 }
 0x54e   :  { %3895 = vpow2.f32 %v3669_v41 }
 0x54f   :  { %3897 = vpow2.f32 %v3670_v56 }
 0x554   :  { %v3896_v42 = vpop.eup %3895 }
 0x555   :  { %v3898_v43 = vpop.eup %3897  ;;  %v754_v62 = vadd.f32 1.0, %v3896_v42 }
 0x556   :  { %v755_v44 = vadd.f32 1.0, %v3898_v43 }
 0x557   :  { %3899 = vrcp.f32 %v754_v62  ;;  %v767_v61 = vand.u32 2147483648, %v754_v62  ;;  %v765_v22 = vand.u32 2147483647, %v754_v62  ;;  %vm761_vm10 = vweird.f32 %v754_v62 }
 0x558   :  { %3901 = vrcp.f32 %v755_v44  ;;  %v782_v30 = vand.u32 2147483648, %v755_v44  ;;  %v780_v21 = vand.u32 2147483647, %v755_v44  ;;  %vm776_vm12 = vweird.f32 %v755_v44 }
 0x559   :  { %v768_v0 = vor.u32 1.1754944e-38, %v767_v61  ;;  %vm766_vm13 = vcmp.eq.f32.partialorder %v765_v22, 8.507059e+37 }
 0x55a   :  { %v783_v3 = vor.u32 1.1754944e-38, %v782_v30  ;;  %vm781_vm15 = vcmp.eq.f32.partialorder %v780_v21, 8.507059e+37 }
 0x55d   :  { %v3900_v28 = vpop.eup %3899 }
 0x55e   :  { %v3902_v59 = vpop.eup %3901  ;;  %v757_v45 = vmul.f32 %v3900_v28, %v754_v62  ;;  %vm762_vm8 = vweird.f32 %v3900_v28 }
 0x55f   :  { %v772_v57 = vmul.f32 %v3902_v59, %v755_v44  ;;  %vm777_vm9 = vweird.f32 %v3902_v59  ;;  %vm763_vm11 = vmor %vm761_vm10, %vm762_vm8 }
 0x560   :  { %v758_v58 = vsub.f32 1.0, %v757_v45  ;;  %vm778_vm14 = vmor %vm776_vm12, %vm777_vm9 }
 0x561   :  { %v773_v53 = vsub.f32 1.0, %v772_v57 }
 0x562   :  { %v759_v35 = vmul.f32 %v3900_v28, %v758_v58 }
 0x563   :  { %v774_v38 = vmul.f32 %v3902_v59, %v773_v53 }
 0x564   :  { %v760_v24 = vadd.f32 %v3900_v28, %v759_v35 }
 0x565   :  { %v775_v1 = vadd.f32 %v3902_v59, %v774_v38 }
 0x566   :  { %v764_v36 = vsel %vm763_vm11, %v3900_v28, %v760_v24 }
 0x567   :  { %v779_v5 = vsel %vm778_vm14, %v3902_v59, %v775_v1  ;;  %v769_v7 = vsel %vm766_vm13, %v768_v0, %v764_v36 }
 0x568   :  { %v784_v8 = vsel %vm781_vm15, %v783_v3, %v779_v5  ;;  %v837_v10 = vmul.f32 %v833_v2, %v769_v7  ;;  %v663_v7 = vrot.slane %v4596_v20, 7 }
 0x569   :  { %v838_v11 = vmul.f32 %v834_v4, %v784_v8  ;;  %v855_v4 = vrot.slane %v4592_v6, 7 }
 0x56a   :  { %v839_v12 = vadd.f32 %v837_v10, %v4469_v27 }
 0x56b   :  { %v840_v13 = vadd.f32 %v838_v11, %v4444_v48 }
 0x56c   :  { %3903 = vtanh.f32 %v839_v12 }
 0x56d   :  { %3905 = vtanh.f32 %v840_v13 }
 0x56e   :  { %3907 = vpow2.f32 %v3671_v29 }
 0x56f   :  { %3909 = vpow2.f32 %v3672_v40 }
 0x572   :  { %v3904_v14 = vpop.eup %3903 }
 0x573   :  { %v3906_v15 = vpop.eup %3905  ;;  %847 = vrot.lane.b32.xlu2 %v3904_v14, %s4201_s25 }
 0x574   :  { %849 = vrot.lane.b32.xlu0 %v3906_v15, %s4201_s25  ;;  %v3908_v41 = vpop.eup %3907 }
 0x575   :  { %v799_v56 = vadd.f32 1.0, %v3908_v41  ;;  %v3910_v42 = vpop.eup %3909 }
 0x576   :  { %v800_v43 = vadd.f32 1.0, %v3910_v42 }
 0x577   :  { %3911 = vrcp.f32 %v799_v56  ;;  %v812_v61 = vand.u32 2147483648, %v799_v56  ;;  %vm806_vm7 = vweird.f32 %v799_v56  ;;  %v810_v53 = vand.u32 2147483647, %v799_v56 }
 0x578   :  { %3913 = vrcp.f32 %v800_v43  ;;  %v827_v38 = vand.u32 2147483648, %v800_v43  ;;  %vm821_vm11 = vweird.f32 %v800_v43  ;;  %v825_v21 = vand.u32 2147483647, %v800_v43 }
 0x579   :  { %v813_v30 = vor.u32 1.1754944e-38, %v812_v61  ;;  %vm811_vm10 = vcmp.eq.f32.partialorder %v810_v53, 8.507059e+37 }
 0x57a   :  { %v828_v2 = vor.u32 1.1754944e-38, %v827_v38  ;;  %vm826_vm13 = vcmp.eq.f32.partialorder %v825_v21, 8.507059e+37 }
 0x57d   :  { %v3912_v62 = vpop.eup %3911 }
 0x57e   :  { %v802_v44 = vmul.f32 %v3912_v62, %v799_v56  ;;  %v3914_v28 = vpop.eup %3913  ;;  %vm807_vm6 = vweird.f32 %v3912_v62 }
 0x57f   :  { %v817_v45 = vmul.f32 %v3914_v28, %v800_v43  ;;  %vm808_vm8 = vmor %vm806_vm7, %vm807_vm6  ;;  %vm822_vm9 = vweird.f32 %v3914_v28 }
 0x580   :  { %v803_v59 = vsub.f32 1.0, %v802_v44  ;;  %vm823_vm12 = vmor %vm821_vm11, %vm822_vm9 }
 0x581   :  { %v818_v57 = vsub.f32 1.0, %v817_v45 }
 0x582   :  { %v804_v60 = vmul.f32 %v3912_v62, %v803_v59 }
 0x583   :  { %v819_v49 = vmul.f32 %v3914_v28, %v818_v57 }
 0x584   :  { %v805_v58 = vadd.f32 %v3912_v62, %v804_v60 }
 0x585   :  { %v820_v22 = vadd.f32 %v3914_v28, %v819_v49 }
 0x586   :  { %v809_v35 = vsel %vm808_vm8, %v3912_v62, %v805_v58 }
 0x587   :  { %v814_v24 = vsel %vm811_vm10, %v813_v30, %v809_v35  ;;  %v824_v0 = vsel %vm823_vm12, %v3914_v28, %v820_v22 }
 0x588   :  { %v843_v3 = vsub.f32 1.0, %v814_v24  ;;  %v829_v36 = vsel %vm826_vm13, %v828_v2, %v824_v0  ;;  %v858_v8 = vmul.f32 %v855_v4, %v814_v24 }
 0x589   :  { %v844_v10 = vsub.f32 1.0, %v829_v36  ;;  %v859_v14 = vmul.f32 %v829_v36, %v663_v7 }
 0x5cd   :  { %v848_v1 = vpop.permute.xlu2 %847 }
 0x5ce   :  { %v853_v5 = vmul.f32 %v848_v1, %v843_v3 }
 0x5d0   :  { %v4663_v12 = vadd.f32 %v858_v8, %v853_v5 }
 0x5d2   :  { %v879_v18 = vrot.slane %v4663_v12, 3 }
 0x5e6   :  { %v850_v11 = vpop.permute.xlu0 %849 }
 0x5e7   :  { %v854_v13 = vmul.f32 %v850_v11, %v844_v10 }
 0x5e9   :  { %v4667_v15 = vadd.f32 %v859_v14, %v854_v13 }
 0x5eb   :  { %v880_v17 = vrot.slane %v4667_v15, 2 }
 0x5ed   :  { %v881_v16 = vsel %vm271_vm0, %v880_v17, %v879_v18 }
 0x5ee   :  { %882 = vrot.lane.b32.xlu1 %v881_v16, %s4201_s25 }
 0x660   :  { %v883_v23 = vpop.permute.xlu1 %882 }
 0x661   :  { %3673 = vmatmul.msk.f32.vlgmr.msra.gmra.mxu0 %vm109_vm2, %v883_v23  ;;  %3674 = vmatmul.msk.f32.vlgmr.msra.gmra.mxu1 %vm109_vm2, %v883_v23 }
 0x6de   :  { %v923_v29 = vpop.f32.mrf.mxu1  ;;  %v903_v58 = vpop.f32.mrf.mxu0 }
 0x6df   :  { %v927_v40 = vrot.slane %v923_v29, 4  ;;  %v928_v41 = vrot.slane %v923_v29, 5 }
 0x6e1   :  { %v931_v56 = vadd.f32 %v927_v40, %v4477_v37  ;;  %v932_v42 = vadd.f32 %v928_v41, %v4479_v39  ;;  %v4680_v37 = vld [vmem:[%s5784_s5] ss:$0 sm:$0xff]  ;;  %v972_v40 = vrot.slane %v903_v58, 4  ;;  %v973_v41 = vrot.slane %v903_v58, 5 }
 0x6e2   :  { %v1016_v39 = vadd.f32 %v4680_v37, %v903_v58 }
 0x6e3   :  { %v3675_v43 = vmul.f32 -1.442695, %v931_v56  ;;  %v3676_v62 = vmul.f32 -1.442695, %v932_v42  ;;  %v976_v56 = vadd.f32 %v972_v40, %v4504_v54  ;;  %v977_v42 = vadd.f32 %v973_v41, %v4499_v55 }
 0x6e4   :  { %v1018_v36 = vrot.slane %v1016_v39, 4  ;;  %v1019_v8 = vrot.slane %v1016_v39, 5 }
 0x6e5   :  { %3915 = vpow2.f32 %v3675_v43  ;;  %v3677_v43 = vmul.f32 -1.442695, %v976_v56 }
 0x6e6   :  { %3917 = vpow2.f32 %v3676_v62  ;;  %v3678_v62 = vmul.f32 -1.442695, %v977_v42 }
 0x6eb   :  { %v3916_v44 = vpop.eup %3915 }
 0x6ec   :  { %v3918_v28 = vpop.eup %3917  ;;  %v939_v59 = vadd.f32 1.0, %v3916_v44 }
 0x6ed   :  { %v940_v45 = vadd.f32 1.0, %v3918_v28 }
 0x6ee   :  { %3919 = vrcp.f32 %v939_v59  ;;  %v952_v35 = vand.u32 2147483648, %v939_v59  ;;  %v950_v38 = vand.u32 2147483647, %v939_v59  ;;  %vm946_vm6 = vweird.f32 %v939_v59 }
 0x6ef   :  { %3921 = vrcp.f32 %v940_v45  ;;  %v967_v21 = vand.u32 2147483648, %v940_v45  ;;  %v965_v0 = vand.u32 2147483647, %v940_v45  ;;  %vm961_vm8 = vweird.f32 %v940_v45 }
 0x6f0   :  { %v953_v2 = vor.u32 1.1754944e-38, %v952_v35  ;;  %vm951_vm9 = vcmp.eq.f32.partialorder %v950_v38, 8.507059e+37 }
 0x6f1   :  { %v968_v4 = vor.u32 1.1754944e-38, %v967_v21  ;;  %vm966_vm11 = vcmp.eq.f32.partialorder %v965_v0, 8.507059e+37 }
 0x6f4   :  { %v3920_v60 = vpop.eup %3919 }
 0x6f5   :  { %v3922_v57 = vpop.eup %3921  ;;  %v942_v49 = vmul.f32 %v3920_v60, %v939_v59  ;;  %vm947_vm14 = vweird.f32 %v3920_v60 }
 0x6f6   :  { %v957_v61 = vmul.f32 %v3922_v57, %v940_v45  ;;  %vm962_vm15 = vweird.f32 %v3922_v57  ;;  %vm948_vm7 = vmor %vm946_vm6, %vm947_vm14 }
 0x6f7   :  { %v943_v53 = vsub.f32 1.0, %v942_v49  ;;  %vm963_vm10 = vmor %vm961_vm8, %vm962_vm15 }
 0x6f8   :  { %v958_v22 = vsub.f32 1.0, %v957_v61 }
 0x6f9   :  { %v944_v30 = vmul.f32 %v3920_v60, %v943_v53 }
 0x6fa   :  { %v959_v24 = vmul.f32 %v3922_v57, %v958_v22 }
 0x6fb   :  { %v945_v1 = vadd.f32 %v3920_v60, %v944_v30 }
 0x6fc   :  { %v960_v3 = vadd.f32 %v3922_v57, %v959_v24 }
 0x6fd   :  { %v949_v5 = vsel %vm948_vm7, %v3920_v60, %v945_v1 }
 0x6fe   :  { %v964_v10 = vsel %vm963_vm10, %v3922_v57, %v960_v3  ;;  %v954_v11 = vsel %vm951_vm9, %v953_v2, %v949_v5 }
 0x6ff   :  { %v969_v13 = vsel %vm966_vm11, %v968_v4, %v964_v10  ;;  %v1022_v14 = vmul.f32 %v1018_v36, %v954_v11  ;;  %v864_v11 = vrot.slane %v4667_v15, 7 }
 0x700   :  { %v1023_v17 = vmul.f32 %v1019_v8, %v969_v13  ;;  %v1040_v8 = vrot.slane %v4663_v12, 7 }
 0x701   :  { %v1024_v18 = vadd.f32 %v1022_v14, %v4504_v54 }
 0x702   :  { %v1025_v16 = vadd.f32 %v1023_v17, %v4499_v55 }
 0x703   :  { %3923 = vtanh.f32 %v1024_v18 }
 0x704   :  { %3925 = vtanh.f32 %v1025_v16 }
 0x705   :  { %3927 = vpow2.f32 %v3677_v43 }
 0x706   :  { %3929 = vpow2.f32 %v3678_v62 }
 0x709   :  { %v3924_v23 = vpop.eup %3923 }
 0x70a   :  { %v3926_v29 = vpop.eup %3925  ;;  %1032 = vrot.lane.b32.xlu2 %v3924_v23, %s4201_s25 }
 0x70b   :  { %1034 = vrot.lane.b32.xlu0 %v3926_v29, %s4201_s25  ;;  %v3928_v44 = vpop.eup %3927 }
 0x70c   :  { %v984_v28 = vadd.f32 1.0, %v3928_v44  ;;  %v3930_v59 = vpop.eup %3929 }
 0x70d   :  { %v985_v45 = vadd.f32 1.0, %v3930_v59 }
 0x70e   :  { %3931 = vrcp.f32 %v984_v28  ;;  %v997_v35 = vand.u32 2147483648, %v984_v28  ;;  %vm991_vm13 = vweird.f32 %v984_v28  ;;  %v995_v22 = vand.u32 2147483647, %v984_v28 }
 0x70f   :  { %3933 = vrcp.f32 %v985_v45  ;;  %v1012_v24 = vand.u32 2147483648, %v985_v45  ;;  %vm1006_vm7 = vweird.f32 %v985_v45  ;;  %v1010_v0 = vand.u32 2147483647, %v985_v45 }
 0x710   :  { %v998_v21 = vor.u32 1.1754944e-38, %v997_v35  ;;  %vm996_vm6 = vcmp.eq.f32.partialorder %v995_v22, 8.507059e+37 }
 0x711   :  { %v1013_v36 = vor.u32 1.1754944e-38, %v1012_v24  ;;  %vm1011_vm9 = vcmp.eq.f32.partialorder %v1010_v0, 8.507059e+37 }
 0x714   :  { %v3932_v60 = vpop.eup %3931 }
 0x715   :  { %v987_v57 = vmul.f32 %v3932_v60, %v984_v28  ;;  %v3934_v49 = vpop.eup %3933  ;;  %vm992_vm12 = vweird.f32 %v3932_v60 }
 0x716   :  { %v1002_v53 = vmul.f32 %v3934_v49, %v985_v45  ;;  %vm993_vm14 = vmor %vm991_vm13, %vm992_vm12  ;;  %vm1007_vm15 = vweird.f32 %v3934_v49 }
 0x717   :  { %v988_v61 = vsub.f32 1.0, %v987_v57  ;;  %vm1008_vm8 = vmor %vm1006_vm7, %vm1007_vm15 }
 0x718   :  { %v1003_v39 = vsub.f32 1.0, %v1002_v53 }
 0x719   :  { %v989_v58 = vmul.f32 %v3932_v60, %v988_v61 }
 0x71a   :  { %v1004_v55 = vmul.f32 %v3934_v49, %v1003_v39 }
 0x71b   :  { %v990_v54 = vadd.f32 %v3932_v60, %v989_v58 }
 0x71c   :  { %v1005_v38 = vadd.f32 %v3934_v49, %v1004_v55 }
 0x71d   :  { %v994_v30 = vsel %vm993_vm14, %v3932_v60, %v990_v54 }
 0x71e   :  { %v999_v1 = vsel %vm996_vm6, %v998_v21, %v994_v30  ;;  %v1009_v2 = vsel %vm1008_vm8, %v3934_v49, %v1005_v38 }
 0x71f   :  { %v1028_v4 = vsub.f32 1.0, %v999_v1  ;;  %v1014_v5 = vsel %vm1011_vm9, %v1013_v36, %v1009_v2  ;;  %v1043_v13 = vmul.f32 %v1040_v8, %v999_v1 }
 0x720   :  { %v1029_v14 = vsub.f32 1.0, %v1014_v5  ;;  %v1044_v23 = vmul.f32 %v1014_v5, %v864_v11 }
 0x764   :  { %v1033_v3 = vpop.permute.xlu2 %1032 }
 0x765   :  { %v1038_v10 = vmul.f32 %v1033_v3, %v1028_v4 }
 0x767   :  { %v4691_v18 = vadd.f32 %v1043_v13, %v1038_v10 }
 0x769   :  { %v1064_v41 = vrot.slane %v4691_v18, 4 }
 0x77d   :  { %v1035_v17 = vpop.permute.xlu0 %1034 }
 0x77e   :  { %v1039_v16 = vmul.f32 %v1035_v17, %v1029_v14 }
 0x780   :  { %v4695_v29 = vadd.f32 %v1044_v23, %v1039_v16 }
 0x782   :  { %v1065_v40 = vrot.slane %v4695_v29, 3 }
 0x784   :  { %v1066_v56 = vsel %vm271_vm0, %v1065_v40, %v1064_v41 }
 0x785   :  { %1067 = vrot.lane.b32.xlu1 %v1066_v56, %s4201_s25 }
 0x7f7   :  { %v1068_v42 = vpop.permute.xlu1 %1067 }
 0x7f8   :  { %3679 = vmatmul.msk.f32.vlgmr.msra.gmra.mxu2 %vm109_vm2, %v1068_v42  ;;  %3680 = vmatmul.msk.f32.vlgmr.msra.gmra.mxu3 %vm109_vm2, %v1068_v42 }
 0x87b   :  { %v1108_v43 = vpop.f32.mrf.mxu3  ;;  %v1088_v54 = vpop.f32.mrf.mxu2 }
 0x87c   :  { %v1112_v62 = vrot.slane %v1108_v43, 3  ;;  %v1113_v44 = vrot.slane %v1108_v43, 4  ;;  %v1157_v43 = vrot.slane %v1088_v54, 3 }
 0x87e   :  { %v1116_v28 = vadd.f32 %v1112_v62, %v4471_v32  ;;  %v1117_v59 = vadd.f32 %v1113_v44, %v4446_v50  ;;  %v1201_v32 = vadd.f32 %v4680_v37, %v1088_v54  ;;  %v1158_v62 = vrot.slane %v1088_v54, 4 }
 0x87f   :  { %v1161_v44 = vadd.f32 %v1157_v43, %v4463_v25 }
 0x880   :  { %v3681_v45 = vmul.f32 -1.442695, %v1116_v28  ;;  %v3682_v60 = vmul.f32 -1.442695, %v1117_v59  ;;  %v1203_v4 = vrot.slane %v1201_v32, 3  ;;  %v1204_v10 = vrot.slane %v1201_v32, 4 }
 0x881   :  { %v1162_v28 = vadd.f32 %v1158_v62, %v4438_v46  ;;  %v3683_v59 = vmul.f32 -1.442695, %v1161_v44 }
 0x882   :  { %3935 = vpow2.f32 %v3681_v45 }
 0x883   :  { %3937 = vpow2.f32 %v3682_v60  ;;  %v3684_v45 = vmul.f32 -1.442695, %v1162_v28 }
 0x888   :  { %v3936_v57 = vpop.eup %3935 }
 0x889   :  { %v3938_v49 = vpop.eup %3937  ;;  %v1124_v61 = vadd.f32 1.0, %v3936_v57 }
 0x88a   :  { %v1125_v53 = vadd.f32 1.0, %v3938_v49 }
 0x88b   :  { %3939 = vrcp.f32 %v1124_v61  ;;  %v1137_v30 = vand.u32 2147483648, %v1124_v61  ;;  %v1135_v21 = vand.u32 2147483647, %v1124_v61  ;;  %vm1131_vm12 = vweird.f32 %v1124_v61 }
 0x88c   :  { %3941 = vrcp.f32 %v1125_v53  ;;  %v1152_v24 = vand.u32 2147483648, %v1125_v53  ;;  %v1150_v1 = vand.u32 2147483647, %v1125_v53  ;;  %vm1146_vm14 = vweird.f32 %v1125_v53 }
 0x88d   :  { %v1138_v3 = vor.u32 1.1754944e-38, %v1137_v30  ;;  %vm1136_vm15 = vcmp.eq.f32.partialorder %v1135_v21, 8.507059e+37 }
 0x88e   :  { %v1153_v5 = vor.u32 1.1754944e-38, %v1152_v24  ;;  %vm1151_vm7 = vcmp.eq.f32.partialorder %v1150_v1, 8.507059e+37 }
 0x891   :  { %v3940_v58 = vpop.eup %3939 }
 0x892   :  { %v3942_v39 = vpop.eup %3941  ;;  %v1127_v55 = vmul.f32 %v3940_v58, %v1124_v61  ;;  %vm1132_vm10 = vweird.f32 %v3940_v58 }
 0x893   :  { %v1142_v35 = vmul.f32 %v3942_v39, %v1125_v53  ;;  %vm1147_vm11 = vweird.f32 %v3942_v39  ;;  %vm1133_vm13 = vmor %vm1131_vm12, %vm1132_vm10 }
 0x894   :  { %v1128_v22 = vsub.f32 1.0, %v1127_v55  ;;  %vm1148_vm6 = vmor %vm1146_vm14, %vm1147_vm11 }
 0x895   :  { %v1143_v50 = vsub.f32 1.0, %v1142_v35 }
 0x896   :  { %v1129_v38 = vmul.f32 %v3940_v58, %v1128_v22 }
 0x897   :  { %v1144_v0 = vmul.f32 %v3942_v39, %v1143_v50 }
 0x898   :  { %v1130_v2 = vadd.f32 %v3940_v58, %v1129_v38 }
 0x899   :  { %v1145_v36 = vadd.f32 %v3942_v39, %v1144_v0 }
 0x89a   :  { %v1134_v8 = vsel %vm1133_vm13, %v3940_v58, %v1130_v2 }
 0x89b   :  { %v1149_v13 = vsel %vm1148_vm6, %v3942_v39, %v1145_v36  ;;  %v1139_v14 = vsel %vm1136_vm15, %v1138_v3, %v1134_v8  ;;  %v1225_v8 = vrot.slane %v4691_v18, 7 }
 0x89c   :  { %v1154_v17 = vsel %vm1151_vm7, %v1153_v5, %v1149_v13  ;;  %v1207_v16 = vmul.f32 %v1203_v4, %v1139_v14  ;;  %v1049_v13 = vrot.slane %v4695_v29, 7 }
 0x89d   :  { %v1208_v23 = vmul.f32 %v1204_v10, %v1154_v17 }
 0x89e   :  { %v1209_v40 = vadd.f32 %v1207_v16, %v4463_v25 }
 0x89f   :  { %v1210_v41 = vadd.f32 %v1208_v23, %v4438_v46 }
 0x8a0   :  { %3943 = vtanh.f32 %v1209_v40 }
 0x8a1   :  { %3945 = vtanh.f32 %v1210_v41 }
 0x8a2   :  { %3947 = vpow2.f32 %v3683_v59 }
 0x8a3   :  { %3949 = vpow2.f32 %v3684_v45 }
 0x8a6   :  { %v3944_v56 = vpop.eup %3943 }
 0x8a7   :  { %v3946_v42 = vpop.eup %3945  ;;  %1217 = vrot.lane.b32.xlu2 %v3944_v56, %s4201_s25 }
 0x8a8   :  { %1219 = vrot.lane.b32.xlu0 %v3946_v42, %s4201_s25  ;;  %v3948_v60 = vpop.eup %3947 }
 0x8a9   :  { %v1169_v57 = vadd.f32 1.0, %v3948_v60  ;;  %v3950_v49 = vpop.eup %3949 }
 0x8aa   :  { %v1170_v61 = vadd.f32 1.0, %v3950_v49 }
 0x8ab   :  { %3951 = vrcp.f32 %v1169_v57  ;;  %v1182_v32 = vand.u32 2147483648, %v1169_v57  ;;  %vm1176_vm9 = vweird.f32 %v1169_v57  ;;  %v1180_v30 = vand.u32 2147483647, %v1169_v57 }
 0x8ac   :  { %3953 = vrcp.f32 %v1170_v61  ;;  %v1197_v24 = vand.u32 2147483648, %v1170_v61  ;;  %vm1191_vm13 = vweird.f32 %v1170_v61  ;;  %v1195_v0 = vand.u32 2147483647, %v1170_v61 }
 0x8ad   :  { %v1183_v21 = vor.u32 1.1754944e-38, %v1182_v32  ;;  %vm1181_vm12 = vcmp.eq.f32.partialorder %v1180_v30, 8.507059e+37 }
 0x8ae   :  { %v1198_v36 = vor.u32 1.1754944e-38, %v1197_v24  ;;  %vm1196_vm15 = vcmp.eq.f32.partialorder %v1195_v0, 8.507059e+37 }
 0x8b1   :  { %v3952_v53 = vpop.eup %3951 }
 0x8b2   :  { %v1172_v58 = vmul.f32 %v3952_v53, %v1169_v57  ;;  %v3954_v39 = vpop.eup %3953  ;;  %vm1177_vm8 = vweird.f32 %v3952_v53 }
 0x8b3   :  { %v1187_v35 = vmul.f32 %v3954_v39, %v1170_v61  ;;  %vm1178_vm10 = vmor %vm1176_vm9, %vm1177_vm8  ;;  %vm1192_vm11 = vweird.f32 %v3954_v39 }
 0x8b4   :  { %v1173_v55 = vsub.f32 1.0, %v1172_v58  ;;  %vm1193_vm14 = vmor %vm1191_vm13, %vm1192_vm11 }
 0x8b5   :  { %v1188_v22 = vsub.f32 1.0, %v1187_v35 }
 0x8b6   :  { %v1174_v54 = vmul.f32 %v3952_v53, %v1173_v55 }
 0x8b7   :  { %v1189_v46 = vmul.f32 %v3954_v39, %v1188_v22 }
 0x8b8   :  { %v1175_v25 = vadd.f32 %v3952_v53, %v1174_v54 }
 0x8b9   :  { %v1190_v38 = vadd.f32 %v3954_v39, %v1189_v46 }
 0x8ba   :  { %v1179_v50 = vsel %vm1178_vm10, %v3952_v53, %v1175_v25 }
 0x8bb   :  { %v1184_v1 = vsel %vm1181_vm12, %v1183_v21, %v1179_v50  ;;  %v1194_v2 = vsel %vm1193_vm14, %v3954_v39, %v1190_v38 }
 0x8bc   :  { %v1213_v4 = vsub.f32 1.0, %v1184_v1  ;;  %v1199_v5 = vsel %vm1196_vm15, %v1198_v36, %v1194_v2  ;;  %v1228_v14 = vmul.f32 %v1225_v8, %v1184_v1 }
 0x8bd   :  { %v1214_v17 = vsub.f32 1.0, %v1199_v5  ;;  %v1229_v41 = vmul.f32 %v1199_v5, %v1049_v13 }
 0x901   :  { %v1218_v3 = vpop.permute.xlu2 %1217 }
 0x902   :  { %v1223_v10 = vmul.f32 %v1218_v3, %v1213_v4 }
 0x904   :  { %v4714_v23 = vadd.f32 %v1228_v14, %v1223_v10 }
 0x906   :  { %v1249_v43 = vrot.slane %v4714_v23, 5 }
 0x91a   :  { %v1220_v16 = vpop.permute.xlu0 %1219 }
 0x91b   :  { %v1224_v40 = vmul.f32 %v1220_v16, %v1214_v17 }
 0x91d   :  { %v4718_v56 = vadd.f32 %v1229_v41, %v1224_v40 }
 0x91f   :  { %v1250_v42 = vrot.slane %v4718_v56, 4 }
 0x921   :  { %v1251_v62 = vsel %vm271_vm0, %v1250_v42, %v1249_v43 }
 0x922   :  { %1252 = vrot.lane.b32.xlu1 %v1251_v62, %s4201_s25 }
 0x994   :  { %v1253_v44 = vpop.permute.xlu1 %1252 }
 0x995   :  { %3685 = vmatmul.msk.f32.vlgmr.msrb.gmra.mxu0 %vm109_vm2, %v1253_v44  ;;  %3686 = vmatmul.msk.f32.vlgmr.msrb.gmra.mxu1 %vm109_vm2, %v1253_v44 }
 0xa12   :  { %v1293_v28 = vpop.f32.mrf.mxu1  ;;  %v1273_v22 = vpop.f32.mrf.mxu0 }
 0xa13   :  { %v1297_v59 = vrot.slane %v1293_v28, 2  ;;  %v1298_v45 = vrot.slane %v1293_v28, 3  ;;  %v1342_v44 = vrot.slane %v1273_v22, 2  ;;  %v1343_v28 = vrot.slane %v1273_v22, 3 }
 0xa15   :  { %v1301_v60 = vadd.f32 %v1297_v59, %v4473_v33  ;;  %v1302_v57 = vadd.f32 %v1298_v45, %v4448_v51  ;;  %v1386_v33 = vadd.f32 %v4680_v37, %v1273_v22  ;;  %v1346_v59 = vadd.f32 %v1342_v44, %v4466_v26 }
 0xa16   :  { %v1347_v45 = vadd.f32 %v1343_v28, %v4441_v47 }
 0xa17   :  { %v3687_v49 = vmul.f32 -1.442695, %v1301_v60  ;;  %v3688_v61 = vmul.f32 -1.442695, %v1302_v57  ;;  %v1388_v36 = vrot.slane %v1386_v33, 2  ;;  %v1389_v8 = vrot.slane %v1386_v33, 3 }
 0xa18   :  { %v3689_v60 = vmul.f32 -1.442695, %v1346_v59  ;;  %v3690_v57 = vmul.f32 -1.442695, %v1347_v45 }
 0xa19   :  { %3955 = vpow2.f32 %v3687_v49 }
 0xa1a   :  { %3957 = vpow2.f32 %v3688_v61 }
 0xa1f   :  { %v3956_v53 = vpop.eup %3955 }
 0xa20   :  { %v3958_v58 = vpop.eup %3957  ;;  %v1309_v39 = vadd.f32 1.0, %v3956_v53 }
 0xa21   :  { %v1310_v55 = vadd.f32 1.0, %v3958_v58 }
 0xa22   :  { %3959 = vrcp.f32 %v1309_v39  ;;  %v1322_v30 = vand.u32 2147483648, %v1309_v39  ;;  %v1320_v38 = vand.u32 2147483647, %v1309_v39  ;;  %vm1316_vm8 = vweird.f32 %v1309_v39 }
 0xa23   :  { %3961 = vrcp.f32 %v1310_v55  ;;  %v1337_v21 = vand.u32 2147483648, %v1310_v55  ;;  %v1335_v0 = vand.u32 2147483647, %v1310_v55  ;;  %vm1331_vm10 = vweird.f32 %v1310_v55 }
 0xa24   :  { %v1323_v2 = vor.u32 1.1754944e-38, %v1322_v30  ;;  %vm1321_vm11 = vcmp.eq.f32.partialorder %v1320_v38, 8.507059e+37 }
 0xa25   :  { %v1338_v4 = vor.u32 1.1754944e-38, %v1337_v21  ;;  %vm1336_vm13 = vcmp.eq.f32.partialorder %v1335_v0, 8.507059e+37 }
 0xa28   :  { %v3960_v35 = vpop.eup %3959 }
 0xa29   :  { %v3962_v54 = vpop.eup %3961  ;;  %v1312_v25 = vmul.f32 %v3960_v35, %v1309_v39  ;;  %vm1317_vm6 = vweird.f32 %v3960_v35 }
 0xa2a   :  { %v1327_v46 = vmul.f32 %v3962_v54, %v1310_v55  ;;  %vm1332_vm7 = vweird.f32 %v3962_v54  ;;  %vm1318_vm9 = vmor %vm1316_vm8, %vm1317_vm6 }
 0xa2b   :  { %v1313_v32 = vsub.f32 1.0, %v1312_v25  ;;  %vm1333_vm12 = vmor %vm1331_vm10, %vm1332_vm7 }
 0xa2c   :  { %v1328_v51 = vsub.f32 1.0, %v1327_v46 }
 0xa2d   :  { %v1314_v50 = vmul.f32 %v3960_v35, %v1313_v32 }
 0xa2e   :  { %v1329_v24 = vmul.f32 %v3962_v54, %v1328_v51 }
 0xa2f   :  { %v1315_v1 = vadd.f32 %v3960_v35, %v1314_v50 }
 0xa30   :  { %v1330_v3 = vadd.f32 %v3962_v54, %v1329_v24 }
 0xa31   :  { %v1319_v5 = vsel %vm1318_vm9, %v3960_v35, %v1315_v1 }
 0xa32   :  { %v1334_v10 = vsel %vm1333_vm12, %v3962_v54, %v1330_v3  ;;  %v1324_v14 = vsel %vm1321_vm11, %v1323_v2, %v1319_v5  ;;  %vm464_vm12 = vcmask 1042434  }
 0xa33   :  { %v1339_v17 = vsel %vm1336_vm13, %v1338_v4, %v1334_v10  ;;  %v1392_v16 = vmul.f32 %v1388_v36, %v1324_v14  ;;  %v1410_v4 = vrot.slane %v4714_v23, 7  ;;  %v465_v28 = vsel %vm464_vm12, %v463_v31, %v4553_v9 }
 0xa34   :  { %v1393_v40 = vmul.f32 %v1389_v8, %v1339_v17  ;;  %v1234_v8 = vrot.slane %v4718_v56, 7  ;;  %vm1050_vm13 = vcmask 1045509  }
 0xa35   :  { %v1394_v41 = vadd.f32 %v1392_v16, %v4466_v26  ;;  %v4754_v59 = vsel %vm1050_vm13, %v1049_v13, %v4691_v18 }
 0xa36   :  { %v1395_v42 = vadd.f32 %v1393_v40, %v4441_v47 }
 0xa37   :  { %3963 = vtanh.f32 %v1394_v41 }
 0xa38   :  { %3965 = vtanh.f32 %v1395_v42 }
 0xa39   :  { %3967 = vpow2.f32 %v3689_v60 }
 0xa3a   :  { %3969 = vpow2.f32 %v3690_v57 }
 0xa3d   :  { %v3964_v43 = vpop.eup %3963 }
 0xa3e   :  { %v3966_v62 = vpop.eup %3965  ;;  %1402 = vrot.lane.b32.xlu2 %v3964_v43, %s4201_s25 }
 0xa3f   :  { %1404 = vrot.lane.b32.xlu0 %v3966_v62, %s4201_s25  ;;  %v3968_v49 = vpop.eup %3967 }
 0xa40   :  { %v1354_v61 = vadd.f32 1.0, %v3968_v49  ;;  %v3970_v53 = vpop.eup %3969 }
 0xa41   :  { %v1355_v58 = vadd.f32 1.0, %v3970_v53 }
 0xa42   :  { %3971 = vrcp.f32 %v1354_v61  ;;  %v1367_v32 = vand.u32 2147483648, %v1354_v61  ;;  %vm1361_vm15 = vweird.f32 %v1354_v61  ;;  %v1365_v33 = vand.u32 2147483647, %v1354_v61 }
 0xa43   :  { %3973 = vrcp.f32 %v1355_v58  ;;  %v1382_v38 = vand.u32 2147483648, %v1355_v58  ;;  %vm1376_vm9 = vweird.f32 %v1355_v58  ;;  %v1380_v21 = vand.u32 2147483647, %v1355_v58 }
 0xa44   :  { %v1368_v50 = vor.u32 1.1754944e-38, %v1367_v32  ;;  %vm1366_vm8 = vcmp.eq.f32.partialorder %v1365_v33, 8.507059e+37 }
 0xa45   :  { %v1383_v2 = vor.u32 1.1754944e-38, %v1382_v38  ;;  %vm1381_vm11 = vcmp.eq.f32.partialorder %v1380_v21, 8.507059e+37 }
 0xa48   :  { %v3972_v39 = vpop.eup %3971 }
 0xa49   :  { %v1357_v55 = vmul.f32 %v3972_v39, %v1354_v61  ;;  %v3974_v35 = vpop.eup %3973  ;;  %vm1362_vm14 = vweird.f32 %v3972_v39 }
 0xa4a   :  { %v1372_v25 = vmul.f32 %v3974_v35, %v1355_v58  ;;  %vm1363_vm6 = vmor %vm1361_vm15, %vm1362_vm14  ;;  %vm1377_vm7 = vweird.f32 %v3974_v35  ;;  %vm471_vm14 = vcmask 518401   ;;  %vm474_vm15 = vcmask 780801  }
 0xa4b   :  { %v1358_v54 = vsub.f32 1.0, %v1357_v55  ;;  %vm1378_vm10 = vmor %vm1376_vm9, %vm1377_vm7 }
 0xa4c   :  { %v1373_v46 = vsub.f32 1.0, %v1372_v25 }
 0xa4d   :  { %v1359_v22 = vmul.f32 %v3972_v39, %v1358_v54 }
 0xa4e   :  { %v1374_v47 = vmul.f32 %v3974_v35, %v1373_v46 }
 0xa4f   :  { %v1360_v26 = vadd.f32 %v3972_v39, %v1359_v22 }
 0xa50   :  { %v1375_v51 = vadd.f32 %v3974_v35, %v1374_v47 }
 0xa51   :  { %v1364_v30 = vsel %vm1363_vm6, %v3972_v39, %v1360_v26  ;;  %vm476_vm6 = vcmask 1043201  }
 0xa52   :  { %v1369_v24 = vsel %vm1366_vm8, %v1368_v50, %v1364_v30  ;;  %v1379_v0 = vsel %vm1378_vm10, %v3974_v35, %v1375_v51 }
 0xa53   :  { %v1398_v3 = vsub.f32 1.0, %v1369_v24  ;;  %v1384_v36 = vsel %vm1381_vm11, %v1383_v2, %v1379_v0  ;;  %v1413_v10 = vmul.f32 %v1410_v4, %v1369_v24 }
 0xa54   :  { %v1399_v14 = vsub.f32 1.0, %v1384_v36  ;;  %v1414_v41 = vmul.f32 %v1384_v36, %v1234_v8 }
 0xa98   :  { %v1403_v1 = vpop.permute.xlu2 %1402 }
 0xa99   :  { %v1408_v5 = vmul.f32 %v1403_v1, %v1398_v3 }
 0xa9b   :  { %v4737_v16 = vadd.f32 %v1413_v10, %v1408_v5 }
 0xa9d   :  { %v1434_v62 = vrot.slane %v4737_v16, 6 }
 0xab1   :  { %v1405_v17 = vpop.permute.xlu0 %1404 }
 0xab2   :  { %v1409_v40 = vmul.f32 %v1405_v17, %v1399_v14 }
 0xab4   :  { %v4741_v42 = vadd.f32 %v1414_v41, %v1409_v40 }
 0xab6   :  { %v1435_v43 = vrot.slane %v4741_v42, 5 }
 0xab8   :  { %v1436_v44 = vsel %vm271_vm0, %v1435_v43, %v1434_v62  ;;  %vm469_vm0 = vcmask 256001   ;;  %v1419_v43 = vrot.slane %v4741_v42, 7 }
 0xab9   :  { %1437 = vrot.lane.b32.xlu1 %v1436_v44, %s4201_s25 }
 0xac1   :  { %466 = vrot.lane.b32.xlu1 %v465_v28, %s4201_s25 }
 0xac9   :  { %1052 = vrot.lane.b32.xlu1 %v4754_v59, %s4201_s25 }
 0xb2b   :  { %v1438_v45 = vpop.permute.xlu1 %1437 }
 0xb2c   :  { %3691 = vmatmul.msk.f32.vlgmr.msrb.gmra.mxu2 %vm109_vm2, %v1438_v45  ;;  %3692 = vmatmul.msk.f32.vlgmr.msrb.gmra.mxu3 %vm109_vm2, %v1438_v45 }
 0xb33   :  { %v467_v63 = vpop.permute.xlu1 %466 }
 0xb34   :  { %470 = vst.msk [vmem:[#allocation2 + $0x1] sm:$0x6] %vm469_vm0, %v467_v63 }
 0xb35   :  { %472 = vst.msk [vmem:[#allocation2 + $0xb] sm:$0x6] %vm471_vm14, %v467_v63  ;;  %vm865_vm14 = vcmask 1044484  }
 0xb36   :  { %475 = vst.msk [vmem:[#allocation2 + $0xb] sm:$0x6] %vm474_vm15, %v465_v28  ;;  %vm664_vm15 = vcmask 1043459   ;;  %v4770_v40 = vsel %vm865_vm14, %v864_v11, %v4663_v12  ;;  %vm5789_vm14 = vcmask 1044226  }
 0xb37   :  { %477 = vst.msk [vmem:[#allocation2 + $0x1] sm:$0x6] %vm476_vm6, %v465_v28  ;;  %v665_v41 = vsel %vm664_vm15, %v663_v7, %v4592_v6  ;;  %vm1420_vm6 = vcmask 1047559  }
 0xb38   :  { %v4780_v62 = vsel %vm1420_vm6, %v1419_v43, %v4737_v16  ;;  %vm1240_vm6 = vcmask 260101  }
 0xbaf   :  { %v1478_v9 = vpop.f32.mrf.mxu3  ;;  %v1458_v35 = vpop.f32.mrf.mxu2 }
 0xbb0   :  { %v1482_v31 = vrot.slane %v1478_v9, 1  ;;  %v1483_v18 = vrot.slane %v1478_v9, 2  ;;  %v1528_v6 = vrot.slane %v1458_v35, 2  ;;  %v1527_v42 = vrot.slane %v1458_v35, 1 }
 0xbb2   :  { %v1486_v29 = vadd.f32 %v1482_v31, %v4475_v34  ;;  %v1487_v13 = vadd.f32 %v1483_v18, %v4450_v52  ;;  %v1571_v34 = vadd.f32 %v4680_v37, %v1458_v35  ;;  %v1532_v20 = vadd.f32 %v1528_v6, %v4444_v48  ;;  %v1673_v6 = vld [vmem:[%s5781_s2 + $0xa0] sm:$0xff] }
 0xbb3   :  { %v1531_v44 = vadd.f32 %v1527_v42, %v4469_v27  ;;  %v1672_v42 = vld [vmem:[%s5781_s2 + $0x98] sm:$0xff] }
 0xbb4   :  { %v3693_v60 = vmul.f32 -1.442695, %v1486_v29  ;;  %v3694_v57 = vmul.f32 -1.442695, %v1487_v13  ;;  %v1573_v21 = vrot.slane %v1571_v34, 1  ;;  %v1574_v0 = vrot.slane %v1571_v34, 2 }
 0xbb5   :  { %v3696_v7 = vmul.f32 -1.442695, %v1532_v20  ;;  %v3695_v45 = vmul.f32 -1.442695, %v1531_v44  ;;  %v1674_v20 = vld [vmem:[%s5781_s2 + $0xa8] sm:$0xff]  ;;  %v4913_v44 = vld [vmem:[%s5782_s3 + $0xb0] sm:$0xff] }
 0xbb6   :  { %3975 = vpow2.f32 %v3693_v60 }
 0xbb7   :  { %3977 = vpow2.f32 %v3694_v57 }
 0xbbc   :  { %v3976_v49 = vpop.eup %3975 }
 0xbbd   :  { %v3978_v61 = vpop.eup %3977  ;;  %v1494_v53 = vadd.f32 1.0, %v3976_v49 }
 0xbbe   :  { %v1495_v58 = vadd.f32 1.0, %v3978_v61 }
 0xbbf   :  { %3979 = vrcp.f32 %v1494_v53  ;;  %v1507_v46 = vand.u32 2147483648, %v1494_v53  ;;  %v1505_v47 = vand.u32 2147483647, %v1494_v53  ;;  %vm1501_vm9 = vweird.f32 %v1494_v53 }
 0xbc0   :  { %3981 = vrcp.f32 %v1495_v58  ;;  %v1522_v32 = vand.u32 2147483648, %v1495_v58  ;;  %v1520_v30 = vand.u32 2147483647, %v1495_v58  ;;  %vm1516_vm11 = vweird.f32 %v1495_v58 }
 0xbc1   :  { %v1508_v50 = vor.u32 1.1754944e-38, %v1507_v46  ;;  %vm1506_vm12 = vcmp.eq.f32.partialorder %v1505_v47, 8.507059e+37 }
 0xbc2   :  { %v1523_v24 = vor.u32 1.1754944e-38, %v1522_v32  ;;  %vm1521_vm0 = vcmp.eq.f32.partialorder %v1520_v30, 8.507059e+37 }
 0xbc5   :  { %v3980_v39 = vpop.eup %3979 }
 0xbc6   :  { %v3982_v55 = vpop.eup %3981  ;;  %v1497_v54 = vmul.f32 %v3980_v39, %v1494_v53  ;;  %vm1502_vm7 = vweird.f32 %v3980_v39 }
 0xbc7   :  { %v1512_v25 = vmul.f32 %v3982_v55, %v1495_v58  ;;  %vm1517_vm8 = vweird.f32 %v3982_v55  ;;  %vm1503_vm10 = vmor %vm1501_vm9, %vm1502_vm7  ;;  %vm1235_vm7 = vcmask 1046534  }
 0xbc8   :  { %v1498_v22 = vsub.f32 1.0, %v1497_v54  ;;  %vm1518_vm13 = vmor %vm1516_vm11, %vm1517_vm8  ;;  %v4787_v12 = vsel %vm1235_vm7, %v1234_v8, %v4714_v23 }
 0xbc9   :  { %v1513_v52 = vsub.f32 1.0, %v1512_v25 }
 0xbca   :  { %v1499_v26 = vmul.f32 %v3980_v39, %v1498_v22 }
 0xbcb   :  { %v1514_v33 = vmul.f32 %v3982_v55, %v1513_v52 }
 0xbcc   :  { %v1500_v51 = vadd.f32 %v3980_v39, %v1499_v26 }
 0xbcd   :  { %v1515_v38 = vadd.f32 %v3982_v55, %v1514_v33  ;;  %v1595_v33 = vrot.slane %v4737_v16, 7  ;;  %v1053_v16 = vpop.permute.xlu1 %1052 }
 0xbce   :  { %v1504_v37 = vsel %vm1503_vm10, %v3980_v39, %v1500_v51 }
 0xbcf   :  { %v1519_v1 = vsel %vm1518_vm13, %v3982_v55, %v1515_v38  ;;  %v1509_v2 = vsel %vm1506_vm12, %v1508_v50, %v1504_v37  ;;  %vm669_vm12 = vcmask 257026   ;;  %vm5788_vm13 = vcmask 519426  }
 0xbd0   :  { %v1524_v3 = vsel %vm1521_vm0, %v1523_v24, %v1519_v1  ;;  %v1577_v36 = vmul.f32 %v1573_v21, %v1509_v2  ;;  %vm5790_vm0 = vcmask 781826   ;;  %v1681_v1 = vld [vmem:[%s5781_s2 + $0xe0] sm:$0xff]  ;;  %v1682_v2 = vld [vmem:[%s5781_s2 + $0xe8] sm:$0xff] }
 0xbd1   :  { %v1578_v4 = vmul.f32 %v1574_v0, %v1524_v3  ;;  %v1683_v0 = vld [vmem:[%s5781_s2 + $0xf0] sm:$0xff] }
 0xbd2   :  { %v1579_v5 = vadd.f32 %v1577_v36, %v4469_v27  ;;  %1692 = vmatpush.msra.mxu0 %v1683_v0  ;;  %v1679_v3 = vld [vmem:[%s5781_s2 + $0xd0] sm:$0xff]  ;;  %v1680_v36 = vld [vmem:[%s5781_s2 + $0xd8] sm:$0xff]  ;;  %v5098_v0 = vld [vmem:[%s5784_s5 + $0x1] ss:$0 sm:$0xff] }
 0xbd3   :  { %v1580_v10 = vadd.f32 %v1578_v4, %v4444_v48  ;;  %v1677_v4 = vld [vmem:[%s5781_s2 + $0xc0] sm:$0xff] }
 0xbd4   :  { %3983 = vtanh.f32 %v1579_v5  ;;  %1693 = vmatpush.msra.mxu0 %v1681_v1  ;;  %v1678_v5 = vld [vmem:[%s5781_s2 + $0xc8] sm:$0xff] }
 0xbd5   :  { %3985 = vtanh.f32 %v1580_v10  ;;  %v4849_v10 = vld [vmem:[%s5782_s3 + $0xf0] sm:$0xff] }
 0xbd6   :  { %3987 = vpow2.f32 %v3696_v7  ;;  %1694 = vmatpush.msra.mxu0 %v1679_v3  ;;  %1746 = vmatpush.msra.mxu2 %v4849_v10  ;;  %v4895_v7 = vld [vmem:[%s5782_s3 + $0xc0] sm:$0xff] }
 0xbd8   :  { %1695 = vmatpush.msra.mxu0 %v1677_v4 }
 0xbda   :  { %v3984_v14 = vpop.eup %3983 }
 0xbdb   :  { %v3986_v17 = vpop.eup %3985  ;;  %1587 = vrot.lane.b32.xlu0 %v3984_v14, %s4201_s25  ;;  %v1675_v14 = vld [vmem:[%s5781_s2 + $0xb0] sm:$0xff] }
 0xbdc   :  { %1589 = vrot.lane.b32.xlu2 %v3986_v17, %s4201_s25  ;;  %v3988_v15 = vpop.eup %3987  ;;  %v4857_v17 = vld [vmem:[%s5782_s3 + $0xf8] sm:$0xff]  ;;  %1696 = vmatpush.msra.mxu0 %v1675_v14 }
 0xbdd   :  { %v1540_v11 = vadd.f32 1.0, %v3988_v15  ;;  %1766 = vmatpush.msra.mxu3 %v4857_v17  ;;  %v4900_v15 = vld [vmem:[%s5782_s3 + $0xc8] sm:$0xff] }
 0xbde   :  { %1697 = vmatpush.msra.mxu0 %v1673_v6 }
 0xbdf   :  { %3989 = vrcp.f32 %v1540_v11  ;;  %v1567_v18 = vand.u32 2147483648, %v1540_v11  ;;  %vm1561_vm9 = vweird.f32 %v1540_v11  ;;  %v1565_v48 = vand.u32 2147483647, %v1540_v11 }
 0xbe0   :  { %3991 = vpow2.f32 %v3695_v45  ;;  %v1669_v45 = vld [vmem:[%s5781_s2 + $0x80] sm:$0xff] }
 0xbe1   :  { %v1568_v13 = vor.u32 1.1754944e-38, %v1567_v18  ;;  %vm1566_vm11 = vcmp.eq.f32.partialorder %v1565_v48, 8.507059e+37  ;;  %v1664_v18 = vld [vmem:[%s5781_s2 + $0x58] sm:$0xff] }
 0xbe3   :  { %867 = vrot.lane.b32.xlu0 %v4770_v40, %s4201_s25 }
 0xbe4   :  { %666 = vrot.lane.b32.xlu2 %v665_v41, %s4201_s25 }
 0xbe5   :  { %v3990_v28 = vpop.eup %3989 }
 0xbe6   :  { %v1557_v63 = vmul.f32 %v3990_v28, %v1540_v11  ;;  %v3992_v56 = vpop.eup %3991  ;;  %vm1562_vm8 = vweird.f32 %v3990_v28  ;;  %v1671_v11 = vld [vmem:[%s5781_s2 + $0x90] sm:$0xff] }
 0xbe7   :  { %v1539_v9 = vadd.f32 1.0, %v3992_v56  ;;  %vm1563_vm10 = vmor %vm1561_vm9, %vm1562_vm8  ;;  %vm1242_vm8 = vcmask 522501   ;;  %1698 = vmatpush.msra.mxu0 %v1671_v11  ;;  %v1668_v56 = vld [vmem:[%s5781_s2 + $0x78] sm:$0xff] }
 0xbe8   :  { %v1558_v23 = vsub.f32 1.0, %v1557_v63  ;;  %v1670_v63 = vld [vmem:[%s5781_s2 + $0x88] sm:$0xff] }
 0xbe9   :  { %3993 = vrcp.f32 %v1539_v9  ;;  %v1552_v34 = vand.u32 2147483648, %v1539_v9  ;;  %vm1546_vm7 = vweird.f32 %v1539_v9  ;;  %v1550_v46 = vand.u32 2147483647, %v1539_v9  ;;  %1699 = vmatpush.msra.mxu0 %v1669_v45 }
 0xbea   :  { %v1559_v8 = vmul.f32 %v3990_v28, %v1558_v23  ;;  %v1667_v23 = vld [vmem:[%s5781_s2 + $0x70] sm:$0xff] }
 0xbeb   :  { %1422 = vrot.lane.b32.xlu0 %v4780_v62, %s4201_s25  ;;  %v1553_v47 = vor.u32 1.1754944e-38, %v1552_v34  ;;  %1700 = vmatpush.msra.mxu0 %v1667_v23  ;;  %v1654_v34 = vld [vmem:[%s5781_s2 + $0x8] sm:$0xff] }
 0xbec   :  { %1237 = vrot.lane.b32.xlu2 %v4787_v12, %s4201_s25  ;;  %v1560_v31 = vadd.f32 %v3990_v28, %v1559_v8  ;;  %v1665_v8 = vld [vmem:[%s5781_s2 + $0x60] sm:$0xff] }
 0xbed   :  { %1701 = vmatpush.msra.mxu0 %v1665_v8 }
 0xbee   :  { %v1564_v29 = vsel %vm1563_vm10, %v3990_v28, %v1560_v31  ;;  %vm1245_vm10 = vcmask 784901   ;;  %v4918_v28 = vld [vmem:[%s5782_s3 + $0xb8] sm:$0xff]  ;;  %v1663_v31 = vld [vmem:[%s5781_s2 + $0x50] sm:$0xff] }
 0xbef   :  { %v1569_v60 = vsel %vm1566_vm11, %v1568_v13, %v1564_v29  ;;  %v3994_v27 = vpop.eup %3993  ;;  %vm1247_vm11 = vcmask 1047301   ;;  %1702 = vmatpush.msra.mxu0 %v1663_v31  ;;  %v1661_v29 = vld [vmem:[%s5781_s2 + $0x40] sm:$0xff]  ;;  %v1662_v13 = vld [vmem:[%s5781_s2 + $0x48] sm:$0xff] }
 0xbf0   :  { %v1584_v57 = vsub.f32 1.0, %v1569_v60  ;;  %v1542_v61 = vmul.f32 %v3994_v27, %v1539_v9  ;;  %v1599_v58 = vmul.f32 %v1569_v60, %v1419_v43  ;;  %vm1547_vm15 = vweird.f32 %v3994_v27  ;;  %v4872_v43 = vld [vmem:[%s5782_s3 + $0xe8] sm:$0xff]  ;;  %v4959_v60 = vld [vmem:[%s5782_s3 + $0xa0] sm:$0xff] }
 0xbf1   :  { %vm1548_vm9 = vmor %vm1546_vm7, %vm1547_vm15  ;;  %vm870_vm15 = vcmask 258051   ;;  %vm875_vm7 = vcmask 782851   ;;  %1767 = vmatpush.msra.mxu3 %v4872_v43  ;;  %v1666_v9 = vld [vmem:[%s5781_s2 + $0x68] sm:$0xff]  ;;  %1703 = vmatpush.msra.mxu0 %v1661_v29 }
 0xbf2   :  { %v1543_v55 = vsub.f32 1.0, %v1542_v61  ;;  %v4977_v61 = vld [vmem:[%s5782_s3 + $0x90] sm:$0xff] }
 0xbf4   :  { %v1544_v25 = vmul.f32 %v3994_v27, %v1543_v55  ;;  %v4993_v55 = vld [vmem:[%s5782_s3 + $0x80] sm:$0xff] }
 0xbf6   :  { %v1545_v22 = vadd.f32 %v3994_v27, %v1544_v25  ;;  %v1656_v25 = vld [vmem:[%s5781_s2 + $0x18] sm:$0xff] }
 0xbf8   :  { %v1549_v26 = vsel %vm1548_vm9, %v3994_v27, %v1545_v22  ;;  %vm1057_vm9 = vcmask 521476   ;;  %v4964_v27 = vld [vmem:[%s5782_s3 + $0xa8] sm:$0xff]  ;;  %v1653_v22 = vld [vmem:[%s5781_s2] sm:$0xff] }
 0xc36   :  { %v1590_v49 = vpop.permute.xlu2 %1589 }
 0xc37   :  { %v1594_v53 = vmul.f32 %v1590_v49, %v1584_v57  ;;  %v1659_v57 = vld [vmem:[%s5781_s2 + $0x30] sm:$0xff]  ;;  %v1660_v49 = vld [vmem:[%s5781_s2 + $0x38] sm:$0xff] }
 0xc38   :  { %1704 = vmatpush.msra.mxu0 %v1659_v57 }
 0xc39   :  { %v1601_v39 = vadd.f32 %v1599_v58, %v1594_v53  ;;  %v4982_v53 = vld [vmem:[%s5782_s3 + $0x98] sm:$0xff]  ;;  %v1657_v58 = vld [vmem:[%s5781_s2 + $0x20] sm:$0xff] }
 0xc3a   :  { %1705 = vmatpush.msra.mxu0 %v1657_v58 }
 0xc3b   :  { %v4793_v35 = vrot.slane %v1601_v39, 7  ;;  %v1658_v39 = vld [vmem:[%s5781_s2 + $0x28] sm:$0xff] }
 0xc3d   :  { %1607 = vrot.lane.b32.xlu2 %v4793_v35, %s4201_s25 }
 0xc3e   :  { %v667_v54 = vpop.permute.xlu2 %666 }
 0xc3f   :  { %670 = vst.msk [vmem:[#allocation2 + $0x2] sm:$0xc] %vm669_vm12, %v667_v54 }
 0xc40   :  { %672 = vst.msk [vmem:[#allocation2 + $0x8] sm:$0xc] %vm5788_vm13, %v667_v54  ;;  %vm1551_vm13 = vcmp.eq.f32.partialorder %v1550_v46, 8.507059e+37  ;;  %v1655_v54 = vld [vmem:[%s5781_s2 + $0x10] sm:$0xff] }
 0xc41   :  { %675 = vst.msk [vmem:[#allocation2 + $0x8] sm:$0xc] %vm5790_vm0, %v665_v41  ;;  %v1554_v32 = vsel %vm1551_vm13, %v1553_v47, %v1549_v26  ;;  %vm1055_vm13 = vcmask 259076   ;;  %vm1427_vm0 = vcmask 523526   ;;  %1706 = vmatpush.msra.mxu0 %v1655_v54  ;;  %v5087_v47 = vld [vmem:[%s5783_s4 + $0x2] sm:$0x3] }
 0xc42   :  { %677 = vst.msk [vmem:[#allocation2 + $0x2] sm:$0xc] %vm5789_vm14, %v665_v41  ;;  %v1583_v30 = vsub.f32 1.0, %v1554_v32  ;;  %v1598_v38 = vmul.f32 %v1595_v33, %v1554_v32  ;;  %vm1425_vm14 = vcmask 261126   ;;  %v4867_v41 = vld [vmem:[%s5782_s3 + $0xe0] sm:$0xff]  ;;  %v1689_v32 = vperm.slane %v5087_v47, 1 }
 0xc43   :  { %1747 = vmatpush.msra.mxu2 %v4867_v41  ;;  %1707 = vmatpush.msra.mxu0 %v1653_v22  ;;  %v1688_v4 = vperm.slane %v5087_v47, 0 }
 0xc45   :  { %1964 = vmatpush.msrb.mxu0 %v4849_v10 }
 0xc46   :  { %v1238_v52 = vpop.permute.xlu2 %1237 }
 0xc47   :  { %1241 = vst.msk [vmem:[#allocation2 + $0x5] sm:$0x60] %vm1240_vm6, %v1238_v52  ;;  %vm872_vm6 = vcmask 520451   ;;  %1965 = vmatpush.msrb.mxu0 %v4867_v41 }
 0xc48   :  { %1243 = vst.msk [vmem:[#allocation2 - $0x1] sm:$0x60] %vm1242_vm8, %v1238_v52  ;;  %vm877_vm8 = vcmask 1045251  }
 0xc49   :  { %1246 = vst.msk [vmem:[#allocation2 - $0x1] sm:$0x60] %vm1245_vm10, %v4787_v12  ;;  %vm1060_vm10 = vcmask 783876  }
 0xc4a   :  { %1248 = vst.msk [vmem:[#allocation2 + $0x5] sm:$0x60] %vm1247_vm11, %v4787_v12  ;;  %vm1062_vm11 = vcmask 1046276   ;;  %v4882_v12 = vld [vmem:[%s5782_s3 + $0xd8] sm:$0xff] }
 0xc4b   :  { %1768 = vmatpush.msra.mxu3 %v4882_v12 }
 0xc4d   :  { %v1588_v51 = vpop.permute.xlu0 %1587  ;;  %1769 = vmatpush.msra.mxu3 %v4900_v15 }
 0xc4e   :  { %v1593_v50 = vmul.f32 %v1588_v51, %v1583_v30 }
 0xc4f   :  { %1770 = vmatpush.msra.mxu3 %v4918_v28 }
 0xc50   :  { %v4804_v21 = vadd.f32 %v1598_v38, %v1593_v50 }
 0xc51   :  { %1771 = vmatpush.msra.mxu3 %v4964_v27 }
 0xc52   :  { %1605 = vrot.lane.b32.xlu1 %v4804_v21, %s4201_s25 }
 0xc53   :  { %1772 = vmatpush.msra.mxu3 %v4982_v53 }
 0xc55   :  { %v868_v24 = vpop.permute.xlu0 %867 }
 0xc56   :  { %871 = vst.msk [vmem:[#allocation2 + $0x3] sm:$0x18] %vm870_vm15, %v868_v24  ;;  %vm5792_vm15 = vcmask 785926  }
 0xc57   :  { %873 = vst.msk [vmem:[#allocation2 + $0x5] sm:$0x18] %vm872_vm6, %v868_v24  ;;  %vm5791_vm6 = vcmask 1048326  }
 0xc58   :  { %876 = vst.msk [vmem:[#allocation2 + $0x5] sm:$0x18] %vm875_vm7, %v4770_v40  ;;  %vm1613_vm7 = vcmask 253952  }
 0xc59   :  { %878 = vst.msk [vmem:[#allocation2 + $0x3] sm:$0x18] %vm877_vm8, %v4770_v40  ;;  %v1676_v40 = vld [vmem:[%s5781_s2 + $0xb8] sm:$0xff]  ;;  %vm1617_vm8 = vcmask 516352  }
 0xc5a   :  { %1056 = vst.msk [vmem:[#allocation2 + $0x4] sm:$0x30] %vm1055_vm13, %v1053_v16 }
 0xc5b   :  { %1058 = vst.msk [vmem:[#allocation2 + $0x2] sm:$0x30] %vm1057_vm9, %v1053_v16 }
 0xc5c   :  { %1061 = vst.msk [vmem:[#allocation2 + $0x2] sm:$0x30] %vm1060_vm10, %v4754_v59 }
 0xc5d   :  { %1063 = vst.msk [vmem:[#allocation2 + $0x4] sm:$0x30] %vm1062_vm11, %v4754_v59  ;;  %v1423_v37 = vpop.permute.xlu0 %1422  ;;  %v1684_v59 = vld [vmem:[%s5781_s2 + $0xf8] sm:$0xff] }
 0xc5e   :  { %1426 = vst.msk [vmem:[#allocation2 + $0x6] sm:$0xc0] %vm1425_vm14, %v1423_v37  ;;  %1715 = vmatpush.msra.mxu1 %v1684_v59 }
 0xc5f   :  { %1428 = vst.msk [vmem:[#allocation2 - $0x4] sm:$0xc0] %vm1427_vm0, %v1423_v37 }
 0xc60   :  { %1431 = vst.msk [vmem:[#allocation2 - $0x4] sm:$0xc0] %vm5792_vm15, %v4780_v62  ;;  %1716 = vmatpush.msra.mxu1 %v1682_v2  ;;  %vm1627_vm15 = vcmask 1041152  }
 0xc61   :  { %1433 = vst.msk [vmem:[#allocation2 + $0x6] sm:$0xc0] %vm5791_vm6, %v4780_v62  ;;  %v4877_v62 = vld [vmem:[%s5782_s3 + $0xd0] sm:$0xff]  ;;  %vm1623_vm6 = vcmask 778752  }
 0xc62   :  { %1717 = vmatpush.msra.mxu1 %v1680_v36  ;;  %1748 = vmatpush.msra.mxu2 %v4877_v62 }
 0xc63   :  { %1966 = vmatpush.msrb.mxu0 %v4877_v62 }
 0xc64   :  { %1718 = vmatpush.msra.mxu1 %v1678_v5  ;;  %1749 = vmatpush.msra.mxu2 %v4895_v7 }
 0xc65   :  { %1967 = vmatpush.msrb.mxu0 %v4895_v7 }
 0xc66   :  { %1719 = vmatpush.msra.mxu1 %v1676_v40  ;;  %1750 = vmatpush.msra.mxu2 %v4913_v44 }
 0xc67   :  { %1968 = vmatpush.msrb.mxu0 %v4913_v44 }
 0xc68   :  { %1720 = vmatpush.msra.mxu1 %v1674_v20  ;;  %1751 = vmatpush.msra.mxu2 %v4959_v60 }
 0xc69   :  { %1969 = vmatpush.msrb.mxu0 %v4959_v60 }
 0xc6a   :  { %1721 = vmatpush.msra.mxu1 %v1672_v42  ;;  %1752 = vmatpush.msra.mxu2 %v4977_v61 }
 0xc6b   :  { %1970 = vmatpush.msrb.mxu0 %v4977_v61 }
 0xc6c   :  { %1722 = vmatpush.msra.mxu1 %v1670_v63  ;;  %1753 = vmatpush.msra.mxu2 %v4993_v55 }
 0xc6d   :  { %1754 = vmatmul.f32.vlgmr.msra.gmra.mxu2 %v4200_v19  ;;  %1971 = vmatpush.msrb.mxu0 %v4993_v55 }
 0xc6e   :  { %1723 = vmatpush.msra.mxu1 %v1668_v56  ;;  %1848 = vmatpush.msrb.mxu2 %v4849_v10 }
 0xc70   :  { %1724 = vmatpush.msra.mxu1 %v1666_v9  ;;  %1849 = vmatpush.msrb.mxu2 %v4867_v41 }
 0xc72   :  { %1725 = vmatpush.msra.mxu1 %v1664_v18  ;;  %1850 = vmatpush.msrb.mxu2 %v4877_v62 }
 0xc74   :  { %1726 = vmatpush.msra.mxu1 %v1662_v13  ;;  %1851 = vmatpush.msrb.mxu2 %v4895_v7 }
 0xc76   :  { %1727 = vmatpush.msra.mxu1 %v1660_v49  ;;  %1852 = vmatpush.msrb.mxu2 %v4913_v44 }
 0xc78   :  { %1728 = vmatpush.msra.mxu1 %v1658_v39  ;;  %1853 = vmatpush.msrb.mxu2 %v4959_v60 }
 0xc7a   :  { %1729 = vmatpush.msra.mxu1 %v1656_v25  ;;  %1854 = vmatpush.msrb.mxu2 %v4977_v61 }
 0xc7c   :  { %1730 = vmatpush.msra.mxu1 %v1654_v34  ;;  %1855 = vmatpush.msrb.mxu2 %v4993_v55 }
 0xc7e   :  { %1984 = vmatpush.msrb.mxu1 %v4857_v17  ;;  %2080 = vmatpush.msra.mxu2 %v4849_v10 }
 0xc80   :  { %1985 = vmatpush.msrb.mxu1 %v4872_v43  ;;  %2081 = vmatpush.msra.mxu2 %v4867_v41 }
 0xc82   :  { %1986 = vmatpush.msrb.mxu1 %v4882_v12  ;;  %2082 = vmatpush.msra.mxu2 %v4877_v62 }
 0xc84   :  { %1987 = vmatpush.msrb.mxu1 %v4900_v15  ;;  %2083 = vmatpush.msra.mxu2 %v4895_v7 }
 0xc86   :  { %1988 = vmatpush.msrb.mxu1 %v4918_v28  ;;  %2084 = vmatpush.msra.mxu2 %v4913_v44 }
 0xc88   :  { %1989 = vmatpush.msrb.mxu1 %v4964_v27  ;;  %2085 = vmatpush.msra.mxu2 %v4959_v60 }
 0xc8a   :  { %1990 = vmatpush.msrb.mxu1 %v4982_v53  ;;  %2086 = vmatpush.msra.mxu2 %v4977_v61 }
 0xc8c   :  { %2087 = vmatpush.msra.mxu2 %v4993_v55 }
 0xc97   :  { %v1608_v48 = vpop.permute.xlu2 %1607 }
 0xc98   :  { %1614 = vst.msk [vmem:[#allocation2 + $0xf] sm:$0x1] %vm1613_vm7, %v1608_v48  ;;  %vm1621_vm7 = vcmask 785927  }
 0xc99   :  { %1618 = vst.msk [vmem:[#allocation2 + $0x1] sm:$0x1] %vm1617_vm8, %v1608_v48  ;;  %vm1625_vm8 = vcmask 1048327  }
 0xc9a   :  { %1624 = vst.msk [vmem:[#allocation2 + $0x1] sm:$0x1] %vm1623_vm6, %v4793_v35  ;;  %vm1615_vm6 = vcmask 523527  }
 0xc9b   :  { %1628 = vst.msk [vmem:[#allocation2 + $0xf] sm:$0x1] %vm1627_vm15, %v4793_v35  ;;  %v4998_v35 = vld [vmem:[%s5782_s3 + $0x88] sm:$0xff]  ;;  %vm1611_vm15 = vcmask 261127  }
 0xc9c   :  { %1773 = vmatpush.msra.mxu3 %v4998_v35  ;;  %1991 = vmatpush.msrb.mxu1 %v4998_v35 }
 0xc9d   :  { %1774 = vmatmul.f32.vlgmr.msra.gmra.mxu3 %v4200_v19 }
 0xc9e   :  { %1868 = vmatpush.msrb.mxu3 %v4857_v17 }
 0xca0   :  { %1869 = vmatpush.msrb.mxu3 %v4872_v43 }
 0xca2   :  { %1870 = vmatpush.msrb.mxu3 %v4882_v12 }
 0xca4   :  { %1871 = vmatpush.msrb.mxu3 %v4900_v15 }
 0xca6   :  { %1872 = vmatpush.msrb.mxu3 %v4918_v28 }
 0xca8   :  { %1873 = vmatpush.msrb.mxu3 %v4964_v27 }
 0xcaa   :  { %1874 = vmatpush.msrb.mxu3 %v4982_v53 }
 0xcac   :  { %1875 = vmatpush.msrb.mxu3 %v4998_v35 }
 0xcae   :  { %2100 = vmatpush.msra.mxu3 %v4857_v17 }
 0xcb0   :  { %2101 = vmatpush.msra.mxu3 %v4872_v43 }
 0xcb2   :  { %2102 = vmatpush.msra.mxu3 %v4882_v12 }
 0xcb4   :  { %2103 = vmatpush.msra.mxu3 %v4900_v15 }
 0xcb6   :  { %2104 = vmatpush.msra.mxu3 %v4918_v28 }
 0xcb8   :  { %2105 = vmatpush.msra.mxu3 %v4964_v27 }
 0xcba   :  { %2106 = vmatpush.msra.mxu3 %v4982_v53 }
 0xcbc   :  { %2107 = vmatpush.msra.mxu3 %v4998_v35 }
 0xcc4   :  { %v1606_v46 = vpop.permute.xlu1 %1605 }
 0xcc5   :  { %1612 = vst.msk [vmem:[#allocation2 + $0x7] sm:$0x80] %vm1611_vm15, %v1606_v46 }
 0xcc6   :  { %1616 = vst.msk [vmem:[#allocation2 - $0x7] sm:$0x80] %vm1615_vm6, %v1606_v46 }
 0xcc7   :  { %1622 = vst.msk [vmem:[#allocation2 - $0x7] sm:$0x80] %vm1621_vm7, %v4804_v21 }
 0xcc8   :  { %1626 = vst.msk [vmem:[#allocation2 + $0x7] sm:$0x80] %vm1625_vm8, %v4804_v21 }
 0xcce   :  { %v1651_v52 = vld [vmem:[#allocation2] sm:$0xff] }
 0xccf   :  { %1708 = vmatmul.f32.vlgmr.msra.gmra.mxu0 %v1651_v52  ;;  %1731 = vmatmul.f32.vlgmr.msra.gmra.mxu1 %v1651_v52  ;;  %v1652_v26 = vld [vmem:[#allocation2 + $0x8] sm:$0xff] }
 0xcd0   :  { %2196 = vmatpush.msra.mxu0 %v4849_v10  ;;  %2216 = vmatpush.msra.mxu1 %v4857_v17 }
 0xcd2   :  { %2197 = vmatpush.msra.mxu0 %v4867_v41  ;;  %2217 = vmatpush.msra.mxu1 %v4872_v43 }
 0xcd4   :  { %2198 = vmatpush.msra.mxu0 %v4877_v62  ;;  %2218 = vmatpush.msra.mxu1 %v4882_v12 }
 0xcd6   :  { %2199 = vmatpush.msra.mxu0 %v4895_v7  ;;  %2219 = vmatpush.msra.mxu1 %v4900_v15 }
 0xcd7   :  { %1711 = vmatmul.f32.gmra.mxu0 %v1652_v26  ;;  %1734 = vmatmul.f32.gmra.mxu1 %v1652_v26 }
 0xcd8   :  { %2200 = vmatpush.msra.mxu0 %v4913_v44  ;;  %2220 = vmatpush.msra.mxu1 %v4918_v28 }
 0xcda   :  { %2201 = vmatpush.msra.mxu0 %v4959_v60  ;;  %2221 = vmatpush.msra.mxu1 %v4964_v27 }
 0xcdc   :  { %2202 = vmatpush.msra.mxu0 %v4977_v61  ;;  %2222 = vmatpush.msra.mxu1 %v4982_v53 }
 0xcde   :  { %2203 = vmatpush.msra.mxu0 %v4993_v55  ;;  %2223 = vmatpush.msra.mxu1 %v4998_v35 }
 0xcf0   :  { %v1755_v36 = vpop.f32.mrf.mxu2 }
 0xcf1   :  { %v1818_v5 = vadd.f32 %v5098_v0, %v1755_v36 }
 0xd20   :  { %v1775_v30 = vpop.f32.mrf.mxu3 }
 0xd4c   :  { %v1732_v33 = vpop.f32.mrf.mxu1  ;;  %v1709_v40 = vpop.f32.mrf.mxu0 }
 0xd4d   :  { %v5092_v51 = vadd.f32 %v1732_v33, %v1689_v32  ;;  %v5104_v42 = vadd.f32 %v1709_v40, %v1688_v4 }
 0xd4f   :  { %v1778_v50 = vadd.f32 %v1775_v30, %v5092_v51  ;;  %v1798_v56 = vadd.f32 %v1755_v36, %v5104_v42 }
 0xd51   :  { %v3715_v38 = vmul.f32 -1.442695, %v1778_v50  ;;  %v3716_v8 = vmul.f32 -1.442695, %v1798_v56 }
 0xd53   :  { %3995 = vpow2.f32 %v3715_v38 }
 0xd59   :  { %v3996_v21 = vpop.eup %3995 }
 0xd5a   :  { %v1782_v24 = vadd.f32 1.0, %v3996_v21 }
 0xd5c   :  { %3997 = vrcp.f32 %v1782_v24  ;;  %v1794_v1 = vand.u32 2147483648, %v1782_v24  ;;  %v1792_v3 = vand.u32 2147483647, %v1782_v24  ;;  %vm1788_vm6 = vweird.f32 %v1782_v24 }
 0xd5e   :  { %v1795_v6 = vor.u32 1.1754944e-38, %v1794_v1  ;;  %vm1793_vm8 = vcmp.eq.f32.partialorder %v1792_v3, 8.507059e+37 }
 0xd62   :  { %v3998_v16 = vpop.eup %3997 }
 0xd63   :  { %v1784_v37 = vmul.f32 %v3998_v16, %v1782_v24  ;;  %vm1789_vm15 = vweird.f32 %v3998_v16 }
 0xd64   :  { %vm1790_vm7 = vmor %vm1788_vm6, %vm1789_vm15 }
 0xd65   :  { %v1785_v59 = vsub.f32 1.0, %v1784_v37 }
 0xd67   :  { %v1786_v2 = vmul.f32 %v3998_v16, %v1785_v59 }
 0xd69   :  { %v1787_v14 = vadd.f32 %v3998_v16, %v1786_v2 }
 0xd6b   :  { %v1791_v20 = vsel %vm1790_vm7, %v3998_v16, %v1787_v14 }
 0xd6c   :  { %v1796_v11 = vsel %vm1793_vm8, %v1795_v6, %v1791_v20 }
 0xd6d   :  { %v1819_v45 = vmul.f32 %v1818_v5, %v1796_v11 }
 0xd6f   :  { %v1820_v63 = vadd.f32 %v1819_v45, %v5104_v42 }
 0xd71   :  { %3999 = vtanh.f32 %v1820_v63 }
 0xd72   :  { %4001 = vpow2.f32 %v3716_v8 }
 0xd77   :  { %v4000_v23 = vpop.eup %3999 }
 0xd78   :  { %1824 = vrot.lane.b32.xlu0 %v4000_v23, %s4201_s25  ;;  %v4002_v9 = vpop.eup %4001 }
 0xd79   :  { %v1802_v31 = vadd.f32 1.0, %v4002_v9 }
 0xd7b   :  { %4003 = vrcp.f32 %v1802_v31  ;;  %v1814_v49 = vand.u32 2147483648, %v1802_v31  ;;  %vm1808_vm6 = vweird.f32 %v1802_v31  ;;  %v1812_v58 = vand.u32 2147483647, %v1802_v31 }
 0xd7d   :  { %v1815_v54 = vor.u32 1.1754944e-38, %v1814_v49  ;;  %vm1813_vm8 = vcmp.eq.f32.partialorder %v1812_v58, 8.507059e+37 }
 0xd81   :  { %v4004_v18 = vpop.eup %4003 }
 0xd82   :  { %v1804_v48 = vmul.f32 %v4004_v18, %v1802_v31  ;;  %vm1809_vm15 = vweird.f32 %v4004_v18 }
 0xd83   :  { %vm1810_vm7 = vmor %vm1808_vm6, %vm1809_vm15 }
 0xd84   :  { %v1805_v29 = vsub.f32 1.0, %v1804_v48 }
 0xd86   :  { %v1806_v13 = vmul.f32 %v4004_v18, %v1805_v29 }
 0xd88   :  { %v1807_v57 = vadd.f32 %v4004_v18, %v1806_v13 }
 0xd8a   :  { %v1811_v39 = vsel %vm1810_vm7, %v4004_v18, %v1807_v57 }
 0xd8b   :  { %v1816_v25 = vsel %vm1813_vm8, %v1815_v54, %v1811_v39 }
 0xd8c   :  { %v1822_v22 = vsub.f32 1.0, %v1816_v25  ;;  %v1828_v52 = vmul.f32 0.0, %v1816_v25 }
 0xdea   :  { %v1825_v34 = vpop.permute.xlu0 %1824 }
 0xdeb   :  { %v1827_v46 = vmul.f32 %v1825_v34, %v1822_v22 }
 0xded   :  { %v5109_v26 = vadd.f32 %v1828_v52, %v1827_v46 }
 0xdef   :  { %1831 = vrot.lane.b32.xlu1 %v5109_v26, %s4201_s25  ;;  %v1939_v52 = vrot.slane %v5109_v26, 6 }
 0xe61   :  { %v1832_v33 = vpop.permute.xlu1 %1831 }
 0xe62   :  { %1834 = vst.msk [vmem:[#allocation3] sm:$0x3] %vm276_vm1, %v1832_v33  ;;  %3717 = vmatmul.msk.f32.vlgmr.msrb.gmra.mxu2 %vm109_vm2, %v1832_v33  ;;  %3718 = vmatmul.msk.f32.vlgmr.msrb.gmra.mxu3 %vm109_vm2, %v1832_v33 }
 0xe63   :  { %1835 = vst.msk [vmem:[#allocation3 + $0xe] sm:$0x3] %vm278_vm3, %v1832_v33  ;;  %2299 = vmatpush.msrb.mxu2 %v4849_v10  ;;  %2319 = vmatpush.msrb.mxu3 %v4857_v17 }
 0xe64   :  { %1836 = vst.msk [vmem:[#allocation3 + $0xe] sm:$0x3] %vm281_vm4, %v5109_v26 }
 0xe65   :  { %1837 = vst.msk [vmem:[#allocation3] sm:$0x3] %vm283_vm5, %v5109_v26  ;;  %2300 = vmatpush.msrb.mxu2 %v4867_v41  ;;  %2320 = vmatpush.msrb.mxu3 %v4872_v43  ;;  %v5165_v26 = vpop.f32.mrf.mxu1 }
 0xe67   :  { %2301 = vmatpush.msrb.mxu2 %v4877_v62  ;;  %2321 = vmatpush.msrb.mxu3 %v4882_v12 }
 0xe69   :  { %2302 = vmatpush.msrb.mxu2 %v4895_v7  ;;  %2322 = vmatpush.msrb.mxu3 %v4900_v15 }
 0xe6b   :  { %2303 = vmatpush.msrb.mxu2 %v4913_v44  ;;  %2323 = vmatpush.msrb.mxu3 %v4918_v28 }
 0xe6d   :  { %2304 = vmatpush.msrb.mxu2 %v4959_v60  ;;  %2324 = vmatpush.msrb.mxu3 %v4964_v27 }
 0xe6f   :  { %2305 = vmatpush.msrb.mxu2 %v4977_v61  ;;  %2325 = vmatpush.msrb.mxu3 %v4982_v53 }
 0xe71   :  { %2306 = vmatpush.msrb.mxu2 %v4993_v55  ;;  %2326 = vmatpush.msrb.mxu3 %v4998_v35 }
 0xee5   :  { %v1877_v30 = vpop.f32.mrf.mxu3  ;;  %v1857_v1 = vpop.f32.mrf.mxu2 }
 0xee6   :  { %v1881_v50 = vrot.slane %v1877_v30, 6  ;;  %v1926_v36 = vadd.f32 %v5098_v0, %v1857_v1  ;;  %v1904_v8 = vrot.slane %v1857_v1, 6 }
 0xee8   :  { %v1883_v38 = vadd.f32 %v1881_v50, %v5092_v51  ;;  %v1928_v20 = vrot.slane %v1926_v36, 6  ;;  %v1906_v9 = vadd.f32 %v1904_v8, %v5104_v42  ;;  %v5168_v36 = vpop.f32.mrf.mxu0 }
 0xeea   :  { %v3719_v21 = vmul.f32 -1.442695, %v1883_v38  ;;  %v3720_v31 = vmul.f32 -1.442695, %v1906_v9 }
 0xeec   :  { %4005 = vpow2.f32 %v3719_v21 }
 0xef2   :  { %v4006_v24 = vpop.eup %4005 }
 0xef3   :  { %v1887_v16 = vadd.f32 1.0, %v4006_v24 }
 0xef5   :  { %4007 = vrcp.f32 %v1887_v16  ;;  %v1899_v3 = vand.u32 2147483648, %v1887_v16  ;;  %v1897_v14 = vand.u32 2147483647, %v1887_v16  ;;  %vm1893_vm6 = vweird.f32 %v1887_v16 }
 0xef7   :  { %v1900_v6 = vor.u32 1.1754944e-38, %v1899_v3  ;;  %vm1898_vm8 = vcmp.eq.f32.partialorder %v1897_v14, 8.507059e+37 }
 0xefb   :  { %v4008_v37 = vpop.eup %4007 }
 0xefc   :  { %v1889_v59 = vmul.f32 %v4008_v37, %v1887_v16  ;;  %vm1894_vm15 = vweird.f32 %v4008_v37 }
 0xefd   :  { %vm1895_vm7 = vmor %vm1893_vm6, %vm1894_vm15 }
 0xefe   :  { %v1890_v2 = vsub.f32 1.0, %v1889_v59 }
 0xf00   :  { %v1891_v5 = vmul.f32 %v4008_v37, %v1890_v2 }
 0xf02   :  { %v1892_v40 = vadd.f32 %v4008_v37, %v1891_v5 }
 0xf04   :  { %v1896_v11 = vsel %vm1895_vm7, %v4008_v37, %v1892_v40 }
 0xf05   :  { %v1901_v45 = vsel %vm1898_vm8, %v1900_v6, %v1896_v11 }
 0xf06   :  { %v1930_v63 = vmul.f32 %v1928_v20, %v1901_v45 }
 0xf08   :  { %v1931_v23 = vadd.f32 %v1930_v63, %v5104_v42 }
 0xf0a   :  { %4009 = vtanh.f32 %v1931_v23 }
 0xf0b   :  { %4011 = vpow2.f32 %v3720_v31 }
 0xf10   :  { %v4010_v56 = vpop.eup %4009 }
 0xf11   :  { %1935 = vrot.lane.b32.xlu2 %v4010_v56, %s4201_s25  ;;  %v4012_v18 = vpop.eup %4011 }
 0xf12   :  { %v1910_v48 = vadd.f32 1.0, %v4012_v18 }
 0xf14   :  { %4013 = vrcp.f32 %v1910_v48  ;;  %v1922_v39 = vand.u32 2147483648, %v1910_v48  ;;  %vm1916_vm6 = vweird.f32 %v1910_v48  ;;  %v1920_v54 = vand.u32 2147483647, %v1910_v48 }
 0xf16   :  { %v1923_v22 = vor.u32 1.1754944e-38, %v1922_v39  ;;  %vm1921_vm8 = vcmp.eq.f32.partialorder %v1920_v54, 8.507059e+37 }
 0xf1a   :  { %v4014_v29 = vpop.eup %4013 }
 0xf1b   :  { %v1912_v13 = vmul.f32 %v4014_v29, %v1910_v48  ;;  %vm1917_vm15 = vweird.f32 %v4014_v29 }
 0xf1c   :  { %vm1918_vm7 = vmor %vm1916_vm6, %vm1917_vm15 }
 0xf1d   :  { %v1913_v57 = vsub.f32 1.0, %v1912_v13 }
 0xf1f   :  { %v1914_v49 = vmul.f32 %v4014_v29, %v1913_v57 }
 0xf21   :  { %v1915_v58 = vadd.f32 %v4014_v29, %v1914_v49 }
 0xf23   :  { %v1919_v25 = vsel %vm1918_vm7, %v4014_v29, %v1915_v58 }
 0xf24   :  { %v1924_v34 = vsel %vm1921_vm8, %v1923_v22, %v1919_v25 }
 0xf25   :  { %v1933_v46 = vsub.f32 1.0, %v1924_v34  ;;  %v1941_v50 = vmul.f32 %v1939_v52, %v1924_v34 }
 0xf6b   :  { %v1936_v33 = vpop.permute.xlu2 %1935 }
 0xf6c   :  { %v1938_v30 = vmul.f32 %v1936_v33, %v1933_v46 }
 0xf6e   :  { %v5143_v38 = vadd.f32 %v1941_v50, %v1938_v30 }
 0xf70   :  { %v1951_v21 = vrot.slane %v5143_v38, 2 }
 0xf72   :  { %1952 = vrot.lane.b32.xlu0 %v1951_v21, %s4201_s25 }
 0xfe4   :  { %v1953_v24 = vpop.permute.xlu0 %1952 }
 0xfe5   :  { %3721 = vmatmul.msk.f32.vlgmr.msrb.gmra.mxu0 %vm109_vm2, %v1953_v24  ;;  %3722 = vmatmul.msk.f32.vlgmr.msrb.gmra.mxu1 %vm109_vm2, %v1953_v24  ;;  %v2055_v24 = vrot.slane %v5143_v38, 6 }
 0xfe6   :  { %2415 = vmatpush.msrb.mxu0 %v4849_v10  ;;  %2435 = vmatpush.msrb.mxu1 %v4857_v17 }
 0xfe8   :  { %2416 = vmatpush.msrb.mxu0 %v4867_v41  ;;  %2436 = vmatpush.msrb.mxu1 %v4872_v43 }
 0xfea   :  { %2417 = vmatpush.msrb.mxu0 %v4877_v62  ;;  %2437 = vmatpush.msrb.mxu1 %v4882_v12 }
 0xfec   :  { %2418 = vmatpush.msrb.mxu0 %v4895_v7  ;;  %2438 = vmatpush.msrb.mxu1 %v4900_v15 }
 0xfee   :  { %2419 = vmatpush.msrb.mxu0 %v4913_v44  ;;  %2439 = vmatpush.msrb.mxu1 %v4918_v28 }
 0xff0   :  { %2420 = vmatpush.msrb.mxu0 %v4959_v60  ;;  %2440 = vmatpush.msrb.mxu1 %v4964_v27 }
 0xff2   :  { %2421 = vmatpush.msrb.mxu0 %v4977_v61  ;;  %2441 = vmatpush.msrb.mxu1 %v4982_v53 }
 0xff4   :  { %2422 = vmatpush.msrb.mxu0 %v4993_v55  ;;  %2442 = vmatpush.msrb.mxu1 %v4998_v35 }
0x1062   :  { %v1993_v16 = vpop.f32.mrf.mxu1  ;;  %v1973_v40 = vpop.f32.mrf.mxu0 }
0x1063   :  { %v1997_v37 = vrot.slane %v1993_v16, 4  ;;  %v2042_v11 = vadd.f32 %v5098_v0, %v1973_v40  ;;  %v2020_v13 = vrot.slane %v1973_v40, 4 }
0x1065   :  { %v1999_v59 = vadd.f32 %v1997_v37, %v5092_v51  ;;  %v2044_v8 = vrot.slane %v2042_v11, 4  ;;  %v2022_v57 = vadd.f32 %v2020_v13, %v5104_v42 }
0x1067   :  { %v3723_v1 = vmul.f32 -1.442695, %v1999_v59  ;;  %v3724_v49 = vmul.f32 -1.442695, %v2022_v57 }
0x1069   :  { %4015 = vpow2.f32 %v3723_v1 }
0x106f   :  { %v4016_v2 = vpop.eup %4015 }
0x1070   :  { %v2003_v3 = vadd.f32 1.0, %v4016_v2 }
0x1072   :  { %4017 = vrcp.f32 %v2003_v3  ;;  %v2015_v20 = vand.u32 2147483648, %v2003_v3  ;;  %v2013_v63 = vand.u32 2147483647, %v2003_v3  ;;  %vm2009_vm6 = vweird.f32 %v2003_v3 }
0x1074   :  { %v2016_v56 = vor.u32 1.1754944e-38, %v2015_v20  ;;  %vm2014_vm8 = vcmp.eq.f32.partialorder %v2013_v63, 8.507059e+37 }
0x1078   :  { %v4018_v5 = vpop.eup %4017 }
0x1079   :  { %v2005_v14 = vmul.f32 %v4018_v5, %v2003_v3  ;;  %vm2010_vm15 = vweird.f32 %v4018_v5 }
0x107a   :  { %vm2011_vm7 = vmor %vm2009_vm6, %vm2010_vm15 }
0x107b   :  { %v2006_v6 = vsub.f32 1.0, %v2005_v14 }
0x107d   :  { %v2007_v45 = vmul.f32 %v4018_v5, %v2006_v6 }
0x107f   :  { %v2008_v23 = vadd.f32 %v4018_v5, %v2007_v45 }
0x1081   :  { %v2012_v9 = vsel %vm2011_vm7, %v4018_v5, %v2008_v23 }
0x1082   :  { %v2017_v31 = vsel %vm2014_vm8, %v2016_v56, %v2012_v9 }
0x1083   :  { %v2046_v18 = vmul.f32 %v2044_v8, %v2017_v31 }
0x1085   :  { %v2047_v48 = vadd.f32 %v2046_v18, %v5104_v42 }
0x1087   :  { %4019 = vtanh.f32 %v2047_v48 }
0x1088   :  { %4021 = vpow2.f32 %v3724_v49 }
0x108d   :  { %v4020_v29 = vpop.eup %4019 }
0x108e   :  { %2051 = vrot.lane.b32.xlu1 %v4020_v29, %s4201_s25  ;;  %v4022_v58 = vpop.eup %4021 }
0x108f   :  { %v2026_v39 = vadd.f32 1.0, %v4022_v58 }
0x1091   :  { %4023 = vrcp.f32 %v2026_v39  ;;  %v2038_v52 = vand.u32 2147483648, %v2026_v39  ;;  %vm2032_vm6 = vweird.f32 %v2026_v39  ;;  %v2036_v33 = vand.u32 2147483647, %v2026_v39 }
0x1093   :  { %v2039_v50 = vor.u32 1.1754944e-38, %v2038_v52  ;;  %vm2037_vm8 = vcmp.eq.f32.partialorder %v2036_v33, 8.507059e+37 }
0x1097   :  { %v4024_v54 = vpop.eup %4023 }
0x1098   :  { %v2028_v25 = vmul.f32 %v4024_v54, %v2026_v39  ;;  %vm2033_vm15 = vweird.f32 %v4024_v54 }
0x1099   :  { %vm2034_vm7 = vmor %vm2032_vm6, %vm2033_vm15 }
0x109a   :  { %v2029_v22 = vsub.f32 1.0, %v2028_v25 }
0x109c   :  { %v2030_v34 = vmul.f32 %v4024_v54, %v2029_v22 }
0x109e   :  { %v2031_v46 = vadd.f32 %v4024_v54, %v2030_v34 }
0x10a0   :  { %v2035_v30 = vsel %vm2034_vm7, %v4024_v54, %v2031_v46 }
0x10a1   :  { %v2040_v21 = vsel %vm2037_vm8, %v2039_v50, %v2035_v30  ;;  %v5212_v30 = vadd.f32 %v5165_v26, %v1689_v32 }
0x10a2   :  { %v2049_v16 = vsub.f32 1.0, %v2040_v21  ;;  %v2057_v1 = vmul.f32 %v2055_v24, %v2040_v21 }
0x1100   :  { %v2052_v37 = vpop.permute.xlu1 %2051 }
0x1101   :  { %v2054_v59 = vmul.f32 %v2052_v37, %v2049_v16 }
0x1103   :  { %v5175_v2 = vadd.f32 %v2057_v1, %v2054_v59 }
0x1105   :  { %v2067_v3 = vrot.slane %v5175_v2, 4 }
0x1107   :  { %2068 = vrot.lane.b32.xlu2 %v2067_v3, %s4201_s25 }
0x1161   :  { %v2069_v5 = vpop.permute.xlu2 %2068 }
0x1162   :  { %3725 = vmatmul.msk.f32.vlgmr.msra.gmra.mxu2 %vm109_vm2, %v2069_v5  ;;  %3726 = vmatmul.msk.f32.vlgmr.msra.gmra.mxu3 %vm109_vm2, %v2069_v5 }
0x1163   :  { %2531 = vmatpush.msra.mxu2 %v4849_v10  ;;  %2551 = vmatpush.msra.mxu3 %v4857_v17 }
0x1165   :  { %2532 = vmatpush.msra.mxu2 %v4867_v41  ;;  %2552 = vmatpush.msra.mxu3 %v4872_v43 }
0x1167   :  { %2533 = vmatpush.msra.mxu2 %v4877_v62  ;;  %2553 = vmatpush.msra.mxu3 %v4882_v12 }
0x1169   :  { %2534 = vmatpush.msra.mxu2 %v4895_v7  ;;  %2554 = vmatpush.msra.mxu3 %v4900_v15 }
0x116b   :  { %2535 = vmatpush.msra.mxu2 %v4913_v44  ;;  %2555 = vmatpush.msra.mxu3 %v4918_v28 }
0x116d   :  { %2536 = vmatpush.msra.mxu2 %v4959_v60  ;;  %2556 = vmatpush.msra.mxu3 %v4964_v27 }
0x116f   :  { %2537 = vmatpush.msra.mxu2 %v4977_v61  ;;  %2557 = vmatpush.msra.mxu3 %v4982_v53 }
0x1171   :  { %2538 = vmatpush.msra.mxu2 %v4993_v55  ;;  %2558 = vmatpush.msra.mxu3 %v4998_v35 }
0x11e5   :  { %v2109_v10 = vpop.f32.mrf.mxu3  ;;  %v2089_v44 = vpop.f32.mrf.mxu2 }
0x11e6   :  { %v2113_v17 = vrot.slane %v2109_v10, 2  ;;  %v2158_v27 = vadd.f32 %v5098_v0, %v2089_v44  ;;  %v2136_v45 = vrot.slane %v2089_v44, 2 }
0x11e8   :  { %v2115_v41 = vadd.f32 %v2113_v17, %v5092_v51  ;;  %v2160_v51 = vrot.slane %v2158_v27, 2  ;;  %v2138_v63 = vadd.f32 %v2136_v45, %v5104_v42 }
0x11ea   :  { %v3727_v43 = vmul.f32 -1.442695, %v2115_v41  ;;  %v3728_v23 = vmul.f32 -1.442695, %v2138_v63 }
0x11ec   :  { %4025 = vpow2.f32 %v3727_v43 }
0x11f2   :  { %v4026_v62 = vpop.eup %4025 }
0x11f3   :  { %v2119_v12 = vadd.f32 1.0, %v4026_v62 }
0x11f5   :  { %4027 = vrcp.f32 %v2119_v12  ;;  %v2131_v60 = vand.u32 2147483648, %v2119_v12  ;;  %v2129_v53 = vand.u32 2147483647, %v2119_v12  ;;  %vm2125_vm6 = vweird.f32 %v2119_v12 }
0x11f7   :  { %v2132_v35 = vor.u32 1.1754944e-38, %v2131_v60  ;;  %vm2130_vm8 = vcmp.eq.f32.partialorder %v2129_v53, 8.507059e+37 }
0x11fb   :  { %v4028_v7 = vpop.eup %4027 }
0x11fc   :  { %v2121_v15 = vmul.f32 %v4028_v7, %v2119_v12  ;;  %vm2126_vm15 = vweird.f32 %v4028_v7 }
0x11fd   :  { %vm2127_vm7 = vmor %vm2125_vm6, %vm2126_vm15 }
0x11fe   :  { %v2122_v28 = vsub.f32 1.0, %v2121_v15 }
0x1200   :  { %v2123_v61 = vmul.f32 %v4028_v7, %v2122_v28 }
0x1202   :  { %v2124_v55 = vadd.f32 %v4028_v7, %v2123_v61 }
0x1204   :  { %v2128_v14 = vsel %vm2127_vm7, %v4028_v7, %v2124_v55  ;;  %v5219_v7 = vadd.f32 %v5168_v36, %v1688_v4 }
0x1205   :  { %v2133_v40 = vsel %vm2130_vm8, %v2132_v35, %v2128_v14 }
0x1206   :  { %v2162_v6 = vmul.f32 %v2160_v51, %v2133_v40 }
0x1208   :  { %v2163_v20 = vadd.f32 %v2162_v6, %v5104_v42  ;;  %v2171_v42 = vrot.slane %v5175_v2, 6 }
0x120a   :  { %4029 = vtanh.f32 %v2163_v20 }
0x120b   :  { %4031 = vpow2.f32 %v3728_v23 }
0x1210   :  { %v4030_v11 = vpop.eup %4029 }
0x1211   :  { %2167 = vrot.lane.b32.xlu0 %v4030_v11, %s4201_s25  ;;  %v4032_v56 = vpop.eup %4031 }
0x1212   :  { %v2142_v8 = vadd.f32 1.0, %v4032_v56 }
0x1214   :  { %4033 = vrcp.f32 %v2142_v8  ;;  %v2154_v13 = vand.u32 2147483648, %v2142_v8  ;;  %vm2148_vm6 = vweird.f32 %v2142_v8  ;;  %v2152_v57 = vand.u32 2147483647, %v2142_v8 }
0x1216   :  { %v2155_v58 = vor.u32 1.1754944e-38, %v2154_v13  ;;  %vm2153_vm8 = vcmp.eq.f32.partialorder %v2152_v57, 8.507059e+37 }
0x121a   :  { %v4034_v9 = vpop.eup %4033 }
0x121b   :  { %v2144_v31 = vmul.f32 %v4034_v9, %v2142_v8  ;;  %vm2149_vm15 = vweird.f32 %v4034_v9 }
0x121c   :  { %vm2150_vm7 = vmor %vm2148_vm6, %vm2149_vm15 }
0x121d   :  { %v2145_v18 = vsub.f32 1.0, %v2144_v31 }
0x121f   :  { %v2146_v48 = vmul.f32 %v4034_v9, %v2145_v18 }
0x1221   :  { %v2147_v29 = vadd.f32 %v4034_v9, %v2146_v48 }
0x1223   :  { %v2151_v49 = vsel %vm2150_vm7, %v4034_v9, %v2147_v29 }
0x1224   :  { %v2156_v39 = vsel %vm2153_vm8, %v2155_v58, %v2151_v49 }
0x1225   :  { %v2165_v54 = vsub.f32 1.0, %v2156_v39  ;;  %v2173_v34 = vmul.f32 %v2171_v42, %v2156_v39 }
0x1283   :  { %v2168_v25 = vpop.permute.xlu0 %2167 }
0x1284   :  { %v2170_v22 = vmul.f32 %v2168_v25, %v2165_v54 }
0x1286   :  { %v5203_v46 = vadd.f32 %v2173_v34, %v2170_v22 }
0x1288   :  { %v2183_v52 = vrot.slane %v5203_v46, 6 }
0x128a   :  { %2184 = vrot.lane.b32.xlu1 %v2183_v52, %s4201_s25 }
0x12fc   :  { %v2185_v33 = vpop.permute.xlu1 %2184 }
0x12fd   :  { %3729 = vmatmul.msk.f32.vlgmr.msra.gmra.mxu0 %vm109_vm2, %v2185_v33  ;;  %3730 = vmatmul.msk.f32.vlgmr.msra.gmra.mxu1 %vm109_vm2, %v2185_v33 }
0x137a   :  { %v2225_v50 = vpop.f32.mrf.mxu1  ;;  %v2205_v41 = vpop.f32.mrf.mxu0 }
0x137b   :  { %v2228_v21 = vadd.f32 %v2225_v50, %v5212_v30  ;;  %v2268_v26 = vadd.f32 %v5098_v0, %v2205_v41  ;;  %v2248_v60 = vadd.f32 %v2205_v41, %v5219_v7 }
0x137d   :  { %v3731_v24 = vmul.f32 -1.442695, %v2228_v21  ;;  %v3732_v27 = vmul.f32 -1.442695, %v2248_v60 }
0x137f   :  { %4035 = vpow2.f32 %v3731_v24 }
0x1385   :  { %v4036_v16 = vpop.eup %4035 }
0x1386   :  { %v2232_v37 = vadd.f32 1.0, %v4036_v16 }
0x1388   :  { %4037 = vrcp.f32 %v2232_v37  ;;  %v2244_v5 = vand.u32 2147483648, %v2232_v37  ;;  %v2242_v17 = vand.u32 2147483647, %v2232_v37  ;;  %vm2238_vm6 = vweird.f32 %v2232_v37 }
0x138a   :  { %v2245_v32 = vor.u32 1.1754944e-38, %v2244_v5  ;;  %vm2243_vm8 = vcmp.eq.f32.partialorder %v2242_v17, 8.507059e+37 }
0x138e   :  { %v4038_v59 = vpop.eup %4037 }
0x138f   :  { %v2234_v1 = vmul.f32 %v4038_v59, %v2232_v37  ;;  %vm2239_vm15 = vweird.f32 %v4038_v59 }
0x1390   :  { %vm2240_vm7 = vmor %vm2238_vm6, %vm2239_vm15 }
0x1391   :  { %v2235_v3 = vsub.f32 1.0, %v2234_v1 }
0x1393   :  { %v2236_v10 = vmul.f32 %v4038_v59, %v2235_v3 }
0x1395   :  { %v2237_v43 = vadd.f32 %v4038_v59, %v2236_v10 }
0x1397   :  { %v2241_v62 = vsel %vm2240_vm7, %v4038_v59, %v2237_v43 }
0x1398   :  { %v2246_v12 = vsel %vm2243_vm8, %v2245_v32, %v2241_v62 }
0x1399   :  { %v2269_v15 = vmul.f32 %v2268_v26, %v2246_v12 }
0x139b   :  { %v2270_v44 = vadd.f32 %v2269_v15, %v5219_v7 }
0x139d   :  { %4039 = vtanh.f32 %v2270_v44 }
0x139e   :  { %4041 = vpow2.f32 %v3732_v27 }
0x13a3   :  { %v4040_v28 = vpop.eup %4039 }
0x13a4   :  { %2274 = vrot.lane.b32.xlu2 %v4040_v28, %s4201_s25  ;;  %v4042_v61 = vpop.eup %4041 }
0x13a5   :  { %v2252_v53 = vadd.f32 1.0, %v4042_v61 }
0x13a7   :  { %4043 = vrcp.f32 %v2252_v53  ;;  %v2264_v36 = vand.u32 2147483648, %v2252_v53  ;;  %vm2258_vm6 = vweird.f32 %v2252_v53  ;;  %v2262_v14 = vand.u32 2147483647, %v2252_v53 }
0x13a9   :  { %v2265_v6 = vor.u32 1.1754944e-38, %v2264_v36  ;;  %vm2263_vm8 = vcmp.eq.f32.partialorder %v2262_v14, 8.507059e+37 }
0x13ad   :  { %v4044_v55 = vpop.eup %4043 }
0x13ae   :  { %v2254_v35 = vmul.f32 %v4044_v55, %v2252_v53  ;;  %vm2259_vm15 = vweird.f32 %v4044_v55 }
0x13af   :  { %vm2260_vm7 = vmor %vm2258_vm6, %vm2259_vm15 }
0x13b0   :  { %v2255_v47 = vsub.f32 1.0, %v2254_v35 }
0x13b2   :  { %v2256_v51 = vmul.f32 %v4044_v55, %v2255_v47 }
0x13b4   :  { %v2257_v4 = vadd.f32 %v4044_v55, %v2256_v51 }
0x13b6   :  { %v2261_v40 = vsel %vm2260_vm7, %v4044_v55, %v2257_v4 }
0x13b7   :  { %v2266_v20 = vsel %vm2263_vm8, %v2265_v6, %v2261_v40 }
0x13b8   :  { %v2272_v11 = vsub.f32 1.0, %v2266_v20  ;;  %v2279_v23 = vmul.f32 %v2266_v20, %v2183_v52 }
0x13fe   :  { %v2275_v45 = vpop.permute.xlu2 %2274 }
0x13ff   :  { %v2277_v63 = vmul.f32 %v2275_v45, %v2272_v11 }
0x1401   :  { %v5224_v56 = vadd.f32 %v2279_v23, %v2277_v63 }
0x1403   :  { %2282 = vrot.lane.b32.xlu0 %v5224_v56, %s4201_s25  ;;  %v2390_v27 = vrot.slane %v5224_v56, 6 }
0x1475   :  { %v5228_v8 = vpop.permute.xlu0 %2282 }
0x1476   :  { %3733 = vmatmul.msk.f32.vlgmr.msrb.gmra.mxu2 %vm109_vm2, %v5228_v8  ;;  %3734 = vmatmul.msk.f32.vlgmr.msrb.gmra.mxu3 %vm109_vm2, %v5228_v8 }
0x14f9   :  { %v2328_v9 = vpop.f32.mrf.mxu3  ;;  %v2308_v58 = vpop.f32.mrf.mxu2 }
0x14fa   :  { %v2332_v31 = vrot.slane %v2328_v9, 6  ;;  %v2377_v54 = vadd.f32 %v5098_v0, %v2308_v58  ;;  %v2355_v59 = vrot.slane %v2308_v58, 6 }
0x14fc   :  { %v2334_v18 = vadd.f32 %v2332_v31, %v5212_v30  ;;  %v2379_v33 = vrot.slane %v2377_v54, 6  ;;  %v2357_v1 = vadd.f32 %v2355_v59, %v5219_v7 }
0x14fe   :  { %v3735_v48 = vmul.f32 -1.442695, %v2334_v18  ;;  %v3736_v3 = vmul.f32 -1.442695, %v2357_v1 }
0x1500   :  { %4045 = vpow2.f32 %v3735_v48 }
0x1506   :  { %v4046_v29 = vpop.eup %4045 }
0x1507   :  { %v2338_v13 = vadd.f32 1.0, %v4046_v29 }
0x1509   :  { %4047 = vrcp.f32 %v2338_v13  ;;  %v2350_v42 = vand.u32 2147483648, %v2338_v13  ;;  %v2348_v22 = vand.u32 2147483647, %v2338_v13  ;;  %vm2344_vm6 = vweird.f32 %v2338_v13 }
0x150b   :  { %v2351_v52 = vor.u32 1.1754944e-38, %v2350_v42  ;;  %vm2349_vm8 = vcmp.eq.f32.partialorder %v2348_v22, 8.507059e+37 }
0x150f   :  { %v4048_v57 = vpop.eup %4047 }
0x1510   :  { %v2340_v49 = vmul.f32 %v4048_v57, %v2338_v13  ;;  %vm2345_vm15 = vweird.f32 %v4048_v57 }
0x1511   :  { %vm2346_vm7 = vmor %vm2344_vm6, %vm2345_vm15 }
0x1512   :  { %v2341_v39 = vsub.f32 1.0, %v2340_v49 }
0x1514   :  { %v2342_v25 = vmul.f32 %v4048_v57, %v2341_v39 }
0x1516   :  { %v2343_v34 = vadd.f32 %v4048_v57, %v2342_v25 }
0x1518   :  { %v2347_v50 = vsel %vm2346_vm7, %v4048_v57, %v2343_v34 }
0x1519   :  { %v2352_v21 = vsel %vm2349_vm8, %v2351_v52, %v2347_v50 }
0x151a   :  { %v2381_v24 = vmul.f32 %v2379_v33, %v2352_v21 }
0x151c   :  { %v2382_v16 = vadd.f32 %v2381_v24, %v5219_v7 }
0x151e   :  { %4049 = vtanh.f32 %v2382_v16 }
0x151f   :  { %4051 = vpow2.f32 %v3736_v3 }
0x1524   :  { %v4050_v37 = vpop.eup %4049 }
0x1525   :  { %2386 = vrot.lane.b32.xlu1 %v4050_v37, %s4201_s25  ;;  %v4052_v5 = vpop.eup %4051 }
0x1526   :  { %v2361_v10 = vadd.f32 1.0, %v4052_v5 }
0x1528   :  { %4053 = vrcp.f32 %v2361_v10  ;;  %v2373_v62 = vand.u32 2147483648, %v2361_v10  ;;  %vm2367_vm6 = vweird.f32 %v2361_v10  ;;  %v2371_v12 = vand.u32 2147483647, %v2361_v10 }
0x152a   :  { %v2374_v44 = vor.u32 1.1754944e-38, %v2373_v62  ;;  %vm2372_vm8 = vcmp.eq.f32.partialorder %v2371_v12, 8.507059e+37 }
0x152e   :  { %v4054_v17 = vpop.eup %4053 }
0x152f   :  { %v2363_v41 = vmul.f32 %v4054_v17, %v2361_v10  ;;  %vm2368_vm15 = vweird.f32 %v4054_v17 }
0x1530   :  { %vm2369_vm7 = vmor %vm2367_vm6, %vm2368_vm15 }
0x1531   :  { %v2364_v43 = vsub.f32 1.0, %v2363_v41 }
0x1533   :  { %v2365_v32 = vmul.f32 %v4054_v17, %v2364_v43 }
0x1535   :  { %v2366_v26 = vadd.f32 %v4054_v17, %v2365_v32 }
0x1537   :  { %v2370_v15 = vsel %vm2369_vm7, %v4054_v17, %v2366_v26 }
0x1538   :  { %v2375_v28 = vsel %vm2372_vm8, %v2374_v44, %v2370_v15 }
0x1539   :  { %v2384_v60 = vsub.f32 1.0, %v2375_v28  ;;  %v2392_v55 = vmul.f32 %v2390_v27, %v2375_v28 }
0x1597   :  { %v2387_v61 = vpop.permute.xlu1 %2386 }
0x1598   :  { %v2389_v53 = vmul.f32 %v2387_v61, %v2384_v60 }
0x159a   :  { %v5240_v35 = vadd.f32 %v2392_v55, %v2389_v53 }
0x159c   :  { %v2402_v47 = vrot.slane %v5240_v35, 2  ;;  %v2506_v10 = vrot.slane %v5240_v35, 6 }
0x159e   :  { %2403 = vrot.lane.b32.xlu2 %v2402_v47, %s4201_s25 }
0x15f8   :  { %v2404_v51 = vpop.permute.xlu2 %2403 }
0x15f9   :  { %3737 = vmatmul.msk.f32.vlgmr.msrb.gmra.mxu0 %vm109_vm2, %v2404_v51  ;;  %3738 = vmatmul.msk.f32.vlgmr.msrb.gmra.mxu1 %vm109_vm2, %v2404_v51 }
0x1676   :  { %v2444_v4 = vpop.f32.mrf.mxu1  ;;  %v2424_v63 = vpop.f32.mrf.mxu0 }
0x1677   :  { %v2448_v36 = vrot.slane %v2444_v4, 4  ;;  %v2493_v31 = vadd.f32 %v5098_v0, %v2424_v63  ;;  %v2471_v0 = vrot.slane %v2424_v63, 4 }
0x1679   :  { %v2450_v14 = vadd.f32 %v2448_v36, %v5212_v30  ;;  %v2495_v57 = vrot.slane %v2493_v31, 4  ;;  %v2473_v25 = vadd.f32 %v2471_v0, %v5219_v7  ;;  %v3793_v0 = vld [vmem:[%s5781_s2 + $0x1f8] sm:$0xff] }
0x167a   :  { %2721 = vmatpush.msra.mxu1 %v3793_v0 }
0x167b   :  { %v3739_v40 = vmul.f32 -1.442695, %v2450_v14  ;;  %v3740_v22 = vmul.f32 -1.442695, %v2473_v25  ;;  %v4172_v14 = vld [vmem:[%s5784_s5 + $0x1] ss:$0 sm:$0xff] }
0x167d   :  { %4055 = vpow2.f32 %v3739_v40 }
0x1683   :  { %v4056_v6 = vpop.eup %4055 }
0x1684   :  { %v2454_v20 = vadd.f32 1.0, %v4056_v6 }
0x1686   :  { %4057 = vrcp.f32 %v2454_v20  ;;  %v2466_v9 = vand.u32 2147483648, %v2454_v20  ;;  %v2464_v48 = vand.u32 2147483647, %v2454_v20  ;;  %vm2460_vm6 = vweird.f32 %v2454_v20 }
0x1688   :  { %v2467_v13 = vor.u32 1.1754944e-38, %v2466_v9  ;;  %vm2465_vm8 = vcmp.eq.f32.partialorder %v2464_v48, 8.507059e+37 }
0x168c   :  { %v4058_v11 = vpop.eup %4057 }
0x168d   :  { %v2456_v45 = vmul.f32 %v4058_v11, %v2454_v20  ;;  %vm2461_vm15 = vweird.f32 %v4058_v11 }
0x168e   :  { %vm2462_vm7 = vmor %vm2460_vm6, %vm2461_vm15 }
0x168f   :  { %v2457_v23 = vsub.f32 1.0, %v2456_v45 }
0x1691   :  { %v2458_v18 = vmul.f32 %v4058_v11, %v2457_v23 }
0x1693   :  { %v2459_v29 = vadd.f32 %v4058_v11, %v2458_v18 }
0x1695   :  { %v2463_v49 = vsel %vm2462_vm7, %v4058_v11, %v2459_v29 }
0x1696   :  { %v2468_v58 = vsel %vm2465_vm8, %v2467_v13, %v2463_v49 }
0x1697   :  { %v2497_v39 = vmul.f32 %v2495_v57, %v2468_v58 }
0x1699   :  { %v2498_v42 = vadd.f32 %v2497_v39, %v5219_v7 }
0x169b   :  { %4059 = vtanh.f32 %v2498_v42 }
0x169c   :  { %4061 = vpow2.f32 %v3740_v22  ;;  %v3791_v22 = vld [vmem:[%s5781_s2 + $0x1e8] sm:$0xff] }
0x169d   :  { %2722 = vmatpush.msra.mxu1 %v3791_v22 }
0x16a1   :  { %v4060_v54 = vpop.eup %4059 }
0x16a2   :  { %2502 = vrot.lane.b32.xlu0 %v4060_v54, %s4201_s25  ;;  %v4062_v34 = vpop.eup %4061  ;;  %v3792_v54 = vld [vmem:[%s5781_s2 + $0x1f0] sm:$0xff] }
0x16a3   :  { %v2477_v52 = vadd.f32 1.0, %v4062_v34  ;;  %2698 = vmatpush.msra.mxu0 %v3792_v54  ;;  %v3788_v34 = vld [vmem:[%s5781_s2 + $0x1d0] sm:$0xff] }
0x16a5   :  { %4063 = vrcp.f32 %v2477_v52  ;;  %v2489_v37 = vand.u32 2147483648, %v2477_v52  ;;  %vm2483_vm6 = vweird.f32 %v2477_v52  ;;  %v2487_v59 = vand.u32 2147483647, %v2477_v52 }
0x16a7   :  { %v2490_v3 = vor.u32 1.1754944e-38, %v2489_v37  ;;  %vm2488_vm8 = vcmp.eq.f32.partialorder %v2487_v59, 8.507059e+37  ;;  %v5334_v37 = vld [vmem:[%s5782_s3 + $0x178] sm:$0xff] }
0x16a8   :  { %2772 = vmatpush.msrb.mxu3 %v5334_v37 }
0x16aa   :  { %1944 = vrot.lane.b32.xlu0 %v5143_v38, %s4201_s25 }
0x16ab   :  { %v4064_v33 = vpop.eup %4063 }
0x16ac   :  { %v2479_v50 = vmul.f32 %v4064_v33, %v2477_v52  ;;  %vm2484_vm15 = vweird.f32 %v4064_v33  ;;  %v3789_v52 = vld [vmem:[%s5781_s2 + $0x1d8] sm:$0xff] }
0x16ad   :  { %vm2485_vm7 = vmor %vm2483_vm6, %vm2484_vm15  ;;  %vm5795_vm15 = vcmask 519426   ;;  %vm5796_vm6 = vcmask 781826   ;;  %2723 = vmatpush.msra.mxu1 %v3789_v52 }
0x16ae   :  { %v2480_v21 = vsub.f32 1.0, %v2479_v50  ;;  %v3787_v50 = vld [vmem:[%s5781_s2 + $0x1c8] sm:$0xff] }
0x16af   :  { %2724 = vmatpush.msra.mxu1 %v3787_v50 }
0x16b0   :  { %v2481_v24 = vmul.f32 %v4064_v33, %v2480_v21  ;;  %v5326_v21 = vld [vmem:[%s5782_s3 + $0x170] sm:$0xff] }
0x16b1   :  { %2752 = vmatpush.msrb.mxu2 %v5326_v21 }
0x16b2   :  { %2395 = vrot.lane.b32.xlu0 %v5240_v35, %s4201_s25  ;;  %v2482_v16 = vadd.f32 %v4064_v33, %v2481_v24 }
0x16b4   :  { %v2486_v1 = vsel %vm2485_vm7, %v4064_v33, %v2482_v16  ;;  %vm5797_vm7 = vcmask 1044226   ;;  %v3786_v33 = vld [vmem:[%s5781_s2 + $0x1c0] sm:$0xff]  ;;  %v3784_v16 = vld [vmem:[%s5781_s2 + $0x1b0] sm:$0xff] }
0x16b5   :  { %v2491_v5 = vsel %vm2488_vm8, %v2490_v3, %v2486_v1  ;;  %vm5798_vm8 = vmmov %vm5795_vm15  ;;  %v3785_v1 = vld [vmem:[%s5781_s2 + $0x1b8] sm:$0xff]  ;;  %v5344_v3 = vld [vmem:[%s5782_s3 + $0x160] sm:$0xff] }
0x16b6   :  { %v2500_v17 = vsub.f32 1.0, %v2491_v5  ;;  %v2508_v32 = vmul.f32 %v2506_v10, %v2491_v5  ;;  %v5349_v5 = vld [vmem:[%s5782_s3 + $0x168] sm:$0xff]  ;;  %2753 = vmatpush.msrb.mxu2 %v5344_v3  ;;  %2725 = vmatpush.msra.mxu1 %v3785_v1 }
0x16b7   :  { %2773 = vmatpush.msrb.mxu3 %v5349_v5 }
0x1714   :  { %v2503_v41 = vpop.permute.xlu0 %2502 }
0x1715   :  { %v2505_v43 = vmul.f32 %v2503_v41, %v2500_v17  ;;  %v5354_v17 = vld [vmem:[%s5782_s3 + $0x150] sm:$0xff]  ;;  %v5359_v41 = vld [vmem:[%s5782_s3 + $0x158] sm:$0xff] }
0x1716   :  { %2754 = vmatpush.msrb.mxu2 %v5354_v17  ;;  %2774 = vmatpush.msrb.mxu3 %v5359_v41 }
0x1717   :  { %v5256_v26 = vadd.f32 %v2508_v32, %v2505_v43  ;;  %v3782_v32 = vld [vmem:[%s5781_s2 + $0x1a0] sm:$0xff] }
0x1719   :  { %v2518_v62 = vrot.slane %v5256_v26, 4 }
0x171b   :  { %2519 = vrot.lane.b32.xlu1 %v2518_v62, %s4201_s25  ;;  %v3783_v62 = vld [vmem:[%s5781_s2 + $0x1a8] sm:$0xff] }
0x171c   :  { %v1945_v12 = vpop.permute.xlu0 %1944  ;;  %2726 = vmatpush.msra.mxu1 %v3783_v62 }
0x171d   :  { %1947 = vst.msk [vmem:[#allocation3] sm:$0xc] %vm669_vm12, %v1945_v12 }
0x171e   :  { %1948 = vst.msk [vmem:[#allocation3 + $0xa] sm:$0xc] %vm5795_vm15, %v1945_v12  ;;  %vm5799_vm15 = vmmov %vm5796_vm6 }
0x171f   :  { %1949 = vst.msk [vmem:[#allocation3 + $0xa] sm:$0xc] %vm5796_vm6, %v5143_v38  ;;  %vm5800_vm6 = vmmov %vm5797_vm7 }
0x1720   :  { %1950 = vst.msk [vmem:[#allocation3] sm:$0xc] %vm5797_vm7, %v5143_v38 }
0x1723   :  { %2060 = vrot.lane.b32.xlu1 %v5175_v2, %s4201_s25 }
0x1724   :  { %v2396_v38 = vpop.permute.xlu0 %2395 }
0x172b   :  { %2511 = vrot.lane.b32.xlu1 %v5256_v26, %s4201_s25 }
0x178d   :  { %v2520_v15 = vpop.permute.xlu1 %2519 }
0x178e   :  { %3741 = vmatmul.msk.f32.vlgmr.msra.gmra.mxu2 %vm109_vm2, %v2520_v15  ;;  %3742 = vmatmul.msk.f32.vlgmr.msra.gmra.mxu3 %vm109_vm2, %v2520_v15  ;;  %v5379_v15 = vld [vmem:[%s5782_s3 + $0x140] sm:$0xff] }
0x178f   :  { %2755 = vmatpush.msrb.mxu2 %v5379_v15 }
0x1795   :  { %v2061_v44 = vpop.permute.xlu1 %2060 }
0x1796   :  { %2063 = vst.msk [vmem:[#allocation3] sm:$0x30] %vm1055_vm13, %v2061_v44 }
0x1797   :  { %2064 = vst.msk [vmem:[#allocation3 + $0x6] sm:$0x30] %vm1057_vm9, %v2061_v44  ;;  %v5384_v44 = vld [vmem:[%s5782_s3 + $0x148] sm:$0xff] }
0x1798   :  { %2065 = vst.msk [vmem:[#allocation3 + $0x6] sm:$0x30] %vm1060_vm10, %v5175_v2  ;;  %2775 = vmatpush.msrb.mxu3 %v5384_v44 }
0x1799   :  { %2066 = vst.msk [vmem:[#allocation3] sm:$0x30] %vm1062_vm11, %v5175_v2 }
0x179a   :  { %2398 = vst.msk [vmem:[#allocation3 + $0x8] sm:$0xc] %vm669_vm12, %v2396_v38 }
0x179b   :  { %2399 = vst.msk [vmem:[#allocation3 + $0x2] sm:$0xc] %vm5798_vm8, %v2396_v38 }
0x179c   :  { %2400 = vst.msk [vmem:[#allocation3 + $0x2] sm:$0xc] %vm5799_vm15, %v5240_v35 }
0x179d   :  { %2401 = vst.msk [vmem:[#allocation3 + $0x8] sm:$0xc] %vm5800_vm6, %v5240_v35  ;;  %v2512_v28 = vpop.permute.xlu1 %2511  ;;  %vm5803_vm6 = vcmask 785926  }
0x179e   :  { %2514 = vst.msk [vmem:[#allocation3 + $0x8] sm:$0x30] %vm1055_vm13, %v2512_v28 }
0x179f   :  { %2515 = vst.msk [vmem:[#allocation3 - $0x2] sm:$0x30] %vm1057_vm9, %v2512_v28  ;;  %v3780_v28 = vld [vmem:[%s5781_s2 + $0x190] sm:$0xff] }
0x17a0   :  { %2516 = vst.msk [vmem:[#allocation3 - $0x2] sm:$0x30] %vm1060_vm10, %v5256_v26 }
0x17a1   :  { %2517 = vst.msk [vmem:[#allocation3 + $0x8] sm:$0x30] %vm1062_vm11, %v5256_v26 }
0x1811   :  { %v2560_v2 = vpop.f32.mrf.mxu3  ;;  %v2540_v51 = vpop.f32.mrf.mxu2 }
0x1812   :  { %v2564_v60 = vrot.slane %v2560_v2, 2  ;;  %v2609_v40 = vadd.f32 %v4172_v14, %v2540_v51  ;;  %v2587_v48 = vrot.slane %v2540_v51, 2  ;;  %v3781_v2 = vld [vmem:[%s5781_s2 + $0x198] sm:$0xff]  ;;  %v2622_v51 = vrot.slane %v5256_v26, 6  ;;  %v3774_v14 = vld [vmem:[%s5781_s2 + $0x160] sm:$0xff]  ;;  %v3772_v26 = vld [vmem:[%s5781_s2 + $0x150] sm:$0xff] }
0x1813   :  { %2727 = vmatpush.msra.mxu1 %v3781_v2 }
0x1814   :  { %v2566_v27 = vadd.f32 %v2564_v60, %v5212_v30  ;;  %v2611_v45 = vrot.slane %v2609_v40, 2  ;;  %v2589_v29 = vadd.f32 %v2587_v48, %v5219_v7  ;;  %v5397_v60 = vld [vmem:[%s5782_s3 + $0x130] sm:$0xff]  ;;  %v3775_v40 = vld [vmem:[%s5781_s2 + $0x168] sm:$0xff]  ;;  %v3766_v48 = vld [vmem:[%s5781_s2 + $0x120] sm:$0xff] }
0x1815   :  { %2756 = vmatpush.msrb.mxu2 %v5397_v60 }
0x1816   :  { %v3743_v61 = vmul.f32 -1.442695, %v2566_v27  ;;  %v3744_v13 = vmul.f32 -1.442695, %v2589_v29  ;;  %v5402_v27 = vld [vmem:[%s5782_s3 + $0x138] sm:$0xff]  ;;  %v3767_v29 = vld [vmem:[%s5781_s2 + $0x128] sm:$0xff] }
0x1817   :  { %2776 = vmatpush.msrb.mxu3 %v5402_v27 }
0x1818   :  { %4065 = vpow2.f32 %v3743_v61 }
0x181e   :  { %v4066_v53 = vpop.eup %4065 }
0x181f   :  { %v2570_v55 = vadd.f32 1.0, %v4066_v53  ;;  %v3778_v53 = vld [vmem:[%s5781_s2 + $0x180] sm:$0xff] }
0x1821   :  { %4067 = vrcp.f32 %v2570_v55  ;;  %v2582_v36 = vand.u32 2147483648, %v2570_v55  ;;  %v2580_v20 = vand.u32 2147483647, %v2570_v55  ;;  %vm2576_vm13 = vweird.f32 %v2570_v55 }
0x1823   :  { %v2583_v30 = vor.u32 1.1754944e-38, %v2582_v36  ;;  %vm2581_vm10 = vcmp.eq.f32.partialorder %v2580_v20, 8.507059e+37 }
0x1827   :  { %v4068_v35 = vpop.eup %4067 }
0x1828   :  { %v2572_v47 = vmul.f32 %v4068_v35, %v2570_v55  ;;  %vm2577_vm12 = vweird.f32 %v4068_v35  ;;  %v3779_v55 = vld [vmem:[%s5781_s2 + $0x188] sm:$0xff] }
0x1829   :  { %vm2578_vm9 = vmor %vm2576_vm13, %vm2577_vm12  ;;  %2728 = vmatpush.msra.mxu1 %v3779_v55  ;;  %vm5804_vm12 = vcmask 1048326  }
0x182a   :  { %v2573_v4 = vsub.f32 1.0, %v2572_v47  ;;  %v3777_v47 = vld [vmem:[%s5781_s2 + $0x178] sm:$0xff] }
0x182b   :  { %2729 = vmatpush.msra.mxu1 %v3777_v47 }
0x182c   :  { %v2574_v6 = vmul.f32 %v4068_v35, %v2573_v4 }
0x182d   :  { %2730 = vmatpush.msra.mxu1 %v3775_v40 }
0x182e   :  { %v2575_v11 = vadd.f32 %v4068_v35, %v2574_v6 }
0x1830   :  { %v2579_v63 = vsel %vm2578_vm9, %v4068_v35, %v2575_v11  ;;  %v3776_v35 = vld [vmem:[%s5781_s2 + $0x170] sm:$0xff] }
0x1831   :  { %v2584_v23 = vsel %vm2581_vm10, %v2583_v30, %v2579_v63  ;;  %v3773_v30 = vld [vmem:[%s5781_s2 + $0x158] sm:$0xff]  ;;  %v3770_v63 = vld [vmem:[%s5781_s2 + $0x140] sm:$0xff] }
0x1832   :  { %v2613_v9 = vmul.f32 %v2611_v45, %v2584_v23  ;;  %2731 = vmatpush.msra.mxu1 %v3773_v30  ;;  %v5460_v23 = vld [vmem:[%s5782_s3 + $0x120] sm:$0xff] }
0x1833   :  { %2757 = vmatpush.msrb.mxu2 %v5460_v23 }
0x1834   :  { %v2614_v31 = vadd.f32 %v2613_v9, %v5219_v7  ;;  %v3790_v7 = vld [vmem:[%s5781_s2 + $0x1e0] sm:$0xff]  ;;  %v3769_v9 = vld [vmem:[%s5781_s2 + $0x138] sm:$0xff] }
0x1835   :  { %2699 = vmatpush.msra.mxu0 %v3790_v7  ;;  %v5592_v7 = vld [vmem:[%s5783_s4 + $0x4] sm:$0x3] }
0x1836   :  { %4069 = vtanh.f32 %v2614_v31  ;;  %v5478_v31 = vld [vmem:[%s5782_s3 + $0x110] sm:$0xff] }
0x1837   :  { %4071 = vpow2.f32 %v3744_v13  ;;  %2700 = vmatpush.msra.mxu0 %v3788_v34  ;;  %v5494_v13 = vld [vmem:[%s5782_s3 + $0x100] sm:$0xff]  ;;  %2758 = vmatpush.msrb.mxu2 %v5478_v31 }
0x1839   :  { %2701 = vmatpush.msra.mxu0 %v3786_v33  ;;  %2759 = vmatpush.msrb.mxu2 %v5494_v13 }
0x183a   :  { %2760 = vmatmul.f32.vlgmr.msrb.gmra.mxu2 %v4200_v19 }
0x183b   :  { %2702 = vmatpush.msra.mxu0 %v3784_v16  ;;  %2849 = vmatpush.msra.mxu2 %v5326_v21 }
0x183c   :  { %v4070_v18 = vpop.eup %4069 }
0x183d   :  { %2618 = vrot.lane.b32.xlu2 %v4070_v18, %s4201_s25  ;;  %v4072_v57 = vpop.eup %4071  ;;  %2703 = vmatpush.msra.mxu0 %v3782_v32  ;;  %v5483_v18 = vld [vmem:[%s5782_s3 + $0x118] sm:$0xff] }
0x183e   :  { %v2593_v49 = vadd.f32 1.0, %v4072_v57  ;;  %v5499_v57 = vld [vmem:[%s5782_s3 + $0x108] sm:$0xff]  ;;  %2850 = vmatpush.msra.mxu2 %v5344_v3 }
0x183f   :  { %2704 = vmatpush.msra.mxu0 %v3780_v28  ;;  %v2694_v28 = vperm.slane %v5592_v7, 0 }
0x1840   :  { %4073 = vrcp.f32 %v2593_v49  ;;  %v2605_v59 = vand.u32 2147483648, %v2593_v49  ;;  %vm2599_vm7 = vweird.f32 %v2593_v49  ;;  %v2603_v10 = vand.u32 2147483647, %v2593_v49  ;;  %2851 = vmatpush.msra.mxu2 %v5354_v17 }
0x1841   :  { %2705 = vmatpush.msra.mxu0 %v3778_v53 }
0x1842   :  { %v2606_v38 = vor.u32 1.1754944e-38, %v2605_v59  ;;  %vm2604_vm15 = vcmp.eq.f32.partialorder %v2603_v10, 8.507059e+37  ;;  %2852 = vmatpush.msra.mxu2 %v5379_v15  ;;  %v5603_v10 = vld [vmem:[%s5784_s5 + $0x2] ss:$0 sm:$0xff] }
0x1843   :  { %2706 = vmatpush.msra.mxu0 %v3776_v35 }
0x1844   :  { %2853 = vmatpush.msra.mxu2 %v5397_v60 }
0x1845   :  { %2176 = vrot.lane.b32.xlu2 %v5203_v46, %s4201_s25  ;;  %2707 = vmatpush.msra.mxu0 %v3774_v14 }
0x1846   :  { %v4074_v58 = vpop.eup %4073  ;;  %2854 = vmatpush.msra.mxu2 %v5460_v23 }
0x1847   :  { %v2595_v39 = vmul.f32 %v4074_v58, %v2593_v49  ;;  %vm2600_vm11 = vweird.f32 %v4074_v58  ;;  %2708 = vmatpush.msra.mxu0 %v3772_v26  ;;  %v3764_v49 = vld [vmem:[%s5781_s2 + $0x110] sm:$0xff] }
0x1848   :  { %vm5362_vm8 = vmor %vm2599_vm7, %vm2600_vm11  ;;  %2855 = vmatpush.msra.mxu2 %v5478_v31 }
0x1849   :  { %v2596_v42 = vsub.f32 1.0, %v2595_v39  ;;  %2709 = vmatpush.msra.mxu0 %v3770_v63  ;;  %v3762_v39 = vld [vmem:[%s5781_s2 + $0x100] sm:$0xff] }
0x184a   :  { %2856 = vmatpush.msra.mxu2 %v5494_v13 }
0x184b   :  { %v2597_v25 = vmul.f32 %v4074_v58, %v2596_v42  ;;  %v3763_v42 = vld [vmem:[%s5781_s2 + $0x108] sm:$0xff] }
0x184c   :  { %3067 = vmatpush.msrb.mxu2 %v5326_v21 }
0x184d   :  { %v2598_v24 = vadd.f32 %v4074_v58, %v2597_v25  ;;  %v2695_v25 = vperm.slane %v5592_v7, 1 }
0x184e   :  { %3068 = vmatpush.msrb.mxu2 %v5344_v3 }
0x184f   :  { %v2602_v12 = vsel %vm5362_vm8, %v4074_v58, %v2598_v24  ;;  %v3765_v58 = vld [vmem:[%s5781_s2 + $0x118] sm:$0xff] }
0x1850   :  { %v2607_v61 = vsel %vm2604_vm15, %v2606_v38, %v2602_v12  ;;  %3069 = vmatpush.msrb.mxu2 %v5354_v17 }
0x1851   :  { %v2616_v4 = vsub.f32 1.0, %v2607_v61  ;;  %v2624_v20 = vmul.f32 %v2622_v51, %v2607_v61 }
0x1852   :  { %3070 = vmatpush.msrb.mxu2 %v5379_v15 }
0x1854   :  { %3071 = vmatpush.msrb.mxu2 %v5397_v60 }
0x1856   :  { %3072 = vmatpush.msrb.mxu2 %v5460_v23 }
0x1858   :  { %3073 = vmatpush.msrb.mxu2 %v5478_v31 }
0x185a   :  { %3074 = vmatpush.msrb.mxu2 %v5494_v13 }
0x1897   :  { %v2619_v36 = vpop.permute.xlu2 %2618 }
0x1898   :  { %v2621_v6 = vmul.f32 %v2619_v36, %v2616_v4 }
0x189a   :  { %v5430_v11 = vadd.f32 %v2624_v20, %v2621_v6 }
0x189c   :  { %2627 = vrot.lane.b32.xlu2 %v5430_v11, %s4201_s25 }
0x189f   :  { %v2177_v45 = vpop.permute.xlu2 %2176 }
0x18a0   :  { %2179 = vst.msk [vmem:[#allocation3] sm:$0xc0] %vm1425_vm14, %v2177_v45 }
0x18a1   :  { %2180 = vst.msk [vmem:[#allocation3 + $0x2] sm:$0xc0] %vm1427_vm0, %v2177_v45 }
0x18a2   :  { %2181 = vst.msk [vmem:[#allocation3 + $0x2] sm:$0xc0] %vm5803_vm6, %v5203_v46 }
0x18a3   :  { %2182 = vst.msk [vmem:[#allocation3] sm:$0xc0] %vm5804_vm12, %v5203_v46  ;;  %v3771_v46 = vld [vmem:[%s5781_s2 + $0x148] sm:$0xff] }
0x18a4   :  { %2285 = vst.msk [vmem:[#allocation3 + $0x8] sm:$0x3] %vm276_vm1, %v5228_v8  ;;  %2732 = vmatpush.msra.mxu1 %v3771_v46 }
0x18a5   :  { %2286 = vst.msk [vmem:[#allocation3 + $0x6] sm:$0x3] %vm278_vm3, %v5228_v8  ;;  %v5465_v8 = vld [vmem:[%s5782_s3 + $0x128] sm:$0xff]  ;;  %vm5805_vm3 = vmmov %vm5803_vm6 }
0x18a6   :  { %2287 = vst.msk [vmem:[#allocation3 + $0x6] sm:$0x3] %vm281_vm4, %v5224_v56  ;;  %2777 = vmatpush.msrb.mxu3 %v5465_v8  ;;  %2733 = vmatpush.msra.mxu1 %v3769_v9  ;;  %vm5806_vm4 = vmmov %vm5804_vm12 }
0x18a7   :  { %2288 = vst.msk [vmem:[#allocation3 + $0x8] sm:$0x3] %vm283_vm5, %v5224_v56  ;;  %v3768_v56 = vld [vmem:[%s5781_s2 + $0x130] sm:$0xff] }
0x18a8   :  { %2710 = vmatpush.msra.mxu0 %v3768_v56  ;;  %2778 = vmatpush.msrb.mxu3 %v5483_v18 }
0x18a9   :  { %2734 = vmatpush.msra.mxu1 %v3767_v29 }
0x18aa   :  { %2711 = vmatpush.msra.mxu0 %v3766_v48  ;;  %2779 = vmatpush.msrb.mxu3 %v5499_v57 }
0x18ab   :  { %2780 = vmatmul.f32.vlgmr.msrb.gmra.mxu3 %v4200_v19  ;;  %2735 = vmatpush.msra.mxu1 %v3765_v58 }
0x18ac   :  { %2712 = vmatpush.msra.mxu0 %v3764_v49  ;;  %2869 = vmatpush.msra.mxu3 %v5334_v37 }
0x18ad   :  { %2736 = vmatpush.msra.mxu1 %v3763_v42 }
0x18ae   :  { %2713 = vmatpush.msra.mxu0 %v3762_v39  ;;  %2870 = vmatpush.msra.mxu3 %v5349_v5 }
0x18af   :  { %2978 = vmatpush.msrb.mxu1 %v5334_v37 }
0x18b0   :  { %2958 = vmatpush.msrb.mxu0 %v5326_v21  ;;  %2871 = vmatpush.msra.mxu3 %v5359_v41 }
0x18b1   :  { %2979 = vmatpush.msrb.mxu1 %v5349_v5 }
0x18b2   :  { %2959 = vmatpush.msrb.mxu0 %v5344_v3  ;;  %2872 = vmatpush.msra.mxu3 %v5384_v44 }
0x18b3   :  { %2980 = vmatpush.msrb.mxu1 %v5359_v41 }
0x18b4   :  { %2960 = vmatpush.msrb.mxu0 %v5354_v17  ;;  %2873 = vmatpush.msra.mxu3 %v5402_v27 }
0x18b5   :  { %2981 = vmatpush.msrb.mxu1 %v5384_v44 }
0x18b6   :  { %2961 = vmatpush.msrb.mxu0 %v5379_v15  ;;  %2874 = vmatpush.msra.mxu3 %v5465_v8 }
0x18b7   :  { %2982 = vmatpush.msrb.mxu1 %v5402_v27 }
0x18b8   :  { %2962 = vmatpush.msrb.mxu0 %v5397_v60  ;;  %2875 = vmatpush.msra.mxu3 %v5483_v18 }
0x18b9   :  { %2983 = vmatpush.msrb.mxu1 %v5465_v8 }
0x18ba   :  { %2963 = vmatpush.msrb.mxu0 %v5460_v23  ;;  %2876 = vmatpush.msra.mxu3 %v5499_v57 }
0x18bb   :  { %2984 = vmatpush.msrb.mxu1 %v5483_v18 }
0x18bc   :  { %2964 = vmatpush.msrb.mxu0 %v5478_v31  ;;  %3087 = vmatpush.msrb.mxu3 %v5334_v37 }
0x18bd   :  { %2985 = vmatpush.msrb.mxu1 %v5499_v57  ;;  %v2761_v38 = vpop.f32.mrf.mxu2 }
0x18be   :  { %2965 = vmatpush.msrb.mxu0 %v5494_v13  ;;  %3088 = vmatpush.msrb.mxu3 %v5349_v5  ;;  %v2824_v2 = vadd.f32 %v5603_v10, %v2761_v38 }
0x18c0   :  { %3089 = vmatpush.msrb.mxu3 %v5359_v41 }
0x18c2   :  { %3090 = vmatpush.msrb.mxu3 %v5384_v44 }
0x18c4   :  { %3091 = vmatpush.msrb.mxu3 %v5402_v27 }
0x18c6   :  { %3092 = vmatpush.msrb.mxu3 %v5465_v8 }
0x18c8   :  { %3093 = vmatpush.msrb.mxu3 %v5483_v18 }
0x18ca   :  { %3094 = vmatpush.msrb.mxu3 %v5499_v57 }
0x18f6   :  { %v2628_v19 = vpop.permute.xlu2 %2627 }
0x18f7   :  { %2630 = vst.msk [vmem:[#allocation3 + $0x8] sm:$0xc0] %vm1425_vm14, %v2628_v19 }
0x18f8   :  { %2631 = vst.msk [vmem:[#allocation3 - $0x6] sm:$0xc0] %vm1427_vm0, %v2628_v19 }
0x18f9   :  { %2632 = vst.msk [vmem:[#allocation3 - $0x6] sm:$0xc0] %vm5805_vm3, %v5430_v11 }
0x18fa   :  { %2633 = vst.msk [vmem:[#allocation3 + $0x8] sm:$0xc0] %vm5806_vm4, %v5430_v11 }
0x1900   :  { %v2656_v54 = vld [vmem:[#allocation3] sm:$0xff] }
0x1901   :  { %2714 = vmatmul.f32.vlgmr.msra.gmra.mxu0 %v2656_v54  ;;  %2737 = vmatmul.f32.vlgmr.msra.gmra.mxu1 %v2656_v54  ;;  %v2657_v0 = vld [vmem:[#allocation3 + $0x8] sm:$0xff] }
0x1902   :  { %3176 = vmatpush.msra.mxu0 %v5326_v21  ;;  %3196 = vmatpush.msra.mxu1 %v5334_v37 }
0x1904   :  { %3177 = vmatpush.msra.mxu0 %v5344_v3  ;;  %3197 = vmatpush.msra.mxu1 %v5349_v5 }
0x1906   :  { %3178 = vmatpush.msra.mxu0 %v5354_v17  ;;  %3198 = vmatpush.msra.mxu1 %v5359_v41 }
0x1908   :  { %3179 = vmatpush.msra.mxu0 %v5379_v15  ;;  %3199 = vmatpush.msra.mxu1 %v5384_v44 }
0x1909   :  { %2717 = vmatmul.f32.gmra.mxu0 %v2657_v0  ;;  %2740 = vmatmul.f32.gmra.mxu1 %v2657_v0 }
0x190a   :  { %3180 = vmatpush.msra.mxu0 %v5397_v60  ;;  %3200 = vmatpush.msra.mxu1 %v5402_v27 }
0x190c   :  { %3181 = vmatpush.msra.mxu0 %v5460_v23  ;;  %3201 = vmatpush.msra.mxu1 %v5465_v8 }
0x190e   :  { %3182 = vmatpush.msra.mxu0 %v5478_v31  ;;  %3202 = vmatpush.msra.mxu1 %v5483_v18 }
0x1910   :  { %3183 = vmatpush.msra.mxu0 %v5494_v13  ;;  %3203 = vmatpush.msra.mxu1 %v5499_v57 }
0x192e   :  { %v2781_v34 = vpop.f32.mrf.mxu3 }
0x197e   :  { %v2738_v22 = vpop.f32.mrf.mxu1  ;;  %v2715_v53 = vpop.f32.mrf.mxu0 }
0x197f   :  { %v5597_v52 = vadd.f32 %v2738_v22, %v2695_v25  ;;  %v5609_v51 = vadd.f32 %v2715_v53, %v2694_v28 }
0x1981   :  { %v2784_v33 = vadd.f32 %v2781_v34, %v5597_v52  ;;  %v2804_v40 = vadd.f32 %v2761_v38, %v5609_v51 }
0x1983   :  { %v3795_v50 = vmul.f32 -1.442695, %v2784_v33  ;;  %v3796_v6 = vmul.f32 -1.442695, %v2804_v40 }
0x1985   :  { %4075 = vpow2.f32 %v3795_v50 }
0x198b   :  { %v4076_v24 = vpop.eup %4075 }
0x198c   :  { %v2788_v16 = vadd.f32 1.0, %v4076_v24 }
0x198e   :  { %4077 = vrcp.f32 %v2788_v16  ;;  %v2800_v32 = vand.u32 2147483648, %v2788_v16  ;;  %v2798_v12 = vand.u32 2147483647, %v2788_v16  ;;  %vm2794_vm0 = vweird.f32 %v2788_v16 }
0x1990   :  { %v2801_v55 = vor.u32 1.1754944e-38, %v2800_v32  ;;  %vm2799_vm13 = vcmp.eq.f32.partialorder %v2798_v12, 8.507059e+37 }
0x1994   :  { %v4078_v59 = vpop.eup %4077 }
0x1995   :  { %v2790_v1 = vmul.f32 %v4078_v59, %v2788_v16  ;;  %vm2795_vm5 = vweird.f32 %v4078_v59 }
0x1996   :  { %vm2796_vm14 = vmor %vm2794_vm0, %vm2795_vm5 }
0x1997   :  { %v2791_v43 = vsub.f32 1.0, %v2790_v1 }
0x1999   :  { %v2792_v62 = vmul.f32 %v4078_v59, %v2791_v43 }
0x199b   :  { %v2793_v61 = vadd.f32 %v4078_v59, %v2792_v62 }
0x199d   :  { %v2797_v35 = vsel %vm2796_vm14, %v4078_v59, %v2793_v61 }
0x199e   :  { %v2802_v47 = vsel %vm2799_vm13, %v2801_v55, %v2797_v35 }
0x199f   :  { %v2825_v4 = vmul.f32 %v2824_v2, %v2802_v47 }
0x19a1   :  { %v2826_v36 = vadd.f32 %v2825_v4, %v5609_v51 }
0x19a3   :  { %4079 = vtanh.f32 %v2826_v36 }
0x19a4   :  { %4081 = vpow2.f32 %v3796_v6 }
0x19a9   :  { %v4080_v14 = vpop.eup %4079 }
0x19aa   :  { %2830 = vrot.lane.b32.xlu0 %v4080_v14, %s4201_s25  ;;  %v4082_v20 = vpop.eup %4081 }
0x19ab   :  { %v2808_v26 = vadd.f32 1.0, %v4082_v20 }
0x19ad   :  { %4083 = vrcp.f32 %v2808_v26  ;;  %v2820_v56 = vand.u32 2147483648, %v2808_v26  ;;  %vm2814_vm10 = vweird.f32 %v2808_v26  ;;  %v2818_v9 = vand.u32 2147483647, %v2808_v26 }
0x19af   :  { %v2821_v29 = vor.u32 1.1754944e-38, %v2820_v56  ;;  %vm2819_vm7 = vcmp.eq.f32.partialorder %v2818_v9, 8.507059e+37 }
0x19b3   :  { %v4084_v11 = vpop.eup %4083 }
0x19b4   :  { %v2810_v30 = vmul.f32 %v4084_v11, %v2808_v26  ;;  %vm2815_vm9 = vweird.f32 %v4084_v11 }
0x19b5   :  { %vm2816_vm11 = vmor %vm2814_vm10, %vm2815_vm9 }
0x19b6   :  { %v2811_v45 = vsub.f32 1.0, %v2810_v30 }
0x19b8   :  { %v2812_v63 = vmul.f32 %v4084_v11, %v2811_v45 }
0x19ba   :  { %v2813_v46 = vadd.f32 %v4084_v11, %v2812_v63 }
0x19bc   :  { %v2817_v48 = vsel %vm2816_vm11, %v4084_v11, %v2813_v46 }
0x19bd   :  { %v2822_v49 = vsel %vm2819_vm7, %v2821_v29, %v2817_v48 }
0x19be   :  { %v2828_v58 = vsub.f32 1.0, %v2822_v49  ;;  %v2834_v19 = vmul.f32 0.0, %v2822_v49 }
0x1a1c   :  { %v2831_v39 = vpop.permute.xlu0 %2830 }
0x1a1d   :  { %v2833_v42 = vmul.f32 %v2831_v39, %v2828_v58 }
0x1a1f   :  { %v5614_v54 = vadd.f32 %v2834_v19, %v2833_v42 }
0x1a21   :  { %2837 = vrot.lane.b32.xlu1 %v5614_v54, %s4201_s25  ;;  %v2940_v42 = vrot.slane %v5614_v54, 6 }
0x1a93   :  { %v2838_v0 = vpop.permute.xlu1 %2837 }
0x1a94   :  { %3797 = vmatmul.msk.f32.vlgmr.msra.gmra.mxu2 %vm109_vm2, %v2838_v0  ;;  %3798 = vmatmul.msk.f32.vlgmr.msra.gmra.mxu3 %vm109_vm2, %v2838_v0 }
0x1a95   :  { %3274 = vmatpush.msra.mxu2 %v5326_v21  ;;  %3294 = vmatpush.msra.mxu3 %v5334_v37 }
0x1a97   :  { %3275 = vmatpush.msra.mxu2 %v5344_v3  ;;  %3295 = vmatpush.msra.mxu3 %v5349_v5 }
0x1a99   :  { %3276 = vmatpush.msra.mxu2 %v5354_v17  ;;  %3296 = vmatpush.msra.mxu3 %v5359_v41 }
0x1a9b   :  { %3277 = vmatpush.msra.mxu2 %v5379_v15  ;;  %3297 = vmatpush.msra.mxu3 %v5384_v44 }
0x1a9d   :  { %3278 = vmatpush.msra.mxu2 %v5397_v60  ;;  %3298 = vmatpush.msra.mxu3 %v5402_v27 }
0x1a9f   :  { %3279 = vmatpush.msra.mxu2 %v5460_v23  ;;  %3299 = vmatpush.msra.mxu3 %v5465_v8 }
0x1aa1   :  { %3280 = vmatpush.msra.mxu2 %v5478_v31  ;;  %3300 = vmatpush.msra.mxu3 %v5483_v18 }
0x1aa3   :  { %3281 = vmatpush.msra.mxu2 %v5494_v13  ;;  %3301 = vmatpush.msra.mxu3 %v5499_v57 }
0x1b17   :  { %v2878_v22 = vpop.f32.mrf.mxu3  ;;  %v2858_v43 = vpop.f32.mrf.mxu2 }
0x1b18   :  { %v2882_v34 = vrot.slane %v2878_v22, 6  ;;  %v2927_v12 = vadd.f32 %v5603_v10, %v2858_v43  ;;  %v2905_v40 = vrot.slane %v2858_v43, 6 }
0x1b1a   :  { %v2884_v33 = vadd.f32 %v2882_v34, %v5597_v52  ;;  %v2929_v55 = vrot.slane %v2927_v12, 6  ;;  %v2907_v6 = vadd.f32 %v2905_v40, %v5609_v51  ;;  %v5667_v12 = vpop.f32.mrf.mxu0 }
0x1b1c   :  { %v3799_v50 = vmul.f32 -1.442695, %v2884_v33  ;;  %v3800_v20 = vmul.f32 -1.442695, %v2907_v6 }
0x1b1e   :  { %4085 = vpow2.f32 %v3799_v50 }
0x1b24   :  { %v4086_v24 = vpop.eup %4085 }
0x1b25   :  { %v2888_v16 = vadd.f32 1.0, %v4086_v24  ;;  %v5664_v24 = vpop.f32.mrf.mxu1 }
0x1b27   :  { %4087 = vrcp.f32 %v2888_v16  ;;  %v2900_v62 = vand.u32 2147483648, %v2888_v16  ;;  %v2898_v2 = vand.u32 2147483647, %v2888_v16  ;;  %vm2894_vm15 = vweird.f32 %v2888_v16 }
0x1b29   :  { %v2901_v53 = vor.u32 1.1754944e-38, %v2900_v62  ;;  %vm2899_vm12 = vcmp.eq.f32.partialorder %v2898_v2, 8.507059e+37 }
0x1b2d   :  { %v4088_v59 = vpop.eup %4087 }
0x1b2e   :  { %v2890_v1 = vmul.f32 %v4088_v59, %v2888_v16  ;;  %vm2895_vm8 = vweird.f32 %v4088_v59 }
0x1b2f   :  { %vm2896_vm6 = vmor %vm2894_vm15, %vm2895_vm8 }
0x1b30   :  { %v2891_v32 = vsub.f32 1.0, %v2890_v1 }
0x1b32   :  { %v2892_v38 = vmul.f32 %v4088_v59, %v2891_v32 }
0x1b34   :  { %v2893_v61 = vadd.f32 %v4088_v59, %v2892_v38 }
0x1b36   :  { %v2897_v35 = vsel %vm2896_vm6, %v4088_v59, %v2893_v61 }
0x1b37   :  { %v2902_v47 = vsel %vm2899_vm12, %v2901_v53, %v2897_v35 }
0x1b38   :  { %v2931_v4 = vmul.f32 %v2929_v55, %v2902_v47 }
0x1b3a   :  { %v2932_v36 = vadd.f32 %v2931_v4, %v5609_v51 }
0x1b3c   :  { %4089 = vtanh.f32 %v2932_v36 }
0x1b3d   :  { %4091 = vpow2.f32 %v3800_v20 }
0x1b42   :  { %v4090_v14 = vpop.eup %4089 }
0x1b43   :  { %2936 = vrot.lane.b32.xlu2 %v4090_v14, %s4201_s25  ;;  %v4092_v26 = vpop.eup %4091 }
0x1b44   :  { %v2911_v11 = vadd.f32 1.0, %v4092_v26 }
0x1b46   :  { %4093 = vrcp.f32 %v2911_v11  ;;  %v2923_v9 = vand.u32 2147483648, %v2911_v11  ;;  %vm2917_vm4 = vweird.f32 %v2911_v11  ;;  %v2921_v48 = vand.u32 2147483647, %v2911_v11 }
0x1b48   :  { %v2924_v49 = vor.u32 1.1754944e-38, %v2923_v9  ;;  %vm2922_vm0 = vcmp.eq.f32.partialorder %v2921_v48, 8.507059e+37 }
0x1b4c   :  { %v4094_v30 = vpop.eup %4093 }
0x1b4d   :  { %v2913_v45 = vmul.f32 %v4094_v30, %v2911_v11  ;;  %vm2918_vm3 = vweird.f32 %v4094_v30 }
0x1b4e   :  { %vm2919_vm5 = vmor %vm2917_vm4, %vm2918_vm3 }
0x1b4f   :  { %v2914_v63 = vsub.f32 1.0, %v2913_v45 }
0x1b51   :  { %v2915_v46 = vmul.f32 %v4094_v30, %v2914_v63 }
0x1b53   :  { %v2916_v56 = vadd.f32 %v4094_v30, %v2915_v46 }
0x1b55   :  { %v2920_v29 = vsel %vm2919_vm5, %v4094_v30, %v2916_v56 }
0x1b56   :  { %v2925_v58 = vsel %vm2922_vm0, %v2924_v49, %v2920_v29 }
0x1b57   :  { %v2934_v39 = vsub.f32 1.0, %v2925_v58  ;;  %v2942_v22 = vmul.f32 %v2940_v42, %v2925_v58 }
0x1b9d   :  { %v2937_v19 = vpop.permute.xlu2 %2936 }
0x1b9e   :  { %v2939_v0 = vmul.f32 %v2937_v19, %v2934_v39 }
0x1ba0   :  { %v5642_v34 = vadd.f32 %v2942_v22, %v2939_v0 }
0x1ba2   :  { %v2945_v33 = vrot.slane %v5642_v34, 2 }
0x1ba4   :  { %2946 = vrot.lane.b32.xlu0 %v2945_v33, %s4201_s25 }
0x1c16   :  { %v2947_v50 = vpop.permute.xlu0 %2946 }
0x1c17   :  { %3801 = vmatmul.msk.f32.vlgmr.msrb.gmra.mxu0 %vm109_vm2, %v2947_v50  ;;  %3802 = vmatmul.msk.f32.vlgmr.msrb.gmra.mxu1 %vm109_vm2, %v2947_v50  ;;  %v3049_v50 = vrot.slane %v5642_v34, 6 }
0x1c18   :  { %3383 = vmatpush.msrb.mxu0 %v5326_v21  ;;  %3403 = vmatpush.msrb.mxu1 %v5334_v37 }
0x1c1a   :  { %3384 = vmatpush.msrb.mxu0 %v5344_v3  ;;  %3404 = vmatpush.msrb.mxu1 %v5349_v5 }
0x1c1c   :  { %3385 = vmatpush.msrb.mxu0 %v5354_v17  ;;  %3405 = vmatpush.msrb.mxu1 %v5359_v41 }
0x1c1e   :  { %3386 = vmatpush.msrb.mxu0 %v5379_v15  ;;  %3406 = vmatpush.msrb.mxu1 %v5384_v44 }
0x1c20   :  { %3387 = vmatpush.msrb.mxu0 %v5397_v60  ;;  %3407 = vmatpush.msrb.mxu1 %v5402_v27 }
0x1c22   :  { %3388 = vmatpush.msrb.mxu0 %v5460_v23  ;;  %3408 = vmatpush.msrb.mxu1 %v5465_v8 }
0x1c24   :  { %3389 = vmatpush.msrb.mxu0 %v5478_v31  ;;  %3409 = vmatpush.msrb.mxu1 %v5483_v18 }
0x1c26   :  { %3390 = vmatpush.msrb.mxu0 %v5494_v13  ;;  %3410 = vmatpush.msrb.mxu1 %v5499_v57 }
0x1c94   :  { %v2987_v16 = vpop.f32.mrf.mxu1  ;;  %v2967_v61 = vpop.f32.mrf.mxu0 }
0x1c95   :  { %v2991_v59 = vrot.slane %v2987_v16, 4  ;;  %v3036_v35 = vadd.f32 %v5603_v10, %v2967_v61  ;;  %v3014_v45 = vrot.slane %v2967_v61, 4 }
0x1c97   :  { %v2993_v1 = vadd.f32 %v2991_v59, %v5597_v52  ;;  %v3038_v40 = vrot.slane %v3036_v35, 4  ;;  %v3016_v63 = vadd.f32 %v3014_v45, %v5609_v51 }
0x1c99   :  { %v3803_v43 = vmul.f32 -1.442695, %v2993_v1  ;;  %v3804_v46 = vmul.f32 -1.442695, %v3016_v63 }
0x1c9b   :  { %4095 = vpow2.f32 %v3803_v43 }
0x1ca1   :  { %v4096_v32 = vpop.eup %4095 }
0x1ca2   :  { %v2997_v62 = vadd.f32 1.0, %v4096_v32 }
0x1ca4   :  { %4097 = vrcp.f32 %v2997_v62  ;;  %v3009_v55 = vand.u32 2147483648, %v2997_v62  ;;  %v3007_v4 = vand.u32 2147483647, %v2997_v62  ;;  %vm3003_vm13 = vweird.f32 %v2997_v62 }
0x1ca6   :  { %v3010_v14 = vor.u32 1.1754944e-38, %v3009_v55  ;;  %vm3008_vm10 = vcmp.eq.f32.partialorder %v3007_v4, 8.507059e+37 }
0x1caa   :  { %v4098_v38 = vpop.eup %4097 }
0x1cab   :  { %v2999_v2 = vmul.f32 %v4098_v38, %v2997_v62  ;;  %vm3004_vm14 = vweird.f32 %v4098_v38 }
0x1cac   :  { %vm3005_vm9 = vmor %vm3003_vm13, %vm3004_vm14 }
0x1cad   :  { %v3000_v53 = vsub.f32 1.0, %v2999_v2 }
0x1caf   :  { %v3001_v47 = vmul.f32 %v4098_v38, %v3000_v53 }
0x1cb1   :  { %v3002_v36 = vadd.f32 %v4098_v38, %v3001_v47 }
0x1cb3   :  { %v3006_v6 = vsel %vm3005_vm9, %v4098_v38, %v3002_v36 }
0x1cb4   :  { %v3011_v20 = vsel %vm3008_vm10, %v3010_v14, %v3006_v6 }
0x1cb5   :  { %v3040_v26 = vmul.f32 %v3038_v40, %v3011_v20 }
0x1cb7   :  { %v3041_v11 = vadd.f32 %v3040_v26, %v5609_v51 }
0x1cb9   :  { %4099 = vtanh.f32 %v3041_v11 }
0x1cba   :  { %4101 = vpow2.f32 %v3804_v46 }
0x1cbf   :  { %v4100_v30 = vpop.eup %4099 }
0x1cc0   :  { %3045 = vrot.lane.b32.xlu1 %v4100_v30, %s4201_s25  ;;  %v4102_v56 = vpop.eup %4101 }
0x1cc1   :  { %v3020_v9 = vadd.f32 1.0, %v4102_v56 }
0x1cc3   :  { %4103 = vrcp.f32 %v3020_v9  ;;  %v3032_v42 = vand.u32 2147483648, %v3020_v9  ;;  %vm3026_vm7 = vweird.f32 %v3020_v9  ;;  %v3030_v19 = vand.u32 2147483647, %v3020_v9 }
0x1cc5   :  { %v3033_v22 = vor.u32 1.1754944e-38, %v3032_v42  ;;  %vm3031_vm15 = vcmp.eq.f32.partialorder %v3030_v19, 8.507059e+37  ;;  %v5708_v19 = vadd.f32 %v5664_v24, %v2695_v25 }
0x1cc9   :  { %v4104_v48 = vpop.eup %4103 }
0x1cca   :  { %v3022_v29 = vmul.f32 %v4104_v48, %v3020_v9  ;;  %vm3027_vm11 = vweird.f32 %v4104_v48 }
0x1ccb   :  { %vm3028_vm8 = vmor %vm3026_vm7, %vm3027_vm11 }
0x1ccc   :  { %v3023_v49 = vsub.f32 1.0, %v3022_v29 }
0x1cce   :  { %v3024_v58 = vmul.f32 %v4104_v48, %v3023_v49 }
0x1cd0   :  { %v3025_v39 = vadd.f32 %v4104_v48, %v3024_v58 }
0x1cd2   :  { %v3029_v0 = vsel %vm3028_vm8, %v4104_v48, %v3025_v39 }
0x1cd3   :  { %v3034_v33 = vsel %vm3031_vm15, %v3033_v22, %v3029_v0 }
0x1cd4   :  { %v3043_v16 = vsub.f32 1.0, %v3034_v33  ;;  %v3051_v43 = vmul.f32 %v3049_v50, %v3034_v33 }
0x1d32   :  { %v3046_v59 = vpop.permute.xlu1 %3045 }
0x1d33   :  { %v3048_v1 = vmul.f32 %v3046_v59, %v3043_v16 }
0x1d35   :  { %v5674_v32 = vadd.f32 %v3051_v43, %v3048_v1 }
0x1d37   :  { %v3054_v62 = vrot.slane %v5674_v32, 4 }
0x1d39   :  { %3055 = vrot.lane.b32.xlu2 %v3054_v62, %s4201_s25 }
0x1d93   :  { %v3056_v38 = vpop.permute.xlu2 %3055 }
0x1d94   :  { %3805 = vmatmul.msk.f32.vlgmr.msrb.gmra.mxu2 %vm109_vm2, %v3056_v38  ;;  %3806 = vmatmul.msk.f32.vlgmr.msrb.gmra.mxu3 %vm109_vm2, %v3056_v38 }
0x1d95   :  { %3492 = vmatpush.msrb.mxu2 %v5326_v21  ;;  %3512 = vmatpush.msrb.mxu3 %v5334_v37 }
0x1d97   :  { %3493 = vmatpush.msrb.mxu2 %v5344_v3  ;;  %3513 = vmatpush.msrb.mxu3 %v5349_v5 }
0x1d99   :  { %3494 = vmatpush.msrb.mxu2 %v5354_v17  ;;  %3514 = vmatpush.msrb.mxu3 %v5359_v41 }
0x1d9b   :  { %3495 = vmatpush.msrb.mxu2 %v5379_v15  ;;  %3515 = vmatpush.msrb.mxu3 %v5384_v44 }
0x1d9d   :  { %3496 = vmatpush.msrb.mxu2 %v5397_v60  ;;  %3516 = vmatpush.msrb.mxu3 %v5402_v27 }
0x1d9f   :  { %3497 = vmatpush.msrb.mxu2 %v5460_v23  ;;  %3517 = vmatpush.msrb.mxu3 %v5465_v8 }
0x1da1   :  { %3498 = vmatpush.msrb.mxu2 %v5478_v31  ;;  %3518 = vmatpush.msrb.mxu3 %v5483_v18 }
0x1da3   :  { %3499 = vmatpush.msrb.mxu2 %v5494_v13  ;;  %3519 = vmatpush.msrb.mxu3 %v5499_v57 }
0x1e17   :  { %v3096_v21 = vpop.f32.mrf.mxu3  ;;  %v3076_v60 = vpop.f32.mrf.mxu2 }
0x1e18   :  { %v3100_v37 = vrot.slane %v3096_v21, 2  ;;  %v3145_v8 = vadd.f32 %v5603_v10, %v3076_v60  ;;  %v3123_v35 = vrot.slane %v3076_v60, 2 }
0x1e1a   :  { %v3102_v3 = vadd.f32 %v3100_v37, %v5597_v52  ;;  %v3147_v52 = vrot.slane %v3145_v8, 2  ;;  %v3125_v47 = vadd.f32 %v3123_v35, %v5609_v51 }
0x1e1c   :  { %v3807_v5 = vmul.f32 -1.442695, %v3102_v3  ;;  %v3808_v4 = vmul.f32 -1.442695, %v3125_v47 }
0x1e1e   :  { %4105 = vpow2.f32 %v3807_v5 }
0x1e24   :  { %v4106_v17 = vpop.eup %4105 }
0x1e25   :  { %v3106_v41 = vadd.f32 1.0, %v4106_v17  ;;  %v5715_v17 = vadd.f32 %v5667_v12, %v2694_v28 }
0x1e27   :  { %4107 = vrcp.f32 %v3106_v41  ;;  %v3118_v23 = vand.u32 2147483648, %v3106_v41  ;;  %v3116_v18 = vand.u32 2147483647, %v3106_v41  ;;  %vm3112_vm12 = vweird.f32 %v3106_v41 }
0x1e29   :  { %v3119_v57 = vor.u32 1.1754944e-38, %v3118_v23  ;;  %vm3117_vm4 = vcmp.eq.f32.partialorder %v3116_v18, 8.507059e+37 }
0x1e2d   :  { %v4108_v15 = vpop.eup %4107 }
0x1e2e   :  { %v3108_v44 = vmul.f32 %v4108_v15, %v3106_v41  ;;  %vm3113_vm6 = vweird.f32 %v4108_v15 }
0x1e2f   :  { %vm3114_vm3 = vmor %vm3112_vm12, %vm3113_vm6 }
0x1e30   :  { %v3109_v27 = vsub.f32 1.0, %v3108_v44 }
0x1e32   :  { %v3110_v31 = vmul.f32 %v4108_v15, %v3109_v27 }
0x1e34   :  { %v3111_v13 = vadd.f32 %v4108_v15, %v3110_v31 }
0x1e36   :  { %v3115_v34 = vsel %vm3114_vm3, %v4108_v15, %v3111_v13 }
0x1e37   :  { %v3120_v2 = vsel %vm3117_vm4, %v3119_v57, %v3115_v34 }
0x1e38   :  { %v3149_v61 = vmul.f32 %v3147_v52, %v3120_v2 }
0x1e3a   :  { %v3150_v53 = vadd.f32 %v3149_v61, %v5609_v51  ;;  %v3158_v51 = vrot.slane %v5674_v32, 6 }
0x1e3c   :  { %4109 = vtanh.f32 %v3150_v53 }
0x1e3d   :  { %4111 = vpow2.f32 %v3808_v4 }
0x1e42   :  { %v4110_v55 = vpop.eup %4109 }
0x1e43   :  { %3154 = vrot.lane.b32.xlu0 %v4110_v55, %s4201_s25  ;;  %v4112_v36 = vpop.eup %4111 }
0x1e44   :  { %v3129_v14 = vadd.f32 1.0, %v4112_v36 }
0x1e46   :  { %4113 = vrcp.f32 %v3129_v14  ;;  %v3141_v30 = vand.u32 2147483648, %v3129_v14  ;;  %vm3135_vm0 = vweird.f32 %v3129_v14  ;;  %v3139_v45 = vand.u32 2147483647, %v3129_v14 }
0x1e48   :  { %v3142_v46 = vor.u32 1.1754944e-38, %v3141_v30  ;;  %vm3140_vm13 = vcmp.eq.f32.partialorder %v3139_v45, 8.507059e+37 }
0x1e4c   :  { %v4114_v40 = vpop.eup %4113 }
0x1e4d   :  { %v3131_v6 = vmul.f32 %v4114_v40, %v3129_v14  ;;  %vm3136_vm5 = vweird.f32 %v4114_v40 }
0x1e4e   :  { %vm3137_vm14 = vmor %vm3135_vm0, %vm3136_vm5 }
0x1e4f   :  { %v3132_v20 = vsub.f32 1.0, %v3131_v6 }
0x1e51   :  { %v3133_v26 = vmul.f32 %v4114_v40, %v3132_v20 }
0x1e53   :  { %v3134_v11 = vadd.f32 %v4114_v40, %v3133_v26 }
0x1e55   :  { %v3138_v63 = vsel %vm3137_vm14, %v4114_v40, %v3134_v11 }
0x1e56   :  { %v3143_v56 = vsel %vm3140_vm13, %v3142_v46, %v3138_v63 }
0x1e57   :  { %v3152_v9 = vsub.f32 1.0, %v3143_v56  ;;  %v3160_v49 = vmul.f32 %v3158_v51, %v3143_v56 }
0x1eb5   :  { %v3155_v48 = vpop.permute.xlu0 %3154 }
0x1eb6   :  { %v3157_v29 = vmul.f32 %v3155_v48, %v3152_v9 }
0x1eb8   :  { %v3161_v58 = vadd.f32 %v3160_v49, %v3157_v29 }
0x1eba   :  { %v3163_v39 = vrot.slane %v3161_v58, 6 }
0x1ebc   :  { %3164 = vrot.lane.b32.xlu1 %v3163_v39, %s4201_s25 }
0x1f2e   :  { %v3165_v42 = vpop.permute.xlu1 %3164 }
0x1f2f   :  { %3809 = vmatmul.msk.f32.vlgmr.msra.gmra.mxu0 %vm109_vm2, %v3165_v42  ;;  %3810 = vmatmul.msk.f32.vlgmr.msra.gmra.mxu1 %vm109_vm2, %v3165_v42 }
0x1fac   :  { %v3205_v0 = vpop.f32.mrf.mxu1  ;;  %v3185_v21 = vpop.f32.mrf.mxu0 }
0x1fad   :  { %v3208_v22 = vadd.f32 %v3205_v0, %v5708_v19  ;;  %v3248_v24 = vadd.f32 %v5603_v10, %v3185_v21  ;;  %v3228_v60 = vadd.f32 %v3185_v21, %v5715_v17 }
0x1faf   :  { %v3811_v33 = vmul.f32 -1.442695, %v3208_v22  ;;  %v3812_v27 = vmul.f32 -1.442695, %v3228_v60 }
0x1fb1   :  { %4115 = vpow2.f32 %v3811_v33 }
0x1fb7   :  { %v4116_v50 = vpop.eup %4115 }
0x1fb8   :  { %v3212_v16 = vadd.f32 1.0, %v4116_v50 }
0x1fba   :  { %4117 = vrcp.f32 %v3212_v16  ;;  %v3224_v32 = vand.u32 2147483648, %v3212_v16  ;;  %v3222_v38 = vand.u32 2147483647, %v3212_v16  ;;  %vm3218_vm10 = vweird.f32 %v3212_v16 }
0x1fbc   :  { %v3225_v25 = vor.u32 1.1754944e-38, %v3224_v32  ;;  %vm3223_vm7 = vcmp.eq.f32.partialorder %v3222_v38, 8.507059e+37 }
0x1fc0   :  { %v4118_v59 = vpop.eup %4117 }
0x1fc1   :  { %v3214_v1 = vmul.f32 %v4118_v59, %v3212_v16  ;;  %vm3219_vm9 = vweird.f32 %v4118_v59 }
0x1fc2   :  { %vm3220_vm11 = vmor %vm3218_vm10, %vm3219_vm9 }
0x1fc3   :  { %v3215_v43 = vsub.f32 1.0, %v3214_v1 }
0x1fc5   :  { %v3216_v62 = vmul.f32 %v4118_v59, %v3215_v43 }
0x1fc7   :  { %v3217_v37 = vadd.f32 %v4118_v59, %v3216_v62 }
0x1fc9   :  { %v3221_v3 = vsel %vm3220_vm11, %v4118_v59, %v3217_v37 }
0x1fca   :  { %v3226_v5 = vsel %vm3223_vm7, %v3225_v25, %v3221_v3 }
0x1fcb   :  { %v3249_v41 = vmul.f32 %v3248_v24, %v3226_v5 }
0x1fcd   :  { %v3250_v15 = vadd.f32 %v3249_v41, %v5715_v17 }
0x1fcf   :  { %4119 = vtanh.f32 %v3250_v15 }
0x1fd0   :  { %4121 = vpow2.f32 %v3812_v27 }
0x1fd5   :  { %v4120_v44 = vpop.eup %4119 }
0x1fd6   :  { %3254 = vrot.lane.b32.xlu2 %v4120_v44, %s4201_s25  ;;  %v4122_v23 = vpop.eup %4121 }
0x1fd7   :  { %v3232_v8 = vadd.f32 1.0, %v4122_v23 }
0x1fd9   :  { %4123 = vrcp.f32 %v3232_v8  ;;  %v3244_v12 = vand.u32 2147483648, %v3232_v8  ;;  %vm3238_vm15 = vweird.f32 %v3232_v8  ;;  %v3242_v57 = vand.u32 2147483647, %v3232_v8 }
0x1fdb   :  { %v3245_v34 = vor.u32 1.1754944e-38, %v3244_v12  ;;  %vm3243_vm12 = vcmp.eq.f32.partialorder %v3242_v57, 8.507059e+37 }
0x1fdf   :  { %v4124_v31 = vpop.eup %4123 }
0x1fe0   :  { %v3234_v18 = vmul.f32 %v4124_v31, %v3232_v8  ;;  %vm3239_vm8 = vweird.f32 %v4124_v31 }
0x1fe1   :  { %vm3240_vm6 = vmor %vm3238_vm15, %vm3239_vm8 }
0x1fe2   :  { %v3235_v7 = vsub.f32 1.0, %v3234_v18 }
0x1fe4   :  { %v3236_v13 = vmul.f32 %v4124_v31, %v3235_v7 }
0x1fe6   :  { %v3237_v28 = vadd.f32 %v4124_v31, %v3236_v13 }
0x1fe8   :  { %v3241_v52 = vsel %vm3240_vm6, %v4124_v31, %v3237_v28 }
0x1fe9   :  { %v3246_v2 = vsel %vm3243_vm12, %v3245_v34, %v3241_v52 }
0x1fea   :  { %v3252_v61 = vsub.f32 1.0, %v3246_v2  ;;  %v3259_v35 = vmul.f32 %v3246_v2, %v3163_v39 }
0x2030   :  { %v3255_v53 = vpop.permute.xlu2 %3254 }
0x2031   :  { %v3257_v55 = vmul.f32 %v3255_v53, %v3252_v61 }
0x2033   :  { %v3260_v47 = vadd.f32 %v3259_v35, %v3257_v55 }
0x2035   :  { %3262 = vrot.lane.b32.xlu0 %v3260_v47, %s4201_s25  ;;  %v3365_v41 = vrot.slane %v3260_v47, 6 }
0x20a7   :  { %v3263_v4 = vpop.permute.xlu0 %3262 }
0x20a8   :  { %3813 = vmatmul.msk.f32.vlgmr.msra.gmra.mxu2 %vm109_vm2, %v3263_v4  ;;  %3814 = vmatmul.msk.f32.vlgmr.msra.gmra.mxu3 %vm109_vm2, %v3263_v4 }
0x212b   :  { %v3303_v36 = vpop.f32.mrf.mxu3  ;;  %v3283_v45 = vpop.f32.mrf.mxu2 }
0x212c   :  { %v3307_v14 = vrot.slane %v3303_v36, 6  ;;  %v3352_v56 = vadd.f32 %v5603_v10, %v3283_v45  ;;  %v3330_v33 = vrot.slane %v3283_v45, 6 }
0x212e   :  { %v3309_v40 = vadd.f32 %v3307_v14, %v5708_v19  ;;  %v3354_v49 = vrot.slane %v3352_v56, 6  ;;  %v3332_v50 = vadd.f32 %v3330_v33, %v5715_v17 }
0x2130   :  { %v3815_v6 = vmul.f32 -1.442695, %v3309_v40  ;;  %v3816_v16 = vmul.f32 -1.442695, %v3332_v50 }
0x2132   :  { %4125 = vpow2.f32 %v3815_v6 }
0x2138   :  { %v4126_v20 = vpop.eup %4125 }
0x2139   :  { %v3313_v26 = vadd.f32 1.0, %v4126_v20 }
0x213b   :  { %4127 = vrcp.f32 %v3313_v26  ;;  %v3325_v46 = vand.u32 2147483648, %v3313_v26  ;;  %v3323_v9 = vand.u32 2147483647, %v3313_v26  ;;  %vm3319_vm4 = vweird.f32 %v3313_v26 }
0x213d   :  { %v3326_v29 = vor.u32 1.1754944e-38, %v3325_v46  ;;  %vm3324_vm0 = vcmp.eq.f32.partialorder %v3323_v9, 8.507059e+37 }
0x2141   :  { %v4128_v11 = vpop.eup %4127 }
0x2142   :  { %v3315_v30 = vmul.f32 %v4128_v11, %v3313_v26  ;;  %vm3320_vm3 = vweird.f32 %v4128_v11 }
0x2143   :  { %vm3321_vm5 = vmor %vm3319_vm4, %vm3320_vm3 }
0x2144   :  { %v3316_v63 = vsub.f32 1.0, %v3315_v30 }
0x2146   :  { %v3317_v51 = vmul.f32 %v4128_v11, %v3316_v63 }
0x2148   :  { %v3318_v48 = vadd.f32 %v4128_v11, %v3317_v51 }
0x214a   :  { %v3322_v58 = vsel %vm3321_vm5, %v4128_v11, %v3318_v48 }
0x214b   :  { %v3327_v39 = vsel %vm3324_vm0, %v3326_v29, %v3322_v58 }
0x214c   :  { %v3356_v42 = vmul.f32 %v3354_v49, %v3327_v39 }
0x214e   :  { %v3357_v0 = vadd.f32 %v3356_v42, %v5715_v17 }
0x2150   :  { %4129 = vtanh.f32 %v3357_v0 }
0x2151   :  { %4131 = vpow2.f32 %v3816_v16 }
0x2156   :  { %v4130_v22 = vpop.eup %4129 }
0x2157   :  { %3361 = vrot.lane.b32.xlu1 %v4130_v22, %s4201_s25  ;;  %v4132_v59 = vpop.eup %4131 }
0x2158   :  { %v3336_v1 = vadd.f32 1.0, %v4132_v59 }
0x215a   :  { %4133 = vrcp.f32 %v3336_v1  ;;  %v3348_v37 = vand.u32 2147483648, %v3336_v1  ;;  %vm3342_vm13 = vweird.f32 %v3336_v1  ;;  %v3346_v25 = vand.u32 2147483647, %v3336_v1 }
0x215c   :  { %v3349_v3 = vor.u32 1.1754944e-38, %v3348_v37  ;;  %vm3347_vm10 = vcmp.eq.f32.partialorder %v3346_v25, 8.507059e+37 }
0x2160   :  { %v4134_v43 = vpop.eup %4133 }
0x2161   :  { %v3338_v32 = vmul.f32 %v4134_v43, %v3336_v1  ;;  %vm3343_vm14 = vweird.f32 %v4134_v43 }
0x2162   :  { %vm3344_vm9 = vmor %vm3342_vm13, %vm3343_vm14 }
0x2163   :  { %v3339_v62 = vsub.f32 1.0, %v3338_v32 }
0x2165   :  { %v3340_v38 = vmul.f32 %v4134_v43, %v3339_v62  ;;  %v3591_v62 = vrot.slane %v5614_v54, 2 }
0x2167   :  { %v3341_v21 = vadd.f32 %v4134_v43, %v3340_v38 }
0x2169   :  { %v3345_v24 = vsel %vm3344_vm9, %v4134_v43, %v3341_v21 }
0x216a   :  { %v3350_v5 = vsel %vm3347_vm10, %v3349_v3, %v3345_v24 }
0x216b   :  { %v3359_v15 = vsub.f32 1.0, %v3350_v5  ;;  %v3367_v27 = vmul.f32 %v3365_v41, %v3350_v5 }
0x21c9   :  { %v3362_v44 = vpop.permute.xlu1 %3361 }
0x21ca   :  { %v3364_v60 = vmul.f32 %v3362_v44, %v3359_v15 }
0x21cc   :  { %v3368_v23 = vadd.f32 %v3367_v27, %v3364_v60 }
0x21ce   :  { %v3370_v8 = vrot.slane %v3368_v23, 2  ;;  %v3474_v33 = vrot.slane %v3368_v23, 6 }
0x21d0   :  { %3371 = vrot.lane.b32.xlu2 %v3370_v8, %s4201_s25 }
0x222a   :  { %v3372_v31 = vpop.permute.xlu2 %3371 }
0x222b   :  { %3817 = vmatmul.msk.f32.vlgmr.msrb.gmra.mxu0 %vm109_vm2, %v3372_v31  ;;  %3818 = vmatmul.msk.f32.vlgmr.msrb.gmra.mxu1 %vm109_vm2, %v3372_v31 }
0x22a8   :  { %v3412_v18 = vpop.f32.mrf.mxu1  ;;  %v3392_v2 = vpop.f32.mrf.mxu0 }
0x22a9   :  { %v3416_v7 = vrot.slane %v3412_v18, 4  ;;  %v3461_v55 = vadd.f32 %v5603_v10, %v3392_v2  ;;  %v3439_v30 = vrot.slane %v3392_v2, 4 }
0x22ab   :  { %v3418_v13 = vadd.f32 %v3416_v7, %v5708_v19  ;;  %v3463_v14 = vrot.slane %v3461_v55, 4  ;;  %v3441_v45 = vadd.f32 %v3439_v30, %v5715_v17  ;;  %v3604_v30 = vld [vmem:[%s5785_s6 + $0x38] sm:$0xff] }
0x22ac   :  { %3621 = vmatpush.msra.mxu0 %v3604_v30 }
0x22ad   :  { %v3819_v28 = vmul.f32 -1.442695, %v3418_v13  ;;  %v3820_v63 = vmul.f32 -1.442695, %v3441_v45  ;;  %v3603_v45 = vld [vmem:[%s5785_s6 + $0x30] sm:$0xff] }
0x22ae   :  { %3622 = vmatpush.msra.mxu0 %v3603_v45 }
0x22af   :  { %4135 = vpow2.f32 %v3819_v28 }
0x22b5   :  { %v4136_v12 = vpop.eup %4135 }
0x22b6   :  { %v3422_v57 = vadd.f32 1.0, %v4136_v12 }
0x22b8   :  { %4137 = vrcp.f32 %v3422_v57  ;;  %v3434_v53 = vand.u32 2147483648, %v3422_v57  ;;  %v3432_v47 = vand.u32 2147483647, %v3422_v57  ;;  %vm3428_vm7 = vweird.f32 %v3422_v57 }
0x22ba   :  { %v3435_v36 = vor.u32 1.1754944e-38, %v3434_v53  ;;  %vm3433_vm15 = vcmp.eq.f32.partialorder %v3432_v47, 8.507059e+37 }
0x22be   :  { %v4138_v52 = vpop.eup %4137 }
0x22bf   :  { %v3424_v34 = vmul.f32 %v4138_v52, %v3422_v57  ;;  %vm3429_vm11 = vweird.f32 %v4138_v52 }
0x22c0   :  { %vm3430_vm8 = vmor %vm3428_vm7, %vm3429_vm11 }
0x22c1   :  { %v3425_v61 = vsub.f32 1.0, %v3424_v34 }
0x22c3   :  { %v3426_v35 = vmul.f32 %v4138_v52, %v3425_v61 }
0x22c5   :  { %v3427_v4 = vadd.f32 %v4138_v52, %v3426_v35 }
0x22c7   :  { %v3431_v40 = vsel %vm3430_vm8, %v4138_v52, %v3427_v4  ;;  %vm3595_vm8 = vcmask 261120  }
0x22c8   :  { %v3436_v6 = vsel %vm3433_vm15, %v3435_v36, %v3431_v40 }
0x22c9   :  { %v3465_v20 = vmul.f32 %v3463_v14, %v3436_v6 }
0x22cb   :  { %v3466_v26 = vadd.f32 %v3465_v20, %v5715_v17 }
0x22cd   :  { %4139 = vtanh.f32 %v3466_v26 }
0x22ce   :  { %4141 = vpow2.f32 %v3820_v63  ;;  %v3602_v63 = vld [vmem:[%s5785_s6 + $0x28] sm:$0xff] }
0x22cf   :  { %3623 = vmatpush.msra.mxu0 %v3602_v63 }
0x22d3   :  { %v4140_v11 = vpop.eup %4139 }
0x22d4   :  { %3470 = vrot.lane.b32.xlu0 %v4140_v11, %s4201_s25  ;;  %v4142_v46 = vpop.eup %4141 }
0x22d5   :  { %v3445_v56 = vadd.f32 1.0, %v4142_v46  ;;  %v3600_v46 = vld [vmem:[%s5785_s6 + $0x18] sm:$0xff] }
0x22d7   :  { %4143 = vrcp.f32 %v3445_v56  ;;  %v3457_v58 = vand.u32 2147483648, %v3445_v56  ;;  %vm3451_vm12 = vweird.f32 %v3445_v56  ;;  %v3455_v39 = vand.u32 2147483647, %v3445_v56 }
0x22d9   :  { %v3458_v0 = vor.u32 1.1754944e-38, %v3457_v58  ;;  %vm3456_vm4 = vcmp.eq.f32.partialorder %v3455_v39, 8.507059e+37  ;;  %v3597_v58 = vld [vmem:[%s5785_s6] sm:$0xff] }
0x22dd   :  { %v4144_v51 = vpop.eup %4143 }
0x22de   :  { %v3447_v9 = vmul.f32 %v4144_v51, %v3445_v56  ;;  %vm3452_vm6 = vweird.f32 %v4144_v51  ;;  %v3599_v56 = vld [vmem:[%s5785_s6 + $0x10] sm:$0xff] }
0x22df   :  { %vm3453_vm3 = vmor %vm3451_vm12, %vm3452_vm6 }
0x22e0   :  { %v3448_v48 = vsub.f32 1.0, %v3447_v9 }
0x22e2   :  { %v3449_v29 = vmul.f32 %v4144_v51, %v3448_v48 }
0x22e4   :  { %v3450_v49 = vadd.f32 %v4144_v51, %v3449_v29 }
0x22e6   :  { %v3454_v42 = vsel %vm3453_vm3, %v4144_v51, %v3450_v49  ;;  %v3598_v49 = vld [vmem:[%s5785_s6 + $0x8] sm:$0xff] }
0x22e7   :  { %v3459_v22 = vsel %vm3456_vm4, %v3458_v0, %v3454_v42 }
0x22e8   :  { %v3468_v50 = vsub.f32 1.0, %v3459_v22  ;;  %v3476_v1 = vmul.f32 %v3474_v33, %v3459_v22  ;;  %v3834_v33 = vld [vmem:[%s5786_s7] ss:$0 sm:$0xff] }
0x2346   :  { %v3471_v16 = vpop.permute.xlu0 %3470 }
0x2347   :  { %v3473_v59 = vmul.f32 %v3471_v16, %v3468_v50 }
0x2349   :  { %v3477_v43 = vadd.f32 %v3476_v1, %v3473_v59 }
0x234b   :  { %v3479_v32 = vrot.slane %v3477_v43, 4  ;;  %v3583_v35 = vrot.slane %v3477_v43, 6 }
0x234d   :  { %3480 = vrot.lane.b32.xlu1 %v3479_v32, %s4201_s25 }
0x2355   :  { %3592 = vrot.lane.b32.xlu1 %v3591_v62, %s4201_s25 }
0x23bf   :  { %v3481_v38 = vpop.permute.xlu1 %3480 }
0x23c0   :  { %3821 = vmatmul.msk.f32.vlgmr.msrb.gmra.mxu2 %vm109_vm2, %v3481_v38  ;;  %3822 = vmatmul.msk.f32.vlgmr.msrb.gmra.mxu3 %vm109_vm2, %v3481_v38 }
0x23c7   :  { %v3593_v39 = vpop.permute.xlu1 %3592 }
0x2443   :  { %v3501_v21 = vpop.f32.mrf.mxu2  ;;  %v3521_v37 = vpop.f32.mrf.mxu3 }
0x2444   :  { %v3548_v25 = vrot.slane %v3501_v21, 2  ;;  %v3525_v24 = vrot.slane %v3521_v37, 2  ;;  %v3570_v52 = vadd.f32 %v5603_v10, %v3501_v21 }
0x2446   :  { %v3550_v3 = vadd.f32 %v3548_v25, %v5715_v17  ;;  %v3527_v5 = vadd.f32 %v3525_v24, %v5708_v19  ;;  %v3572_v36 = vrot.slane %v3570_v52, 2 }
0x2448   :  { %v3824_v41 = vmul.f32 -1.442695, %v3550_v3  ;;  %v3823_v15 = vmul.f32 -1.442695, %v3527_v5 }
0x244a   :  { %4145 = vpow2.f32 %v3824_v41 }
0x244b   :  { %4147 = vpow2.f32 %v3823_v15 }
0x2450   :  { %v4146_v54 = vpop.eup %4145 }
0x2451   :  { %v4148_v44 = vpop.eup %4147  ;;  %v3554_v60 = vadd.f32 1.0, %v4146_v54 }
0x2452   :  { %v3531_v27 = vadd.f32 1.0, %v4148_v44 }
0x2453   :  { %4149 = vrcp.f32 %v3554_v60  ;;  %v3566_v28 = vand.u32 2147483648, %v3554_v60  ;;  %v3564_v19 = vand.u32 2147483647, %v3554_v60  ;;  %vm3560_vm14 = vweird.f32 %v3554_v60 }
0x2454   :  { %4151 = vrcp.f32 %v3531_v27  ;;  %v3543_v12 = vand.u32 2147483648, %v3531_v27  ;;  %v3541_v2 = vand.u32 2147483647, %v3531_v27  ;;  %vm3537_vm13 = vweird.f32 %v3531_v27 }
0x2455   :  { %v3567_v55 = vor.u32 1.1754944e-38, %v3566_v28  ;;  %vm3565_vm11 = vcmp.eq.f32.partialorder %v3564_v19, 8.507059e+37 }
0x2456   :  { %v3544_v47 = vor.u32 1.1754944e-38, %v3543_v12  ;;  %vm3542_vm7 = vcmp.eq.f32.partialorder %v3541_v2, 8.507059e+37 }
0x2459   :  { %v4150_v23 = vpop.eup %4149 }
0x245a   :  { %v4152_v8 = vpop.eup %4151  ;;  %v3556_v31 = vmul.f32 %v4150_v23, %v3554_v60  ;;  %vm3561_vm5 = vweird.f32 %v4150_v23 }
0x245b   :  { %v3533_v18 = vmul.f32 %v4152_v8, %v3531_v27  ;;  %vm3538_vm0 = vweird.f32 %v4152_v8  ;;  %vm3562_vm9 = vmor %vm3560_vm14, %vm3561_vm5 }
0x245c   :  { %v3557_v7 = vsub.f32 1.0, %v3556_v31  ;;  %vm3539_vm10 = vmor %vm3537_vm13, %vm3538_vm0 }
0x245d   :  { %v3534_v13 = vsub.f32 1.0, %v3533_v18 }
0x245e   :  { %v3558_v57 = vmul.f32 %v4150_v23, %v3557_v7 }
0x245f   :  { %v3535_v34 = vmul.f32 %v4152_v8, %v3534_v13 }
0x2460   :  { %v3559_v61 = vadd.f32 %v4150_v23, %v3558_v57 }
0x2461   :  { %v3536_v53 = vadd.f32 %v4152_v8, %v3535_v34 }
0x2462   :  { %v3563_v4 = vsel %vm3562_vm9, %v4150_v23, %v3559_v61 }
0x2463   :  { %v3540_v14 = vsel %vm3539_vm10, %v4152_v8, %v3536_v53  ;;  %v3568_v40 = vsel %vm3565_vm11, %v3567_v55, %v3563_v4 }
0x2464   :  { %v3545_v6 = vsel %vm3542_vm7, %v3544_v47, %v3540_v14  ;;  %v3585_v10 = vmul.f32 %v3583_v35, %v3568_v40  ;;  %v3577_v51 = vsub.f32 1.0, %v3568_v40 }
0x2465   :  { %v3574_v20 = vmul.f32 %v3572_v36, %v3545_v6 }
0x2467   :  { %v3575_v26 = vadd.f32 %v3574_v20, %v5715_v17  ;;  %v3601_v17 = vld [vmem:[%s5785_s6 + $0x20] sm:$0xff] }
0x2468   :  { %3624 = vmatpush.msra.mxu0 %v3601_v17 }
0x2469   :  { %4153 = vtanh.f32 %v3575_v26 }
0x246a   :  { %3625 = vmatpush.msra.mxu0 %v3600_v46 }
0x246c   :  { %3626 = vmatpush.msra.mxu0 %v3599_v56 }
0x246e   :  { %3627 = vmatpush.msra.mxu0 %v3598_v49 }
0x246f   :  { %v4154_v11 = vpop.eup %4153 }
0x2470   :  { %3579 = vrot.lane.b32.xlu2 %v4154_v11, %s4201_s25  ;;  %3628 = vmatpush.msra.mxu0 %v3597_v58 }
0x24ca   :  { %v3580_v9 = vpop.permute.xlu2 %3579 }
0x24cb   :  { %v3582_v48 = vmul.f32 %v3580_v9, %v3577_v51 }
0x24cd   :  { %v3586_v29 = vadd.f32 %v3585_v10, %v3582_v48 }
0x24cf   :  { %3588 = vrot.lane.b32.xlu0 %v3586_v29, %s4201_s25  ;;  %s4202_s25 = smov [#allocation4]  }
0x24d0   :  { %s3639_s23 = sshll.u32 %s4202_s25, 4  ;;  %s3640_s23 = int_to_ptr.vmem [resolvable:$true] %s3639_s23 }
0x2541   :  { %v3589_v42 = vpop.permute.xlu0 %3588 }
0x2542   :  { %v3596_v0 = vsel %vm3595_vm8, %v3589_v42, %v3593_v39 }
0x2543   :  { %v3610_v22 = vrot.slane %v3596_v0, 6 }
0x2545   :  { %3825 = vmatmul.msk.f32.vlgmr.msra.gmra.mxu0 %vm109_vm2, %v3610_v22 }
0x25c2   :  { %v3630_v50 = vpop.f32.mrf.mxu0 }
0x25c3   :  { %v3631_v16 = vadd.f32 %v3834_v33, %v3630_v50 }
0x25c5   :  { %3633 = vst.msk [vmem:[#allocation4] sm:$0x3] %vm276_vm1, %v3631_v16 }
0x25c6   :  { %3644 = dma.vmem_to_hbm [thread:$0]  %s3640_s23, 32, %s3642_s24, [#allocation5]  }
0x25c7   :  { %4197 = dma.done.wait [#allocation5], 32  }
0x25c8   :  { %4198 = vsyncadd [#allocation5], 4294967264 }
0x25c9   :  { %3649 = vsyncpa [#allocation5], 1 }

</bundles_post_ra>
